<compile_context>
chip_gen: v5e
topology: v5e:2x2
jax: 0.10.0
libtpu: 0.0.40
codegen_flags: <defaults>
</compile_context>

<pallas_src>
import functools

import jax
import jax.numpy as jnp
from jax.experimental import pallas as pl
from jax.experimental.pallas import tpu as pltpu


# Row indices inside the packed (16, D) parameter table (every row is D lanes wide;
# note inner = heads * (D // heads) == D for this module, so the q bias fits too).
(ROW_BXP, ROW_CLS, ROW_GPE, ROW_BPE, ROW_GA, ROW_BA, ROW_BQ, ROW_BO,
 ROW_GF, ROW_BF, ROW_B2, ROW_GFIN, ROW_BFIN) = range(13)
_VEC_PAD_ROWS = 16            # pad the 13 rows to a multiple of 8 sublanes


# -----------------------------------------------------------------------------
# In-kernel helpers
# -----------------------------------------------------------------------------
def _layernorm(x, gamma, beta, eps=1e-5):
    mu = jnp.mean(x, axis=-1, keepdims=True)
    var = jnp.mean(jnp.square(x - mu), axis=-1, keepdims=True)
    return (x - mu) * jax.lax.rsqrt(var + eps) * gamma + beta


def _erf(x):
    # Abramowitz & Stegun 7.1.26, |error| <= 1.5e-7: exact-GELU semantics of
    # torch.nn.GELU using only exp / mul / add / where (safe Mosaic lowering).
    a1, a2, a3, a4, a5 = 0.254829592, -0.284496736, 1.421413741, -1.453152027, 1.061405429
    p = 0.3275911
    sgn = jnp.where(x >= 0.0, 1.0, -1.0)
    ax = jnp.abs(x)
    t = 1.0 / (1.0 + p * ax)
    poly = ((((a5 * t + a4) * t + a3) * t + a2) * t + a1) * t
    return sgn * (1.0 - poly * jnp.exp(-ax * ax))


def _gelu_erf(x):
    return 0.5 * x * (1.0 + _erf(x * 0.7071067811865476))


# -----------------------------------------------------------------------------
# Pallas kernel: TB batch elements per grid step
# -----------------------------------------------------------------------------
def transformer_pooler_kernel(
    x_ref,        # (TB, S, Din)     f32
    wxp_ref,      # (Din, D)         md
    pos_ref,      # (S, D)           f32   scaled absolute positional embedding
    vec_ref,      # (16, D)          f32   packed bias / LayerNorm / cls / bq rows
    wq_ref,       # (D, H*dh)        md    query projection (cls row only)
    wkv_ref,      # (D, 2*H*dh)      md    fused [K | V] projection
    bkv_ref,      # (1, 2*H*dh)      f32
    wo_ref,       # (H*dh, D)        md    fused out-projection
    w1_ref,       # (D, FF)          md
    b1_ref,       # (1, FF)          f32
    w2_ref,       # (FF, D)          md
    out_ref,      # (1, TB, D)       f32
    seq_scr,      # VMEM (TB, Sp, D) f32
    *, heads, matmul_dtype,
):
    TB, S, Din = x_ref.shape
    D = wxp_ref.shape[1]
    HD = wq_ref.shape[1]                      # heads * dh
    H = heads
    dh = HD // H
    Sp = seq_scr.shape[1]
    scale = dh ** -0.5
    neg_big = jnp.float32(-1e30)

    def vrow(i):                              # (1, D) row of the packed table
        return vec_ref[i:i + 1, :]

    def mm(a, b):                             # MXU matmul: md operands, f32 accum
        return jnp.dot(a.astype(matmul_dtype), b, preferred_element_type=jnp.float32)

    # ---- x_proj + absolute positional embedding (all S input rows) -----------
    xf = x_ref[...].reshape(TB * S, Din)
    h = mm(xf, wxp_ref[...]) + vrow(ROW_BXP)                         # (TB*S, D)
    h = h.reshape(TB, S, D) + pos_ref[...][None]

    # ---- assemble padded (cls-last) sequence in sublane-aligned scratch ------
    # rows 0..S-1: projected inputs, row S: cls token, rows S+1..Sp-1: zeros.
    # Only the pad rows are zeroed (no full memset); they must be finite so that
    # 0 * v_pad cannot produce NaN after the softmax mask.
    seq_scr[:, :S, :] = h
    seq_scr[:, S:S + 1, :] = jnp.broadcast_to(
        vrow(ROW_CLS).reshape(1, 1, D), (TB, 1, D))
    if Sp > S + 1:
        seq_scr[:, S + 1:, :] = jnp.zeros((TB, Sp - S - 1, D), jnp.float32)

    # post_emb_norm (emb_dropout has p = 0.0 -> identity)
    seq = _layernorm(seq_scr[...], vrow(ROW_GPE), vrow(ROW_BPE))     # (TB, Sp, D)

    # ---- pre-norm multi-head self-attention -----------------------------------
    # depth == 1 and only the cls row is read downstream, so the query path and
    # everything after attention run on the cls row only; K/V use all valid rows.
    y = _layernorm(seq, vrow(ROW_GA), vrow(ROW_BA))                  # (TB, Sp, D)
    y_md = y.reshape(TB * Sp, D).astype(matmul_dtype)                # cast once

    # fused K|V projection: one wide-N MXU matmul instead of 2*H narrow ones
    kv = jnp.dot(y_md, wkv_ref[...], preferred_element_type=jnp.float32) + bkv_ref[...]
    kv = kv.reshape(TB, Sp, 2 * HD)
    k_all = kv[:, :, :HD]                                            # (TB, Sp, HD)
    v_all = kv[:, :, HD:]                                            # (TB, Sp, HD)

    # cls-row query: single (TB, D) x (D, HD) matmul
    y_cls = y[:, S:S + 1, :].reshape(TB, D)
    q = mm(y_cls, wq_ref[...]) + vrow(ROW_BQ)                        # (TB, HD)

    # attention core: query length 1 per example -> scores / softmax / PV are tiny
    # O(Sp*dh) VPU/XLU work per head; all large matmuls are fused outside this loop.
    key_valid = jax.lax.broadcasted_iota(jnp.int32, (1, Sp), 1) <= S  # S inputs + cls
    head_outs = []
    for hh in range(H):                       # H is small (module default: 2)
        sl = slice(hh * dh, (hh + 1) * dh)
        q_h = q[:, sl]                                               # (TB, dh)
        k_h = k_all[:, :, sl]                                        # (TB, Sp, dh)
        v_h = v_all[:, :, sl]                                        # (TB, Sp, dh)
        s = jnp.sum(q_h[:, None, :] * k_h, axis=-1) * scale          # (TB, Sp)
        s = jnp.where(key_valid, s, neg_big)
        s = s - jnp.max(s, axis=-1, keepdims=True)
        p = jnp.exp(s)
        p = p / jnp.sum(p, axis=-1, keepdims=True)                   # exact softmax
        head_outs.append(jnp.sum(p[:, :, None] * v_h, axis=1))       # (TB, dh)
    attn_cat = head_outs[0] if H == 1 else jnp.concatenate(head_outs, axis=-1)

    # fused out-projection + residual, cls row only
    cls_res = (seq[:, S:S + 1, :].reshape(TB, D)
               + mm(attn_cat, wo_ref[...]) + vrow(ROW_BO))           # (TB, D)

    # ---- pre-norm feed-forward (cls row only) ---------------------------------
    y2 = _layernorm(cls_res, vrow(ROW_GF), vrow(ROW_BF))             # (TB, D)
    hff = mm(y2, w1_ref[...]) + b1_ref[...]                          # (TB, FF)
    hff = _gelu_erf(hff)                      # exact-erf GELU (torch.nn.GELU default)
    cls_res = cls_res + mm(hff, w2_ref[...]) + vrow(ROW_B2)

    # ---- final LayerNorm, lane-dense (TB, D) output slab -----------------------
    out_ref[0] = _layernorm(cls_res, vrow(ROW_GFIN), vrow(ROW_BFIN))


# -----------------------------------------------------------------------------
# Wrapper
# -----------------------------------------------------------------------------
def transformer_pooler(x, params, *, heads, block_b=None, matmul_dtype=jnp.bfloat16):
    """TransformerPooler forward.  bf16 MXU operands / f32 accumulation by default;
    pass matmul_dtype=jnp.float32 for full-f32 fidelity with the PyTorch module."""
    B, S, Din = x.shape
    D = params["wxp"].shape[1]
    assert D % heads == 0, "transformer_dim must be divisible by heads"

    if block_b is None:
        # >= 2 grid steps per TensorCore on v7x (2 TCs/chip under the "parallel"
        # grid) => aim for >= 4 steps total, with the largest such batch tile so
        # per-step overhead is amortized and matmul M stays sublane-dense.
        block_b = B
        for min_steps in (4, 2):
            cands = [tb for tb in range(1, B + 1) if B % tb == 0 and B // tb >= min_steps]
            if cands:
                block_b = max(cands)
                break
    assert B % block_b == 0, "batch must be divisible by block_b"
    TB = block_b

    # pad (S inputs + 1 cls) up to a multiple of 8 sublanes; pad key rows are masked
    Sp = max(8, ((S + 1 + 7) // 8) * 8)

    f32 = jnp.float32
    md = matmul_dtype

    # ---- packed (16, D) parameter table ---------------------------------------
    vec = jnp.zeros((_VEC_PAD_ROWS, D), f32)
    vec_rows = {
        ROW_BXP: params["bxp"], ROW_CLS: params["cls"],
        ROW_GPE: params["g_pe"], ROW_BPE: params["b_pe"],
        ROW_GA: params["g_a"], ROW_BA: params["b_a"],
        ROW_BQ: params["bq"], ROW_BO: params["bo"],
        ROW_GF: params["g_f"], ROW_BF: params["b_f"],
        ROW_B2: params["b2"],
        ROW_GFIN: params["g_fin"], ROW_BFIN: params["b_fin"],
    }
    for r, val in vec_rows.items():
        vec = vec.at[r].set(val.reshape(D))

    # ---- fused projection weights (head-major column layout: col = h*dh + j) --
    wq = params["wq"].astype(md)                                          # (D, HD)
    wkv = jnp.concatenate([params["wk"], params["wv"]], axis=1).astype(md)  # (D, 2HD)
    bkv = jnp.concatenate([params["bk"], params["bv"]], axis=1).astype(f32)  # (1, 2HD)
    wo = params["wo"].astype(md)                                          # (HD, D)

    weights = [params["wxp"].astype(md), params["pos"].astype(f32), vec,
               wq, wkv, bkv, wo,
               params["w1"].astype(md), params["b1"].astype(f32),
               params["w2"].astype(md)]

    in_specs = [pl.BlockSpec((TB, S, Din), lambda b: (b, 0, 0))]
    for w in weights:
        # Grid-invariant blocks: constant index_map, fetched once by the pipeline.
        # (Single-buffering them would halve their VMEM; kept at the default for
        #  portability — at real model dims stream w1/w2 over an extra grid axis.)
        in_specs.append(pl.BlockSpec(w.shape, lambda b, _nd=w.ndim: (0,) * _nd))

    out = pl.pallas_call(
        functools.partial(transformer_pooler_kernel, heads=heads, matmul_dtype=md),
        out_shape=jax.ShapeDtypeStruct((B // TB, TB, D), jnp.float32),
        grid=(B // TB,),
        in_specs=in_specs,
        out_specs=pl.BlockSpec((1, TB, D), lambda b: (b, 0, 0)),
        scratch_shapes=[pltpu.VMEM((TB, Sp, D), jnp.float32)],
        compiler_params=pltpu.CompilerParams(
            dimension_semantics=("parallel",),   # megacore-shard the batch grid
            # explicit VMEM budget: tiny at demo dims; for real dims size TB (and,
            # if needed, stream the FF weights) against v7x's 64 MiB / TC.
            vmem_limit_bytes=48 * 1024 * 1024,
        ),
    )(x, *weights)
    return out.reshape(B, D)


# -----------------------------------------------------------------------------
# Deterministic parameter init (synthetic; shapes from the module __init__)
# -----------------------------------------------------------------------------
def init_params(key, Din, D, heads, FF, S, max_seq_len):
    ks = jax.random.split(key, 12)
    sd = 0.02
    nrm = lambda k, shape: jax.random.normal(k, shape, jnp.float32) * sd
    inner = heads * (D // heads)

    p = {}
    p["wxp"] = nrm(ks[0], (Din, D))
    p["bxp"] = nrm(ks[1], (1, D))
    pos_table = jax.random.normal(ks[2], (max_seq_len, D), jnp.float32)
    # AbsolutePositionalEmbedding: emb(pos)[:S] * dim**-0.5
    p["pos"] = pos_table[:S] * (D ** -0.5)
    p["cls"] = jax.random.normal(ks[3], (1, D), jnp.float32)          # torch.randn(1,1,D)
    p["g_pe"] = jnp.ones((1, D), jnp.float32)
    p["b_pe"] = jnp.zeros((1, D), jnp.float32)
    p["g_a"] = jnp.ones((1, D), jnp.float32)
    p["b_a"] = jnp.zeros((1, D), jnp.float32)
    p["wq"] = nrm(ks[4], (D, inner)); p["bq"] = jnp.zeros((1, inner), jnp.float32)
    p["wk"] = nrm(ks[5], (D, inner)); p["bk"] = jnp.zeros((1, inner), jnp.float32)
    p["wv"] = nrm(ks[6], (D, inner)); p["bv"] = jnp.zeros((1, inner), jnp.float32)
    p["wo"] = nrm(ks[7], (inner, D)); p["bo"] = nrm(ks[8], (1, D))
    p["g_f"] = jnp.ones((1, D), jnp.float32)
    p["b_f"] = jnp.zeros((1, D), jnp.float32)
    p["w1"] = nrm(ks[9], (D, FF)); p["b1"] = jnp.zeros((1, FF), jnp.float32)
    p["w2"] = nrm(ks[10], (FF, D)); p["b2"] = jnp.zeros((1, D), jnp.float32)
    p["g_fin"] = jnp.ones((1, D), jnp.float32)
    p["b_fin"] = jnp.zeros((1, D), jnp.float32)
    return p


# -----------------------------------------------------------------------------
# Pure-JAX reference mirroring the PyTorch forward (cls token FIRST).
# matmul_dtype is applied only to the projection-matmul operands (same fidelity
# choice as the kernel); scores / softmax / PV / LN / GELU stay f32.
# -----------------------------------------------------------------------------
def reference(x, p, heads, matmul_dtype=jnp.float32):
    B, S, Din = x.shape
    D = p["wxp"].shape[1]
    md = matmul_dtype

    def mm(a, b):
        return jnp.dot(a.astype(md), b.astype(md), preferred_element_type=jnp.float32)

    h = mm(x.reshape(B * S, Din), p["wxp"]) + p["bxp"]
    h = h.reshape(B, S, D) + p["pos"][None]
    cls = jnp.broadcast_to(p["cls"][None], (B, 1, D))
    seq = jnp.concatenate([cls, h], axis=1)
    seq = _layernorm(seq, p["g_pe"], p["b_pe"])

    T = S + 1
    y = _layernorm(seq, p["g_a"], p["b_a"])
    yf = y.reshape(B * T, D)
    q = mm(yf, p["wq"]) + p["bq"]
    k = mm(yf, p["wk"]) + p["bk"]
    v = mm(yf, p["wv"]) + p["bv"]
    dh = q.shape[-1] // heads

    def split(t):
        return t.reshape(B, T, heads, dh).transpose(0, 2, 1, 3)

    qh, kh, vh = split(q), split(k), split(v)
    s = jnp.einsum('bhqd,bhkd->bhqk', qh, kh) * (dh ** -0.5)       # f32 scores
    a = jax.nn.softmax(s, axis=-1)
    o = jnp.einsum('bhqk,bhkd->bhqd', a, vh)
    o = o.transpose(0, 2, 1, 3).reshape(B * T, heads * dh)
    seq = seq + (mm(o, p["wo"]) + p["bo"]).reshape(B, T, D)

    y = _layernorm(seq, p["g_f"], p["b_f"])
    hff = mm(y.reshape(B * T, D), p["w1"]) + p["b1"]
    hff = jax.nn.gelu(hff, approximate=False)                       # exact erf GELU
    seq = seq + (mm(hff, p["w2"]) + p["b2"]).reshape(B, T, D)

    seq = _layernorm(seq, p["g_fin"], p["b_fin"])
    return seq[:, 0]


if __name__ == "__main__":
    # Small, lane/sublane-dense demo dims (module defaults scaled down):
    #   batch=32, seq_len=8, input_dim=128, transformer_dim=128, heads=2, ff=256.
    B, S, Din = 32, 8, 128
    D, heads, FF = 128, 2, 256
    max_seq_len = 16

    key = jax.random.PRNGKey(0)
    kx, kp = jax.random.split(key)
    x = jax.random.normal(kx, (B, S, Din), jnp.float32)
    params = init_params(kp, Din, D, heads, FF, S, max_seq_len)

    # Default: bf16 MXU operands (MXU-native on v5e/v6e/v7x), f32 accumulation;
    # LayerNorm / softmax / GELU stay in f32.
    out = transformer_pooler(x, params, heads=heads)
    out = jax.block_until_ready(out)
    assert out.shape == (B, D), out.shape
    assert bool(jnp.all(jnp.isfinite(out)))

    ref = reference(x, params, heads, matmul_dtype=jnp.bfloat16)
    err = float(jnp.max(jnp.abs(out - ref)))
    assert jnp.allclose(out, ref, atol=5e-3, rtol=5e-3), err

    print("KERNEL_OK")
</pallas_src>

<mosaic_0001>
module attributes {stable_mosaic.version = 11 : i64} {
  func.func @transformer_pooler_kernel(%arg0: i32, %arg1: memref<8x8x128xf32, #tpu.memory_space<vmem>>, %arg2: memref<128x128xbf16, #tpu.memory_space<vmem>>, %arg3: memref<8x128xf32, #tpu.memory_space<vmem>>, %arg4: memref<16x128xf32, #tpu.memory_space<vmem>>, %arg5: memref<128x128xbf16, #tpu.memory_space<vmem>>, %arg6: memref<128x256xbf16, #tpu.memory_space<vmem>>, %arg7: memref<1x256xf32, #tpu.memory_space<vmem>>, %arg8: memref<128x128xbf16, #tpu.memory_space<vmem>>, %arg9: memref<128x256xbf16, #tpu.memory_space<vmem>>, %arg10: memref<1x256xf32, #tpu.memory_space<vmem>>, %arg11: memref<256x128xbf16, #tpu.memory_space<vmem>>, %arg12: memref<1x8x128xf32, #tpu.memory_space<vmem>>, %arg13: memref<8x16x128xf32, #tpu.memory_space<vmem>>) attributes {dimension_semantics = [#tpu.dimension_semantics<parallel>], iteration_bounds = array<i64: 4>, scalar_prefetch = 0 : i64, scratch_operands = 1 : i64, tpu.core_type = #tpu.core_type<tc>, window_params = [{transform_indices = @transform_0, window_bounds = array<i64: 8, 8, 128>}, {pipeline_mode = #tpu.pipeline_mode<synchronous>, transform_indices = @transform_1, window_bounds = array<i64: 128, 128>}, {pipeline_mode = #tpu.pipeline_mode<synchronous>, transform_indices = @transform_2, window_bounds = array<i64: 8, 128>}, {pipeline_mode = #tpu.pipeline_mode<synchronous>, transform_indices = @transform_3, window_bounds = array<i64: 16, 128>}, {pipeline_mode = #tpu.pipeline_mode<synchronous>, transform_indices = @transform_4, window_bounds = array<i64: 128, 128>}, {pipeline_mode = #tpu.pipeline_mode<synchronous>, transform_indices = @transform_5, window_bounds = array<i64: 128, 256>}, {pipeline_mode = #tpu.pipeline_mode<synchronous>, transform_indices = @transform_6, window_bounds = array<i64: 1, 256>}, {pipeline_mode = #tpu.pipeline_mode<synchronous>, transform_indices = @transform_7, window_bounds = array<i64: 128, 128>}, {pipeline_mode = #tpu.pipeline_mode<synchronous>, transform_indices = @transform_8, window_bounds = array<i64: 128, 256>}, {pipeline_mode = #tpu.pipeline_mode<synchronous>, transform_indices = @transform_9, window_bounds = array<i64: 1, 256>}, {pipeline_mode = #tpu.pipeline_mode<synchronous>, transform_indices = @transform_10, window_bounds = array<i64: 256, 128>}, {transform_indices = @transform_11, window_bounds = array<i64: 1, 8, 128>}]} {
    %c0 = arith.constant 0 : index
    %c0_0 = arith.constant 0 : index
    %c0_1 = arith.constant 0 : index
    %0 = vector.load %arg1[%c0, %c0_0, %c0_1] : memref<8x8x128xf32, #tpu.memory_space<vmem>>, vector<8x8x128xf32>
    %1 = vector.shape_cast %0 : vector<8x8x128xf32> to vector<64x128xf32>
    %c0_2 = arith.constant 0 : index
    %c0_3 = arith.constant 0 : index
    %2 = vector.load %arg2[%c0_2, %c0_3] : memref<128x128xbf16, #tpu.memory_space<vmem>>, vector<128x128xbf16>
    %3 = arith.truncf %1 : vector<64x128xf32> to vector<64x128xbf16>
    %cst = arith.constant dense<0.000000e+00> : vector<64x128xf32>
    %4 = tpu.matmul %3, %2, %cst {dimension_numbers = #tpu.dot_dimension_numbers<[1], [0], [0], [1], [0, 0, 1, 1], [], []>} : vector<64x128xbf16>, vector<128x128xbf16>, vector<64x128xf32> -> vector<64x128xf32>
    %c0_4 = arith.constant 0 : index
    %c0_5 = arith.constant 0 : index
    %5 = vector.load %arg4[%c0_4, %c0_5] : memref<16x128xf32, #tpu.memory_space<vmem>>, vector<1x128xf32>
    %6 = vector.broadcast %5 : vector<1x128xf32> to vector<64x128xf32>
    %7 = arith.addf %4, %6 : vector<64x128xf32>
    %8 = vector.shape_cast %7 : vector<64x128xf32> to vector<8x8x128xf32>
    %c0_6 = arith.constant 0 : index
    %c0_7 = arith.constant 0 : index
    %9 = vector.load %arg3[%c0_6, %c0_7] : memref<8x128xf32, #tpu.memory_space<vmem>>, vector<8x128xf32>
    %10 = vector.shape_cast %9 : vector<8x128xf32> to vector<1x8x128xf32>
    %11 = vector.broadcast %10 : vector<1x8x128xf32> to vector<8x8x128xf32>
    %12 = arith.addf %8, %11 : vector<8x8x128xf32>
    %c0_8 = arith.constant 0 : index
    %c0_9 = arith.constant 0 : index
    %c0_10 = arith.constant 0 : index
    %13 = vector.load %arg13[%c0_8, %c0_9, %c0_10] : memref<8x16x128xf32, #tpu.memory_space<vmem>>, vector<8x8x128xf32>
    tpu.vector_store %arg13[%c0_8, %c0_9, %c0_10], %12 {strides = array<i32>} : memref<8x16x128xf32, #tpu.memory_space<vmem>>, vector<8x8x128xf32>,
    %c1 = arith.constant 1 : index
    %c0_11 = arith.constant 0 : index
    %14 = vector.load %arg4[%c1, %c0_11] : memref<16x128xf32, #tpu.memory_space<vmem>>, vector<1x128xf32>
    %15 = vector.shape_cast %14 : vector<1x128xf32> to vector<1x1x128xf32>
    %16 = vector.shape_cast %15 : vector<1x1x128xf32> to vector<1x1x128xf32>
    %17 = vector.broadcast %16 : vector<1x1x128xf32> to vector<8x1x128xf32>
    %c0_12 = arith.constant 0 : index
    %c8 = arith.constant 8 : index
    %c0_13 = arith.constant 0 : index
    %18 = vector.load %arg13[%c0_12, %c8, %c0_13] : memref<8x16x128xf32, #tpu.memory_space<vmem>>, vector<8x1x128xf32>
    tpu.vector_store %arg13[%c0_12, %c8, %c0_13], %17 {strides = array<i32>} : memref<8x16x128xf32, #tpu.memory_space<vmem>>, vector<8x1x128xf32>,
    %cst_14 = arith.constant 0.000000e+00 : f32
    %19 = vector.broadcast %cst_14 : f32 to vector<8x7x128xf32>
    %c0_15 = arith.constant 0 : index
    %c9 = arith.constant 9 : index
    %c0_16 = arith.constant 0 : index
    %20 = vector.load %arg13[%c0_15, %c9, %c0_16] : memref<8x16x128xf32, #tpu.memory_space<vmem>>, vector<8x7x128xf32>
    tpu.vector_store %arg13[%c0_15, %c9, %c0_16], %19 {strides = array<i32>} : memref<8x16x128xf32, #tpu.memory_space<vmem>>, vector<8x7x128xf32>,
    %c0_17 = arith.constant 0 : index
    %c0_18 = arith.constant 0 : index
    %c0_19 = arith.constant 0 : index
    %21 = vector.load %arg13[%c0_17, %c0_18, %c0_19] : memref<8x16x128xf32, #tpu.memory_space<vmem>>, vector<8x16x128xf32>
    %c2 = arith.constant 2 : index
    %c0_20 = arith.constant 0 : index
    %22 = vector.load %arg4[%c2, %c0_20] : memref<16x128xf32, #tpu.memory_space<vmem>>, vector<1x128xf32>
    %c3 = arith.constant 3 : index
    %c0_21 = arith.constant 0 : index
    %23 = vector.load %arg4[%c3, %c0_21] : memref<16x128xf32, #tpu.memory_space<vmem>>, vector<1x128xf32>
    %cst_22 = arith.constant dense<0.000000e+00> : vector<8x16xf32>
    %24 = vector.multi_reduction <add>, %21, %cst_22 [2] : vector<8x16x128xf32> to vector<8x16xf32>
    %25 = vector.shape_cast %24 : vector<8x16xf32> to vector<8x16x1xf32>
    %cst_23 = arith.constant 1.280000e+02 : f32
    %26 = vector.broadcast %cst_23 : f32 to vector<8x16x1xf32>
    %27 = arith.divf %25, %26 : vector<8x16x1xf32>
    %28 = vector.broadcast %27 : vector<8x16x1xf32> to vector<8x16x128xf32>
    %29 = arith.subf %21, %28 : vector<8x16x128xf32>
    %30 = arith.mulf %29, %29 : vector<8x16x128xf32>
    %cst_24 = arith.constant dense<0.000000e+00> : vector<8x16xf32>
    %31 = vector.multi_reduction <add>, %30, %cst_24 [2] : vector<8x16x128xf32> to vector<8x16xf32>
    %32 = vector.shape_cast %31 : vector<8x16xf32> to vector<8x16x1xf32>
    %cst_25 = arith.constant 1.280000e+02 : f32
    %33 = vector.broadcast %cst_25 : f32 to vector<8x16x1xf32>
    %34 = arith.divf %32, %33 : vector<8x16x1xf32>
    %35 = vector.broadcast %27 : vector<8x16x1xf32> to vector<8x16x128xf32>
    %36 = arith.subf %21, %35 : vector<8x16x128xf32>
    %cst_26 = arith.constant 9.99999974E-6 : f32
    %37 = vector.broadcast %cst_26 : f32 to vector<8x16x1xf32>
    %38 = arith.addf %34, %37 : vector<8x16x1xf32>
    %39 = math.rsqrt %38 : vector<8x16x1xf32>
    %40 = vector.broadcast %39 : vector<8x16x1xf32> to vector<8x16x128xf32>
    %41 = arith.mulf %36, %40 : vector<8x16x128xf32>
    %42 = vector.shape_cast %22 : vector<1x128xf32> to vector<1x1x128xf32>
    %43 = vector.broadcast %42 : vector<1x1x128xf32> to vector<8x16x128xf32>
    %44 = arith.mulf %41, %43 : vector<8x16x128xf32>
    %45 = vector.shape_cast %23 : vector<1x128xf32> to vector<1x1x128xf32>
    %46 = vector.broadcast %45 : vector<1x1x128xf32> to vector<8x16x128xf32>
    %47 = arith.addf %44, %46 : vector<8x16x128xf32>
    %c4 = arith.constant 4 : index
    %c0_27 = arith.constant 0 : index
    %48 = vector.load %arg4[%c4, %c0_27] : memref<16x128xf32, #tpu.memory_space<vmem>>, vector<1x128xf32>
    %c5 = arith.constant 5 : index
    %c0_28 = arith.constant 0 : index
    %49 = vector.load %arg4[%c5, %c0_28] : memref<16x128xf32, #tpu.memory_space<vmem>>, vector<1x128xf32>
    %cst_29 = arith.constant dense<0.000000e+00> : vector<8x16xf32>
    %50 = vector.multi_reduction <add>, %47, %cst_29 [2] : vector<8x16x128xf32> to vector<8x16xf32>
    %51 = vector.shape_cast %50 : vector<8x16xf32> to vector<8x16x1xf32>
    %cst_30 = arith.constant 1.280000e+02 : f32
    %52 = vector.broadcast %cst_30 : f32 to vector<8x16x1xf32>
    %53 = arith.divf %51, %52 : vector<8x16x1xf32>
    %54 = vector.broadcast %53 : vector<8x16x1xf32> to vector<8x16x128xf32>
    %55 = arith.subf %47, %54 : vector<8x16x128xf32>
    %56 = arith.mulf %55, %55 : vector<8x16x128xf32>
    %cst_31 = arith.constant dense<0.000000e+00> : vector<8x16xf32>
    %57 = vector.multi_reduction <add>, %56, %cst_31 [2] : vector<8x16x128xf32> to vector<8x16xf32>
    %58 = vector.shape_cast %57 : vector<8x16xf32> to vector<8x16x1xf32>
    %cst_32 = arith.constant 1.280000e+02 : f32
    %59 = vector.broadcast %cst_32 : f32 to vector<8x16x1xf32>
    %60 = arith.divf %58, %59 : vector<8x16x1xf32>
    %61 = vector.broadcast %53 : vector<8x16x1xf32> to vector<8x16x128xf32>
    %62 = arith.subf %47, %61 : vector<8x16x128xf32>
    %cst_33 = arith.constant 9.99999974E-6 : f32
    %63 = vector.broadcast %cst_33 : f32 to vector<8x16x1xf32>
    %64 = arith.addf %60, %63 : vector<8x16x1xf32>
    %65 = math.rsqrt %64 : vector<8x16x1xf32>
    %66 = vector.broadcast %65 : vector<8x16x1xf32> to vector<8x16x128xf32>
    %67 = arith.mulf %62, %66 : vector<8x16x128xf32>
    %68 = vector.shape_cast %48 : vector<1x128xf32> to vector<1x1x128xf32>
    %69 = vector.broadcast %68 : vector<1x1x128xf32> to vector<8x16x128xf32>
    %70 = arith.mulf %67, %69 : vector<8x16x128xf32>
    %71 = vector.shape_cast %49 : vector<1x128xf32> to vector<1x1x128xf32>
    %72 = vector.broadcast %71 : vector<1x1x128xf32> to vector<8x16x128xf32>
    %73 = arith.addf %70, %72 : vector<8x16x128xf32>
    %74 = vector.shape_cast %73 : vector<8x16x128xf32> to vector<128x128xf32>
    %75 = arith.truncf %74 : vector<128x128xf32> to vector<128x128xbf16>
    %c0_34 = arith.constant 0 : index
    %c0_35 = arith.constant 0 : index
    %76 = vector.load %arg6[%c0_34, %c0_35] : memref<128x256xbf16, #tpu.memory_space<vmem>>, vector<128x256xbf16>
    %cst_36 = arith.constant dense<0.000000e+00> : vector<128x256xf32>
    %77 = tpu.matmul %75, %76, %cst_36 {dimension_numbers = #tpu.dot_dimension_numbers<[1], [0], [0], [1], [0, 0, 1, 1], [], []>} : vector<128x128xbf16>, vector<128x256xbf16>, vector<128x256xf32> -> vector<128x256xf32>
    %c0_37 = arith.constant 0 : index
    %c0_38 = arith.constant 0 : index
    %78 = vector.load %arg7[%c0_37, %c0_38] : memref<1x256xf32, #tpu.memory_space<vmem>>, vector<1x256xf32>
    %79 = vector.broadcast %78 : vector<1x256xf32> to vector<128x256xf32>
    %80 = arith.addf %77, %79 : vector<128x256xf32>
    %81 = vector.shape_cast %80 : vector<128x256xf32> to vector<8x16x256xf32>
    %82 = vector.extract_strided_slice %81 {offsets = [0, 0, 0], sizes = [8, 16, 128], strides = [1, 1, 1]} : vector<8x16x256xf32> to vector<8x16x128xf32>
    %83 = vector.extract_strided_slice %81 {offsets = [0, 0, 128], sizes = [8, 16, 128], strides = [1, 1, 1]} : vector<8x16x256xf32> to vector<8x16x128xf32>
    %84 = vector.extract_strided_slice %73 {offsets = [0, 8, 0], sizes = [8, 1, 128], strides = [1, 1, 1]} : vector<8x16x128xf32> to vector<8x1x128xf32>
    %85 = vector.shape_cast %84 : vector<8x1x128xf32> to vector<8x128xf32>
    %c0_39 = arith.constant 0 : index
    %c0_40 = arith.constant 0 : index
    %86 = vector.load %arg5[%c0_39, %c0_40] : memref<128x128xbf16, #tpu.memory_space<vmem>>, vector<128x128xbf16>
    %87 = arith.truncf %85 : vector<8x128xf32> to vector<8x128xbf16>
    %cst_41 = arith.constant dense<0.000000e+00> : vector<8x128xf32>
    %88 = tpu.matmul %87, %86, %cst_41 {dimension_numbers = #tpu.dot_dimension_numbers<[1], [0], [0], [1], [0, 0, 1, 1], [], []>} : vector<8x128xbf16>, vector<128x128xbf16>, vector<8x128xf32> -> vector<8x128xf32>
    %c6 = arith.constant 6 : index
    %c0_42 = arith.constant 0 : index
    %89 = vector.load %arg4[%c6, %c0_42] : memref<16x128xf32, #tpu.memory_space<vmem>>, vector<1x128xf32>
    %90 = vector.broadcast %89 : vector<1x128xf32> to vector<8x128xf32>
    %91 = arith.addf %88, %90 : vector<8x128xf32>
    %92 = tpu.iota {dimensions = array<i32: 1>} : vector<1x16xi32>
    %c8_i32 = arith.constant 8 : i32
    %93 = vector.broadcast %c8_i32 : i32 to vector<1x16xi32>
    %94 = arith.cmpi sle, %92, %93 : vector<1x16xi32>
    %95 = vector.extract_strided_slice %91 {offsets = [0, 0], sizes = [8, 64], strides = [1, 1]} : vector<8x128xf32> to vector<8x64xf32>
    %96 = vector.extract_strided_slice %82 {offsets = [0, 0, 0], sizes = [8, 16, 64], strides = [1, 1, 1]} : vector<8x16x128xf32> to vector<8x16x64xf32>
    %97 = vector.extract_strided_slice %83 {offsets = [0, 0, 0], sizes = [8, 16, 64], strides = [1, 1, 1]} : vector<8x16x128xf32> to vector<8x16x64xf32>
    %98 = vector.shape_cast %95 : vector<8x64xf32> to vector<8x1x64xf32>
    %99 = vector.broadcast %98 : vector<8x1x64xf32> to vector<8x16x64xf32>
    %100 = arith.mulf %99, %96 : vector<8x16x64xf32>
    %cst_43 = arith.constant dense<0.000000e+00> : vector<8x16xf32>
    %101 = vector.multi_reduction <add>, %100, %cst_43 [2] : vector<8x16x64xf32> to vector<8x16xf32>
    %cst_44 = arith.constant 1.250000e-01 : f32
    %102 = vector.broadcast %cst_44 : f32 to vector<8x16xf32>
    %103 = arith.mulf %101, %102 : vector<8x16xf32>
    %cst_45 = arith.constant -1.000000e+30 : f32
    %104 = vector.shape_cast %94 : vector<1x16xi1> to vector<1x16xi1>
    %105 = vector.broadcast %104 : vector<1x16xi1> to vector<8x16xi1>
    %106 = vector.broadcast %cst_45 : f32 to vector<8x16xf32>
    %107 = arith.select %105, %103, %106 : vector<8x16xi1>, vector<8x16xf32>
    %cst_46 = arith.constant dense<0xFF800000> : vector<8xf32>
    %108 = vector.multi_reduction <maximumf>, %107, %cst_46 [1] : vector<8x16xf32> to vector<8xf32>
    %109 = vector.shape_cast %108 : vector<8xf32> to vector<8x1xf32>
    %110 = vector.broadcast %109 : vector<8x1xf32> to vector<8x16xf32>
    %111 = arith.subf %107, %110 : vector<8x16xf32>
    %112 = math.exp %111 : vector<8x16xf32>
    %cst_47 = arith.constant dense<0.000000e+00> : vector<8xf32>
    %113 = vector.multi_reduction <add>, %112, %cst_47 [1] : vector<8x16xf32> to vector<8xf32>
    %114 = vector.shape_cast %113 : vector<8xf32> to vector<8x1xf32>
    %115 = vector.broadcast %114 : vector<8x1xf32> to vector<8x16xf32>
    %116 = arith.divf %112, %115 : vector<8x16xf32>
    %117 = vector.shape_cast %116 : vector<8x16xf32> to vector<8x16x1xf32>
    %118 = vector.broadcast %117 : vector<8x16x1xf32> to vector<8x16x64xf32>
    %119 = arith.mulf %118, %97 : vector<8x16x64xf32>
    %cst_48 = arith.constant dense<0.000000e+00> : vector<8x64xf32>
    %120 = vector.multi_reduction <add>, %119, %cst_48 [1] : vector<8x16x64xf32> to vector<8x64xf32>
    %121 = vector.extract_strided_slice %91 {offsets = [0, 64], sizes = [8, 64], strides = [1, 1]} : vector<8x128xf32> to vector<8x64xf32>
    %122 = vector.extract_strided_slice %82 {offsets = [0, 0, 64], sizes = [8, 16, 64], strides = [1, 1, 1]} : vector<8x16x128xf32> to vector<8x16x64xf32>
    %123 = vector.extract_strided_slice %83 {offsets = [0, 0, 64], sizes = [8, 16, 64], strides = [1, 1, 1]} : vector<8x16x128xf32> to vector<8x16x64xf32>
    %124 = vector.shape_cast %121 : vector<8x64xf32> to vector<8x1x64xf32>
    %125 = vector.broadcast %124 : vector<8x1x64xf32> to vector<8x16x64xf32>
    %126 = arith.mulf %125, %122 : vector<8x16x64xf32>
    %cst_49 = arith.constant dense<0.000000e+00> : vector<8x16xf32>
    %127 = vector.multi_reduction <add>, %126, %cst_49 [2] : vector<8x16x64xf32> to vector<8x16xf32>
    %cst_50 = arith.constant 1.250000e-01 : f32
    %128 = vector.broadcast %cst_50 : f32 to vector<8x16xf32>
    %129 = arith.mulf %127, %128 : vector<8x16xf32>
    %cst_51 = arith.constant -1.000000e+30 : f32
    %130 = vector.shape_cast %94 : vector<1x16xi1> to vector<1x16xi1>
    %131 = vector.broadcast %130 : vector<1x16xi1> to vector<8x16xi1>
    %132 = vector.broadcast %cst_51 : f32 to vector<8x16xf32>
    %133 = arith.select %131, %129, %132 : vector<8x16xi1>, vector<8x16xf32>
    %cst_52 = arith.constant dense<0xFF800000> : vector<8xf32>
    %134 = vector.multi_reduction <maximumf>, %133, %cst_52 [1] : vector<8x16xf32> to vector<8xf32>
    %135 = vector.shape_cast %134 : vector<8xf32> to vector<8x1xf32>
    %136 = vector.broadcast %135 : vector<8x1xf32> to vector<8x16xf32>
    %137 = arith.subf %133, %136 : vector<8x16xf32>
    %138 = math.exp %137 : vector<8x16xf32>
    %cst_53 = arith.constant dense<0.000000e+00> : vector<8xf32>
    %139 = vector.multi_reduction <add>, %138, %cst_53 [1] : vector<8x16xf32> to vector<8xf32>
    %140 = vector.shape_cast %139 : vector<8xf32> to vector<8x1xf32>
    %141 = vector.broadcast %140 : vector<8x1xf32> to vector<8x16xf32>
    %142 = arith.divf %138, %141 : vector<8x16xf32>
    %143 = vector.shape_cast %142 : vector<8x16xf32> to vector<8x16x1xf32>
    %144 = vector.broadcast %143 : vector<8x16x1xf32> to vector<8x16x64xf32>
    %145 = arith.mulf %144, %123 : vector<8x16x64xf32>
    %cst_54 = arith.constant dense<0.000000e+00> : vector<8x64xf32>
    %146 = vector.multi_reduction <add>, %145, %cst_54 [1] : vector<8x16x64xf32> to vector<8x64xf32>
    %147 = tpu.concatenate %120, %146 in 1 : vector<8x64xf32>, vector<8x64xf32> -> vector<8x128xf32>
    %148 = vector.extract_strided_slice %47 {offsets = [0, 8, 0], sizes = [8, 1, 128], strides = [1, 1, 1]} : vector<8x16x128xf32> to vector<8x1x128xf32>
    %149 = vector.shape_cast %148 : vector<8x1x128xf32> to vector<8x128xf32>
    %c0_55 = arith.constant 0 : index
    %c0_56 = arith.constant 0 : index
    %150 = vector.load %arg8[%c0_55, %c0_56] : memref<128x128xbf16, #tpu.memory_space<vmem>>, vector<128x128xbf16>
    %151 = arith.truncf %147 : vector<8x128xf32> to vector<8x128xbf16>
    %cst_57 = arith.constant dense<0.000000e+00> : vector<8x128xf32>
    %152 = tpu.matmul %151, %150, %cst_57 {dimension_numbers = #tpu.dot_dimension_numbers<[1], [0], [0], [1], [0, 0, 1, 1], [], []>} : vector<8x128xbf16>, vector<128x128xbf16>, vector<8x128xf32> -> vector<8x128xf32>
    %153 = arith.addf %149, %152 : vector<8x128xf32>
    %c7 = arith.constant 7 : index
    %c0_58 = arith.constant 0 : index
    %154 = vector.load %arg4[%c7, %c0_58] : memref<16x128xf32, #tpu.memory_space<vmem>>, vector<1x128xf32>
    %155 = vector.broadcast %154 : vector<1x128xf32> to vector<8x128xf32>
    %156 = arith.addf %153, %155 : vector<8x128xf32>
    %c8_59 = arith.constant 8 : index
    %c0_60 = arith.constant 0 : index
    %157 = vector.load %arg4[%c8_59, %c0_60] : memref<16x128xf32, #tpu.memory_space<vmem>>, vector<1x128xf32>
    %c9_61 = arith.constant 9 : index
    %c0_62 = arith.constant 0 : index
    %158 = vector.load %arg4[%c9_61, %c0_62] : memref<16x128xf32, #tpu.memory_space<vmem>>, vector<1x128xf32>
    %cst_63 = arith.constant dense<0.000000e+00> : vector<8xf32>
    %159 = vector.multi_reduction <add>, %156, %cst_63 [1] : vector<8x128xf32> to vector<8xf32>
    %160 = vector.shape_cast %159 : vector<8xf32> to vector<8x1xf32>
    %cst_64 = arith.constant 1.280000e+02 : f32
    %161 = vector.broadcast %cst_64 : f32 to vector<8x1xf32>
    %162 = arith.divf %160, %161 : vector<8x1xf32>
    %163 = vector.broadcast %162 : vector<8x1xf32> to vector<8x128xf32>
    %164 = arith.subf %156, %163 : vector<8x128xf32>
    %165 = arith.mulf %164, %164 : vector<8x128xf32>
    %cst_65 = arith.constant dense<0.000000e+00> : vector<8xf32>
    %166 = vector.multi_reduction <add>, %165, %cst_65 [1] : vector<8x128xf32> to vector<8xf32>
    %167 = vector.shape_cast %166 : vector<8xf32> to vector<8x1xf32>
    %cst_66 = arith.constant 1.280000e+02 : f32
    %168 = vector.broadcast %cst_66 : f32 to vector<8x1xf32>
    %169 = arith.divf %167, %168 : vector<8x1xf32>
    %170 = vector.broadcast %162 : vector<8x1xf32> to vector<8x128xf32>
    %171 = arith.subf %156, %170 : vector<8x128xf32>
    %cst_67 = arith.constant 9.99999974E-6 : f32
    %172 = vector.broadcast %cst_67 : f32 to vector<8x1xf32>
    %173 = arith.addf %169, %172 : vector<8x1xf32>
    %174 = math.rsqrt %173 : vector<8x1xf32>
    %175 = vector.broadcast %174 : vector<8x1xf32> to vector<8x128xf32>
    %176 = arith.mulf %171, %175 : vector<8x128xf32>
    %177 = vector.broadcast %157 : vector<1x128xf32> to vector<8x128xf32>
    %178 = arith.mulf %176, %177 : vector<8x128xf32>
    %179 = vector.broadcast %158 : vector<1x128xf32> to vector<8x128xf32>
    %180 = arith.addf %178, %179 : vector<8x128xf32>
    %c0_68 = arith.constant 0 : index
    %c0_69 = arith.constant 0 : index
    %181 = vector.load %arg9[%c0_68, %c0_69] : memref<128x256xbf16, #tpu.memory_space<vmem>>, vector<128x256xbf16>
    %182 = arith.truncf %180 : vector<8x128xf32> to vector<8x128xbf16>
    %cst_70 = arith.constant dense<0.000000e+00> : vector<8x256xf32>
    %183 = tpu.matmul %182, %181, %cst_70 {dimension_numbers = #tpu.dot_dimension_numbers<[1], [0], [0], [1], [0, 0, 1, 1], [], []>} : vector<8x128xbf16>, vector<128x256xbf16>, vector<8x256xf32> -> vector<8x256xf32>
    %c0_71 = arith.constant 0 : index
    %c0_72 = arith.constant 0 : index
    %184 = vector.load %arg10[%c0_71, %c0_72] : memref<1x256xf32, #tpu.memory_space<vmem>>, vector<1x256xf32>
    %185 = vector.broadcast %184 : vector<1x256xf32> to vector<8x256xf32>
    %186 = arith.addf %183, %185 : vector<8x256xf32>
    %cst_73 = arith.constant 5.000000e-01 : f32
    %187 = vector.broadcast %cst_73 : f32 to vector<8x256xf32>
    %188 = arith.mulf %187, %186 : vector<8x256xf32>
    %cst_74 = arith.constant 0.707106769 : f32
    %189 = vector.broadcast %cst_74 : f32 to vector<8x256xf32>
    %190 = arith.mulf %186, %189 : vector<8x256xf32>
    %cst_75 = arith.constant 0.000000e+00 : f32
    %191 = vector.broadcast %cst_75 : f32 to vector<8x256xf32>
    %192 = arith.cmpf oge, %190, %191 : vector<8x256xf32>
    %cst_76 = arith.constant 1.000000e+00 : f32
    %cst_77 = arith.constant -1.000000e+00 : f32
    %193 = vector.broadcast %cst_76 : f32 to vector<8x256xf32>
    %194 = vector.broadcast %cst_77 : f32 to vector<8x256xf32>
    %195 = arith.select %192, %193, %194 : vector<8x256xi1>, vector<8x256xf32>
    %196 = math.absf %190 : vector<8x256xf32>
    %cst_78 = arith.constant 0.327591091 : f32
    %197 = vector.broadcast %cst_78 : f32 to vector<8x256xf32>
    %198 = arith.mulf %197, %196 : vector<8x256xf32>
    %cst_79 = arith.constant 1.000000e+00 : f32
    %199 = vector.broadcast %cst_79 : f32 to vector<8x256xf32>
    %200 = arith.addf %199, %198 : vector<8x256xf32>
    %cst_80 = arith.constant 1.000000e+00 : f32
    %201 = vector.broadcast %cst_80 : f32 to vector<8x256xf32>
    %202 = arith.divf %201, %200 : vector<8x256xf32>
    %cst_81 = arith.constant 1.06140542 : f32
    %203 = vector.broadcast %cst_81 : f32 to vector<8x256xf32>
    %204 = arith.mulf %203, %202 : vector<8x256xf32>
    %cst_82 = arith.constant -1.45315206 : f32
    %205 = vector.broadcast %cst_82 : f32 to vector<8x256xf32>
    %206 = arith.addf %204, %205 : vector<8x256xf32>
    %207 = arith.mulf %206, %202 : vector<8x256xf32>
    %cst_83 = arith.constant 1.42141378 : f32
    %208 = vector.broadcast %cst_83 : f32 to vector<8x256xf32>
    %209 = arith.addf %207, %208 : vector<8x256xf32>
    %210 = arith.mulf %209, %202 : vector<8x256xf32>
    %cst_84 = arith.constant -0.284496725 : f32
    %211 = vector.broadcast %cst_84 : f32 to vector<8x256xf32>
    %212 = arith.addf %210, %211 : vector<8x256xf32>
    %213 = arith.mulf %212, %202 : vector<8x256xf32>
    %cst_85 = arith.constant 0.254829586 : f32
    %214 = vector.broadcast %cst_85 : f32 to vector<8x256xf32>
    %215 = arith.addf %213, %214 : vector<8x256xf32>
    %216 = arith.mulf %215, %202 : vector<8x256xf32>
    %cst_86 = arith.constant 0.000000e+00 : f32
    %217 = vector.broadcast %cst_86 : f32 to vector<8x256xf32>
    %218 = arith.subf %217, %196 : vector<8x256xf32>
    %219 = arith.mulf %218, %196 : vector<8x256xf32>
    %220 = math.exp %219 : vector<8x256xf32>
    %221 = arith.mulf %216, %220 : vector<8x256xf32>
    %cst_87 = arith.constant 1.000000e+00 : f32
    %222 = vector.broadcast %cst_87 : f32 to vector<8x256xf32>
    %223 = arith.subf %222, %221 : vector<8x256xf32>
    %224 = arith.mulf %195, %223 : vector<8x256xf32>
    %cst_88 = arith.constant 1.000000e+00 : f32
    %225 = vector.broadcast %cst_88 : f32 to vector<8x256xf32>
    %226 = arith.addf %225, %224 : vector<8x256xf32>
    %227 = arith.mulf %188, %226 : vector<8x256xf32>
    %c0_89 = arith.constant 0 : index
    %c0_90 = arith.constant 0 : index
    %228 = vector.load %arg11[%c0_89, %c0_90] : memref<256x128xbf16, #tpu.memory_space<vmem>>, vector<256x128xbf16>
    %229 = arith.truncf %227 : vector<8x256xf32> to vector<8x256xbf16>
    %cst_91 = arith.constant dense<0.000000e+00> : vector<8x128xf32>
    %230 = tpu.matmul %229, %228, %cst_91 {dimension_numbers = #tpu.dot_dimension_numbers<[1], [0], [0], [1], [0, 0, 1, 1], [], []>} : vector<8x256xbf16>, vector<256x128xbf16>, vector<8x128xf32> -> vector<8x128xf32>
    %231 = arith.addf %156, %230 : vector<8x128xf32>
    %c10 = arith.constant 10 : index
    %c0_92 = arith.constant 0 : index
    %232 = vector.load %arg4[%c10, %c0_92] : memref<16x128xf32, #tpu.memory_space<vmem>>, vector<1x128xf32>
    %233 = vector.broadcast %232 : vector<1x128xf32> to vector<8x128xf32>
    %234 = arith.addf %231, %233 : vector<8x128xf32>
    %c11 = arith.constant 11 : index
    %c0_93 = arith.constant 0 : index
    %235 = vector.load %arg4[%c11, %c0_93] : memref<16x128xf32, #tpu.memory_space<vmem>>, vector<1x128xf32>
    %c12 = arith.constant 12 : index
    %c0_94 = arith.constant 0 : index
    %236 = vector.load %arg4[%c12, %c0_94] : memref<16x128xf32, #tpu.memory_space<vmem>>, vector<1x128xf32>
    %cst_95 = arith.constant dense<0.000000e+00> : vector<8xf32>
    %237 = vector.multi_reduction <add>, %234, %cst_95 [1] : vector<8x128xf32> to vector<8xf32>
    %238 = vector.shape_cast %237 : vector<8xf32> to vector<8x1xf32>
    %cst_96 = arith.constant 1.280000e+02 : f32
    %239 = vector.broadcast %cst_96 : f32 to vector<8x1xf32>
    %240 = arith.divf %238, %239 : vector<8x1xf32>
    %241 = vector.broadcast %240 : vector<8x1xf32> to vector<8x128xf32>
    %242 = arith.subf %234, %241 : vector<8x128xf32>
    %243 = arith.mulf %242, %242 : vector<8x128xf32>
    %cst_97 = arith.constant dense<0.000000e+00> : vector<8xf32>
    %244 = vector.multi_reduction <add>, %243, %cst_97 [1] : vector<8x128xf32> to vector<8xf32>
    %245 = vector.shape_cast %244 : vector<8xf32> to vector<8x1xf32>
    %cst_98 = arith.constant 1.280000e+02 : f32
    %246 = vector.broadcast %cst_98 : f32 to vector<8x1xf32>
    %247 = arith.divf %245, %246 : vector<8x1xf32>
    %248 = vector.broadcast %240 : vector<8x1xf32> to vector<8x128xf32>
    %249 = arith.subf %234, %248 : vector<8x128xf32>
    %cst_99 = arith.constant 9.99999974E-6 : f32
    %250 = vector.broadcast %cst_99 : f32 to vector<8x1xf32>
    %251 = arith.addf %247, %250 : vector<8x1xf32>
    %252 = math.rsqrt %251 : vector<8x1xf32>
    %253 = vector.broadcast %252 : vector<8x1xf32> to vector<8x128xf32>
    %254 = arith.mulf %249, %253 : vector<8x128xf32>
    %255 = vector.broadcast %235 : vector<1x128xf32> to vector<8x128xf32>
    %256 = arith.mulf %254, %255 : vector<8x128xf32>
    %257 = vector.broadcast %236 : vector<1x128xf32> to vector<8x128xf32>
    %258 = arith.addf %256, %257 : vector<8x128xf32>
    %c0_100 = arith.constant 0 : index
    %c0_101 = arith.constant 0 : index
    %c0_102 = arith.constant 0 : index
    %259 = vector.load %arg12[%c0_100, %c0_101, %c0_102] : memref<1x8x128xf32, #tpu.memory_space<vmem>>, vector<1x8x128xf32>
    %260 = vector.shape_cast %259 : vector<1x8x128xf32> to vector<8x128xf32>
    %261 = vector.shape_cast %258 : vector<8x128xf32> to vector<1x8x128xf32>
    tpu.vector_store %arg12[%c0_100, %c0_101, %c0_102], %261 {strides = array<i32>} : memref<1x8x128xf32, #tpu.memory_space<vmem>>, vector<1x8x128xf32>,
    return
  }
  func.func @transform_0(%arg0: i32) -> (i32, i32, i32) {
    %c0_i32 = arith.constant 0 : i32
    %c0_i32_0 = arith.constant 0 : i32
    %c0_i32_1 = arith.constant 0 : i32
    return %arg0, %c0_i32, %c0_i32_0 : i32, i32, i32
  }
  func.func @transform_1(%arg0: i32) -> (i32, i32) {
    %c0_i32 = arith.constant 0 : i32
    %c0_i32_0 = arith.constant 0 : i32
    %c0_i32_1 = arith.constant 0 : i32
    return %c0_i32, %c0_i32_0 : i32, i32
  }
  func.func @transform_2(%arg0: i32) -> (i32, i32) {
    %c0_i32 = arith.constant 0 : i32
    %c0_i32_0 = arith.constant 0 : i32
    %c0_i32_1 = arith.constant 0 : i32
    return %c0_i32, %c0_i32_0 : i32, i32
  }
  func.func @transform_3(%arg0: i32) -> (i32, i32) {
    %c0_i32 = arith.constant 0 : i32
    %c0_i32_0 = arith.constant 0 : i32
    %c0_i32_1 = arith.constant 0 : i32
    return %c0_i32, %c0_i32_0 : i32, i32
  }
  func.func @transform_4(%arg0: i32) -> (i32, i32) {
    %c0_i32 = arith.constant 0 : i32
    %c0_i32_0 = arith.constant 0 : i32
    %c0_i32_1 = arith.constant 0 : i32
    return %c0_i32, %c0_i32_0 : i32, i32
  }
  func.func @transform_5(%arg0: i32) -> (i32, i32) {
    %c0_i32 = arith.constant 0 : i32
    %c0_i32_0 = arith.constant 0 : i32
    %c0_i32_1 = arith.constant 0 : i32
    return %c0_i32, %c0_i32_0 : i32, i32
  }
  func.func @transform_6(%arg0: i32) -> (i32, i32) {
    %c0_i32 = arith.constant 0 : i32
    %c0_i32_0 = arith.constant 0 : i32
    %c0_i32_1 = arith.constant 0 : i32
    return %c0_i32, %c0_i32_0 : i32, i32
  }
  func.func @transform_7(%arg0: i32) -> (i32, i32) {
    %c0_i32 = arith.constant 0 : i32
    %c0_i32_0 = arith.constant 0 : i32
    %c0_i32_1 = arith.constant 0 : i32
    return %c0_i32, %c0_i32_0 : i32, i32
  }
  func.func @transform_8(%arg0: i32) -> (i32, i32) {
    %c0_i32 = arith.constant 0 : i32
    %c0_i32_0 = arith.constant 0 : i32
    %c0_i32_1 = arith.constant 0 : i32
    return %c0_i32, %c0_i32_0 : i32, i32
  }
  func.func @transform_9(%arg0: i32) -> (i32, i32) {
    %c0_i32 = arith.constant 0 : i32
    %c0_i32_0 = arith.constant 0 : i32
    %c0_i32_1 = arith.constant 0 : i32
    return %c0_i32, %c0_i32_0 : i32, i32
  }
  func.func @transform_10(%arg0: i32) -> (i32, i32) {
    %c0_i32 = arith.constant 0 : i32
    %c0_i32_0 = arith.constant 0 : i32
    %c0_i32_1 = arith.constant 0 : i32
    return %c0_i32, %c0_i32_0 : i32, i32
  }
  func.func @transform_11(%arg0: i32) -> (i32, i32, i32) {
    %c0_i32 = arith.constant 0 : i32
    %c0_i32_0 = arith.constant 0 : i32
    %c0_i32_1 = arith.constant 0 : i32
    return %arg0, %c0_i32, %c0_i32_0 : i32, i32, i32
  }
}

</mosaic_0001>

<bundles_post_ra>
// kernel: tpu_custom_call.1
= control target key start
LH: loop header
LB: loop body
LE: loop exit
PB: predicated region body
PF: predicated region fallthrough
CT: control target
= control target key end

     0   :  { %s6004_s0 = inlined_call_operand.hbm [shape: f32[32,8,128], index: 0, kind: input, shape index: {}]   ;;  %s6005_s1 = inlined_call_operand.hbm [shape: bf16[128,128], index: 1, kind: input, shape index: {}]   ;;  %s6006_s2 = inlined_call_operand.hbm [shape: f32[8,128], index: 2, kind: input, shape index: {}]   ;;  %s6007_s3 = inlined_call_operand.hbm [shape: f32[16,128], index: 3, kind: input, shape index: {}]   ;;  %s6008_s4 = inlined_call_operand.hbm [shape: bf16[128,128], index: 4, kind: input, shape index: {}]   ;;  %s6009_s5 = inlined_call_operand.hbm [shape: bf16[128,256], index: 5, kind: input, shape index: {}]   ;;  %s6010_s6 = inlined_call_operand.vmem [shape: f32[1,256], index: 6, kind: input, shape index: {}]   ;;  %s6011_s7 = inlined_call_operand.hbm [shape: bf16[128,128], index: 7, kind: input, shape index: {}]   ;;  %s6012_s8 = inlined_call_operand.hbm [shape: bf16[128,256], index: 8, kind: input, shape index: {}]   ;;  %s6013_s9 = inlined_call_operand.vmem [shape: f32[1,256], index: 9, kind: input, shape index: {}]   ;;  %s6014_s10 = inlined_call_operand.hbm [shape: bf16[256,128], index: 10, kind: input, shape index: {}]   ;;  %s6015_s11 = inlined_call_operand.hbm [shape: f32[4,8,128], index: 11, kind: output, shape index: {}]  }
   0x1   :  { %6022 = sst [smem:[#allocation25_spill]] %s6005_s1 }
   0x2   :  { %6023 = sst [smem:[#allocation26_spill]] %s6006_s2 }
   0x3   :  { %6024 = sst [smem:[#allocation27_spill]] %s6007_s3 }
   0x4   :  { %6025 = sst [smem:[#allocation28_spill]] %s6008_s4 }
   0x5   :  { %6026 = sst [smem:[#allocation29_spill]] %s6009_s5 }
   0x6   :  { %6027 = sst [smem:[#allocation30_spill]] %s6011_s7 }
   0x7   :  { %16 = vsyncpa [#allocation4], 0 }
   0x8   :  { %18 = vsyncpa [#allocation4 + $0x1], 0 }
   0x9   :  { %19 = vsyncpa [#allocation7], 0 }
   0xa   :  { %20 = vsyncpa [#allocation10], 0 }
   0xb   :  { %21 = vsyncpa [#allocation13], 0 }
   0xc   :  { %22 = vsyncpa [#allocation16], 0 }
   0xd   :  { %23 = vsyncpa [#allocation5], 0 }
   0xe   :  { %25 = vsyncpa [#allocation5 + $0x1], 0  ;;  %s4648_s17 = smov 0   ;;  %s4650_s18 = smov 0  }
   0xf   :  { %s4652_s19 = smov 0   ;;  %s4654_s20 = smov 0  }
  0x10 LB: > { %s6028_s1 = sld [smem:[#allocation25_spill]]  ;;  %s4672_s24 = sadd.s32 4294967295, %s4570_s20   ;;  %s4570_s20 = sphi %s4654_s20, %s6058_s20   ;;  %s4566_s19 = sphi %s4652_s19, %s6057_s19   ;;  %s4562_s18 = sphi %s4650_s18, %s6056_s18   ;;  %s4558_s17 = sphi %s4648_s17, %s6055_s17  }
  0x11   : > { %p3568_p0 = scmp.ge.s32.totalorder %s4570_s20, 1  ;;  %p52_p1 = scmp.eq.s32.totalorder %s4672_s24, 0 }
  0x12   : > { %p298_p2 = scmp.lt.s32.totalorder %s4570_s20, 5  ;;  %s4572_s26 = smov [#allocation6]  }
  0x13   : > { %s311_s27 = sshll.u32 %s4572_s26, 4  ;;  %s6030_s3 = sld [smem:[#allocation27_spill]]  ;;  %s312_s27 = int_to_ptr.vmem [resolvable:$true] %s311_s27 }
  0x14   : > { %p4677_p3 = pnand %p3568_p0, %p298_p2  ;;  %s4573_s13 = smov [#allocation9]  }
  0x15   : > { %s337_s14 = sshll.u32 %s4573_s13, 4  ;;  %s6016_s15 = smov 64   ;;  %s338_s14 = int_to_ptr.vmem [resolvable:$true] %s337_s14 }
  0x16   : > { %s309_s23 = sshll.u32 %s6028_s1, 4  ;;  %p3993_p4 = pneg %p4677_p3  ;;  %s310_s23 = int_to_ptr.hbm [resolvable:$true] %s309_s23 }
  0x17   : > { %s6018_s16 = smov 4   ;;  %s6020_s21 = smov 128  }
  0x18   : > { %p4688_p5 = pnand %p3993_p4, %p52_p1  ;;  %s6021_s22 = smov 8  }
  0x19   : > { %s335_s30 = sshll.u32 %s6030_s3, 4  ;;  %s6032_s5 = sld [smem:[#allocation29_spill]]  ;;  %s336_s30 = int_to_ptr.hbm [resolvable:$true] %s335_s30 }
  0x1a   : > { %3996 = dma.hbm_to_vmem [thread:$0]  (!%p4688_p5), %s310_s23, 1024, %s312_s27, [#allocation7], %s6016_s15, %s6016_s15, %s6018_s16  }
  0x1b   : > { %4002 = dma.hbm_to_vmem [thread:$0]  (!%p4688_p5), %s336_s30, 256, %s338_s14, [#allocation10], %s6020_s21, %s6020_s21, %s6021_s22  }
  0x1c   : > { %s4578_s13 = smov [#allocation12]   ;;  %s394_s27 = sshll.u32 %s6012_s8, 4  ;;  %s395_s27 = int_to_ptr.hbm [resolvable:$true] %s394_s27 }
  0x1d   : > { %s365_s1 = sshll.u32 %s4578_s13, 4  ;;  %s4579_s30 = smov [#allocation15]   ;;  %s366_s1 = int_to_ptr.vmem [resolvable:$true] %s365_s1 }
  0x1e   : > { %s396_s14 = sshll.u32 %s4579_s30, 4  ;;  %s6033_s2 = sld [smem:[#allocation26_spill]]  ;;  %s397_s14 = int_to_ptr.vmem [resolvable:$true] %s396_s14 }
  0x1f   : > { %s363_s29 = sshll.u32 %s6032_s5, 4  ;;  %s6034_s4 = sld [smem:[#allocation28_spill]]  ;;  %s364_s29 = int_to_ptr.hbm [resolvable:$true] %s363_s29 }
  0x20   : > { %4008 = dma.hbm_to_vmem [thread:$0]  (!%p4688_p5), %s364_s29, 2048, %s366_s1, [#allocation13], %s6020_s21, %s6020_s21, %s6021_s22  }
  0x21   : > { %4014 = dma.hbm_to_vmem [thread:$0]  (!%p4688_p5), %s395_s27, 2048, %s397_s14, [#allocation16], %s6020_s21, %s6020_s21, %s6021_s22  }
  0x22   : > { %s4580_s1 = smov [#allocation8]   ;;  %s4581_s15 = smov [#allocation11]  }
  0x23   : > { %s326_s29 = sshll.u32 %s4580_s1, 4  ;;  %s351_s30 = sshll.u32 %s4581_s15, 4  ;;  %s327_s29 = int_to_ptr.vmem [resolvable:$true] %s326_s29  ;;  %s352_s30 = int_to_ptr.vmem [resolvable:$true] %s351_s30 }
  0x24   : > { %s324_s28 = sshll.u32 %s6033_s2, 4  ;;  %s6035_s7 = sld [smem:[#allocation30_spill]]  ;;  %s325_s28 = int_to_ptr.hbm [resolvable:$true] %s324_s28 }
  0x25   : > { %s349_s23 = sshll.u32 %s6034_s4, 4  ;;  %s6036_s14 = smov 4   ;;  %s350_s23 = int_to_ptr.hbm [resolvable:$true] %s349_s23 }
  0x26   : > { %3999 = dma.hbm_to_vmem [thread:$0]  (!%p4688_p5), %s325_s28, 128, %s327_s29, [#allocation7]  }
  0x27   : > { %s6037_s3 = smov 64   ;;  %s411_s1 = sshll.u32 %s6014_s10, 4  ;;  %s412_s1 = int_to_ptr.hbm [resolvable:$true] %s411_s1 }
  0x28   : > { %4005 = dma.hbm_to_vmem [thread:$0]  (!%p4688_p5), %s350_s23, 1024, %s352_s30, [#allocation10], %s6037_s3, %s6037_s3, %s6036_s14  }
  0x29   : > { %s4582_s29 = smov [#allocation14]   ;;  %s4583_s23 = smov [#allocation17]  }
  0x2a   : > { %s380_s27 = sshll.u32 %s6035_s7, 4  ;;  %s382_s16 = sshll.u32 %s4582_s29, 4  ;;  %s381_s27 = int_to_ptr.hbm [resolvable:$true] %s380_s27  ;;  %s383_s16 = int_to_ptr.vmem [resolvable:$true] %s382_s16 }
  0x2b   : > { %4011 = dma.hbm_to_vmem [thread:$0]  (!%p4688_p5), %s381_s27, 1024, %s383_s16, [#allocation13], %s6037_s3, %s6037_s3, %s6036_s14  }
  0x2c   : > { %s413_s15 = sshll.u32 %s4583_s23, 4  ;;  %s3567_s30 = sadd.s32 4294967294, %s4570_s20   ;;  %s414_s15 = int_to_ptr.vmem [resolvable:$true] %s413_s15 }
  0x2d   : > { %4017 = dma.hbm_to_vmem [thread:$0]  (!%p4688_p5), %s412_s1, 2048, %s414_s15, [#allocation16], %s6037_s3, %s6037_s3, %s6036_s14  }
  0x2e   : > { %s4749_s26 = sadd.s32 1, %s4570_s20   ;;  %s38_s28 = sadd.s32 1, %s4566_s19 }
  0x2f   : > { %s35_s13 = ssub.s32 %s4570_s20, %s4749_s26  ;;  %p45_p7 = scmp.ne.s32.totalorder %s4566_s19, %s4562_s18 }
  0x30   : > { %p36_p6 = scmp.eq.s32.totalorder %s35_s13, 0  ;;  %p46_p8 = scmp.eq.s32.totalorder %s4570_s20, 0 }
  0x31   : > { %p51_p9 = scmp.ne.s32.totalorder %s4562_s18, %s4558_s17  ;;  %p285_p12 = scmp.eq.s32.totalorder %s4672_s24, 3 }
  0x32   : > { %s4760_s27 = scalar_select %p36_p6, %s4566_s19, %s38_s28  }
  0x33   : > { %p4762_p10 = por %p46_p8, %p45_p7  ;;  %p4768_p11 = por %p52_p1, %p51_p9 }
  0x34   : > { %p291_p13 = scmp.eq.s32.totalorder %s3567_s30, 3  ;;  %p4034_p0 = scmp.lt.s32.totalorder %s4570_s20, 4 }
  0x35   : > { %s427_s3 = sand.u32 1, %s4566_s19   ;;  %p4775_p2 = por %p285_p12, %p45_p7 }
  0x36   : > { %p4779_p4 = por %p291_p13, %p51_p9  ;;  %s3578_s16 = sshll.u32 %s427_s3, 6 }
  0x37   : > { %s3884_s23 = sshll.u32 %s4570_s20, 6  ;;  %s431_s21 = scalar_lea.vmem [#allocation3], %s3578_s16 }
  0x38   : > { %s436_s28 = scalar_lea.hbm %s6004_s0, %s3884_s23  ;;  %s439_s22 = sshll.u32 %s431_s21, 4  ;;  %s440_s22 = int_to_ptr.vmem [resolvable:$true] %s439_s22 }
  0x39   : > { %s437_s2 = sshll.u32 %s436_s28, 4  ;;  %p4789_p5 = pnand %p4034_p0, %p4762_p10  ;;  %s438_s2 = int_to_ptr.hbm [resolvable:$true] %s437_s2 }
  0x3a   : > { %s428_s4 = scalar_lea.sflag [#allocation4], %s427_s3  ;;  %s4458_s5 = sshra.s32 %s438_s2, 4  ;;  %s4459_s5 = int_to_ptr.hbm [resolvable:$true] %s4458_s5 }
  0x3b   : > { %s4460_s7 = scalar_lea.hbm %s4459_s5, 64  ;;  %p4462_p7 = pneg %p4789_p5 }
  0x3c   : > { %p4461_p6 = scmp.ne.s32.totalorder %s4459_s5, %s4460_s7  ;;  %s4465_s23 = scalar_lea.hbm %s6004_s0, 256 }
  0x3d   : > { %p4466_p10 = scmp.lt.s32.totalorder %s4459_s5, %s6004_s0  ;;  %p4467_p12 = scmp.lt.s32.totalorder %s4465_s23, %s4460_s7 }
  0x3e   : > { %p4463_p8 = pnand %p4462_p7, %p4461_p6 }
  0x3f   : > { %p4468_p13 = por %p4467_p12, %p4466_p10 }
  0x40   : > { %p4464_p9 = pneg %p4463_p8 }
  0x42   : > { %p4469_p0 = pnand %p4468_p13, %p4464_p9 }
  0x44   : > { %4472 = shalt.err (!%p4469_p0)
}
  0x45   : > { %s6043_s3 = smov 8   ;;  %s6044_s13 = smov 128  }
  0x46   : > { %4021 = dma.hbm_to_vmem [thread:$0]  (!%p4789_p5), %s438_s2, 1024, %s440_s22, %s428_s4, %s6044_s13, %s6044_s13, %s6043_s3  }
  0x47   : > { %451 = sbr.rel (%p4677_p3) target bundleno = 3294 (0xcde), region = 64  ;;  %s4809_s28 = sand.u32 (!%p4677_p3), 1, %s4562_s18  }
  0x48   : > { %s3582_s5 = sshll.u32 (!%p4677_p3), %s4809_s28, 6  ;;  %s454_s7 = scalar_lea.sflag (!%p4677_p3), [#allocation4], %s4809_s28 }
  0x49   : > { %s4813_s16 = scalar_lea.vmem (!%p4677_p3), [#allocation3], %s3582_s5 }
  0x4c   : > { %4533 = dma.done.wait (%p4768_p11), %s454_s7, 1024  }
  0x4d   : > { %4535 = vsyncadd (%p4768_p11), %s454_s7, 4294966272 }
  0x4e   : > { %4537 = dma.done.wait (%p52_p1), [#allocation7], 1152  }
  0x4f   : > { %4539 = vsyncadd (%p52_p1), [#allocation7], 4294966144 }
  0x50   : > { %4541 = dma.done.wait (%p52_p1), [#allocation10], 1280  }
  0x51   : > { %4543 = vsyncadd (%p52_p1), [#allocation10], 4294966016 }
  0x52   : > { %4545 = dma.done.wait (%p52_p1), [#allocation13], 3072  }
  0x53   : > { %4547 = vsyncadd (%p52_p1), [#allocation13], 4294964224 }
  0x54   : > { %4549 = dma.done.wait (%p52_p1), [#allocation16], 4096  }
  0x55   : > { %4551 = vsyncadd (%p52_p1), [#allocation16], 4294963200  ;;  %v3892_v0 = vld [vmem:[#allocation6 + $0x38] sm:$0xff]  ;;  %v3891_v1 = vld [vmem:[#allocation6 + $0x30] sm:$0xff]  ;;  %v4584_v15 = vmov 0.0   ;;  %v4585_v39 = vmov 128.0  }
  0x56   : > { %616 = vmatpush.bf16.msra.mxu0 %v3892_v0  ;;  %v3890_v2 = vld [vmem:[#allocation6 + $0x28] sm:$0xff]  ;;  %v3889_v3 = vld [vmem:[#allocation6 + $0x20] sm:$0xff]  ;;  %v3888_v4 = vld [vmem:[#allocation6 + $0x18] sm:$0xff]  ;;  %671 = vst [vmem:[#allocation2 + $0x9] sm:$0x7f] %v4584_v15  ;;  %4132 = vrcp.f32 %v4585_v39  ;;  %s4586_s25 = smov 64  }
  0x57   : > { %v3887_v5 = vld [vmem:[#allocation6 + $0x10] sm:$0xff]  ;;  %v3886_v6 = vld [vmem:[#allocation6 + $0x8] sm:$0xff]  ;;  %v3885_v7 = vld [vmem:[#allocation6] sm:$0xff]  ;;  %672 = vst [vmem:[#allocation2 + $0x19] sm:$0x7f] %v4584_v15  ;;  %s3591_s30 = sshll.u32 %s4809_s28, 3 }
  0x58   : > { %v538_v8 = vld [vmem:[%s4813_s16] sm:$0xff]  ;;  %v539_v9 = vld [vmem:[%s4813_s16 + $0x8] sm:$0xff]  ;;  %v540_v11 = vld [vmem:[%s4813_s16 + $0x10] sm:$0xff]  ;;  %673 = vst [vmem:[#allocation2 + $0x29] sm:$0x7f] %v4584_v15  ;;  %s3881_s21 = sshll.u32 %s4672_s24, 3 }
  0x59   : > { %v562_v10 = vpack.c.bf16 %v539_v9, %v538_v8  ;;  %v541_v12 = vld [vmem:[%s4813_s16 + $0x18] sm:$0xff]  ;;  %v662_v14 = vld [vmem:[#allocation9 + $0x1] sm:$0x1]  ;;  %v542_v16 = vld [vmem:[%s4813_s16 + $0x20] sm:$0xff]  ;;  %674 = vst [vmem:[#allocation2 + $0x39] sm:$0x7f] %v4584_v15  ;;  %s3416_s12 = scalar_lea.hbm %s6015_s11, %s3881_s21 }
  0x5a   : > { %617 = vmatpush.bf16.msra.mxu0 %v3891_v1  ;;  %v563_v13 = vpack.c.bf16 %v541_v12, %v540_v11  ;;  %663 = vst [vmem:[#allocation2 + $0x8] sm:$0x1] %v662_v14  ;;  %v543_v17 = vld [vmem:[%s4813_s16 + $0x28] sm:$0xff]  ;;  %v544_v20 = vld [vmem:[%s4813_s16 + $0x30] sm:$0xff]  ;;  %v545_v21 = vld [vmem:[%s4813_s16 + $0x38] sm:$0xff]  ;;  %s536_s24 = scalar_lea.vmem [#allocation18], %s3591_s30 }
  0x5b   : > { %664 = vst [vmem:[#allocation2 + $0x18] sm:$0x1] %v662_v14  ;;  %v564_v18 = vpack.c.bf16 %v543_v17, %v542_v16  ;;  %v4841_v19 = vld [vmem:[#allocation9] ss:$0 sm:$0xff]  ;;  %v565_v22 = vpack.c.bf16 %v545_v21, %v544_v20  ;;  %v4845_v24 = vld [vmem:[#allocation8] sm:$0xff]  ;;  %s3418_s3 = sshll.u32 %s536_s24, 4  ;;  %s3419_s3 = int_to_ptr.vmem [resolvable:$true] %s3418_s3 }
  0x5c   : > { %665 = vst [vmem:[#allocation2 + $0x28] sm:$0x1] %v662_v14  ;;  %v4133_v40 = vpop.eup %4132  ;;  %s3420_s13 = sshll.u32 %s3416_s12, 4  ;;  %s3406_s5 = scalar_lea.sflag [#allocation5], %s4809_s28  ;;  %s3421_s13 = int_to_ptr.hbm [resolvable:$true] %s3420_s13 }
  0x5d   : > { %666 = vst [vmem:[#allocation2 + $0x38] sm:$0x1] %v662_v14  ;;  %v730_v41 = vmul.f32 128.0, %v4133_v40  ;;  %vm734_vm0 = vweird.f32 %v4133_v40  ;;  %s4502_s7 = sshra.s32 %s3421_s13, 4  ;;  %s4503_s7 = int_to_ptr.hbm [resolvable:$true] %s4502_s7 }
  0x5e   : > { %618 = vmatpush.bf16.msra.mxu0 %v3890_v2  ;;  %667 = vst [vmem:[#allocation2 + $0x48] sm:$0x1] %v662_v14  ;;  %s4504_s16 = scalar_lea.hbm %s4503_s7, 8  ;;  %p4509_p5 = scmp.lt.s32.totalorder %s4503_s7, %s6015_s11 }
  0x5f   : > { %668 = vst [vmem:[#allocation2 + $0x58] sm:$0x1] %v662_v14  ;;  %v731_v42 = vsub.f32 1.0, %v730_v41  ;;  %p4505_p1 = scmp.ne.s32.totalorder %s4503_s7, %s4504_s16 }
  0x60   : > { %669 = vst [vmem:[#allocation2 + $0x68] sm:$0x1] %v662_v14 }
  0x61   : > { %670 = vst [vmem:[#allocation2 + $0x78] sm:$0x1] %v662_v14  ;;  %v680_v29 = vld [vmem:[#allocation2 + $0x8] sm:$0xff]  ;;  %v732_v46 = vmul.f32 %v4133_v40, %v731_v42  ;;  %p4506_p3 = pnand %p4505_p1, %p4775_p2 }
  0x62   : > { %619 = vmatpush.bf16.msra.mxu0 %v3889_v3  ;;  %675 = vst [vmem:[#allocation2 + $0x49] sm:$0x7f] %v4584_v15  ;;  %v682_v33 = vld [vmem:[#allocation2 + $0x18] sm:$0xff] }
  0x63   : > { %676 = vst [vmem:[#allocation2 + $0x59] sm:$0x7f] %v4584_v15  ;;  %v684_v37 = vld [vmem:[#allocation2 + $0x28] sm:$0xff]  ;;  %v733_v47 = vadd.f32 %v4133_v40, %v732_v46  ;;  %p4507_p11 = pneg %p4506_p3 }
  0x64   : > { %677 = vst [vmem:[#allocation2 + $0x69] sm:$0x7f] %v4584_v15  ;;  %v686_v63 = vld [vmem:[#allocation2 + $0x38] sm:$0xff] }
  0x65   : > { %678 = vst [vmem:[#allocation2 + $0x79] sm:$0x7f] %v4584_v15  ;;  %v4866_v51 = vsel %vm734_vm0, %v4133_v40, %v733_v47 }
  0x66   : > { %620 = vmatpush.bf16.msra.mxu0 %v3888_v4 }
  0x6a   : > { %621 = vmatpush.bf16.msra.mxu0 %v3887_v5  ;;  %v4894_v12 = vld [vmem:[#allocation2 + $0x58] sm:$0xff] }
  0x6e   : > { %622 = vmatpush.bf16.msra.mxu0 %v3886_v6  ;;  %v688_v6 = vld [vmem:[#allocation2 + $0x48] sm:$0xff] }
  0x72   : > { %623 = vmatpush.bf16.msra.mxu0 %v3885_v7 }
  0x75   : > { %624 = vmatmul.bf16.vlgmr.msra.gmra.mxu0 %v562_v10 }
  0x85   : > { %629 = vmatmul.bf16.gmra.mxu0 %v563_v13 }
  0x95   : > { %634 = vmatmul.bf16.gmra.mxu0 %v564_v18 }
  0xa5   : > { %639 = vmatmul.bf16.gmra.mxu0 %v565_v22 }
  0xf2   : > { %v625_v23 = vpop.f32.mrf.mxu0 }
  0xf3   : > { %v626_v25 = vadd.f32 %v4841_v19, %v625_v23  ;;  %v4913_v23 = vld [vmem:[#allocation2 + $0x68] sm:$0xff] }
  0xf5   : > { %v646_v26 = vadd.f32 %v4845_v24, %v626_v25 }
  0xf7   : > { %697 = vadd.xlane.f32.xlu0 %v646_v26 }
  0xfa   : > { %v627_v27 = vpop.f32.mrf.mxu0 }
  0xfb   : > { %v628_v28 = vadd.f32 %v4841_v19, %v627_v27 }
  0xfd   : > { %v647_v30 = vadd.f32 %v4845_v24, %v628_v28 }
  0xff   : > { %701 = vadd.xlane.f32.xlu1 %v647_v30  ;;  %699 = vadd.xlane.f32.xlu0 %v680_v29 }
 0x102   : > { %v630_v31 = vpop.f32.mrf.mxu0 }
 0x103   : > { %v631_v32 = vadd.f32 %v4841_v19, %v630_v31 }
 0x105   : > { %v4853_v34 = vadd.f32 %v4845_v24, %v631_v32 }
 0x107   : > { %705 = vadd.xlane.f32.xlu2 %v4853_v34  ;;  %703 = vadd.xlane.f32.xlu1 %v682_v33 }
 0x10a   : > { %v632_v35 = vpop.f32.mrf.mxu0 }
 0x10b   : > { %v633_v36 = vadd.f32 %v4841_v19, %v632_v35 }
 0x10d   : > { %v649_v38 = vadd.f32 %v4845_v24, %v633_v36 }
 0x10f   : > { %707 = vadd.xlane.f32.xlu2 %v684_v37 }
 0x112   : > { %v635_v43 = vpop.f32.mrf.mxu0 }
 0x113   : > { %v636_v44 = vadd.f32 %v4841_v19, %v635_v43 }
 0x115   : > { %v4860_v45 = vadd.f32 %v4845_v24, %v636_v44 }
 0x117   : > { %709 = vadd.xlane.f32.xlu2 %v649_v38 }
 0x11a   : > { %v637_v48 = vpop.f32.mrf.mxu0 }
 0x11b   : > { %v638_v49 = vadd.f32 %v4841_v19, %v637_v48 }
 0x11d   : > { %v4864_v50 = vadd.f32 %v4845_v24, %v638_v49  ;;  %v4936_v49 = vld [vmem:[#allocation2 + $0x78] sm:$0xff] }
 0x122   : > { %v640_v56 = vpop.f32.mrf.mxu0 }
 0x123   : > { %v641_v57 = vadd.f32 %v4841_v19, %v640_v56 }
 0x125   : > { %v4875_v60 = vadd.f32 %v4845_v24, %v641_v57 }
 0x12a   : > { %v642_v25 = vpop.f32.mrf.mxu0 }
 0x16a   : > { %v698_v52 = vpop.xlane.xlu0 %697 }
 0x16b   : > { %v736_v53 = vmul.f32 %v4866_v51, %v698_v52 }
 0x16d   : > { %v4869_v54 = vsub.f32 %v646_v26, %v736_v53  ;;  %v643_v26 = vadd.f32 %v4841_v19, %v642_v25 }
 0x16f   : > { %v768_v55 = vmul.f32 %v4869_v54, %v4869_v54  ;;  %v4919_v27 = vadd.f32 %v4845_v24, %v643_v26 }
 0x171   : > { %784 = vadd.xlane.f32.xlu0 %v768_v55 }
 0x172   : > { %v702_v58 = vpop.xlane.xlu1 %701  ;;  %v700_v59 = vpop.xlane.xlu0 %699 }
 0x173   : > { %v737_v61 = vmul.f32 %v4866_v51, %v700_v59  ;;  %v738_v7 = vmul.f32 %v4866_v51, %v702_v58 }
 0x175   : > { %v4878_v62 = vsub.f32 %v680_v29, %v737_v61  ;;  %v4890_v10 = vsub.f32 %v647_v30, %v738_v7 }
 0x177   : > { %v769_v0 = vmul.f32 %v4878_v62, %v4878_v62  ;;  %v770_v15 = vmul.f32 %v4890_v10, %v4890_v10 }
 0x179   : > { %711 = vadd.xlane.f32.xlu0 %v686_v63  ;;  %786 = vadd.xlane.f32.xlu1 %v769_v0 }
 0x17a   : > { %v706_v1 = vpop.xlane.xlu2 %705  ;;  %v704_v2 = vpop.xlane.xlu1 %703 }
 0x17b   : > { %v739_v3 = vmul.f32 %v4866_v51, %v704_v2  ;;  %v740_v13 = vmul.f32 %v4866_v51, %v706_v1 }
 0x17d   : > { %v4883_v4 = vsub.f32 %v682_v33, %v739_v3  ;;  %v4904_v18 = vsub.f32 %v4853_v34, %v740_v13 }
 0x17f   : > { %v771_v5 = vmul.f32 %v4883_v4, %v4883_v4  ;;  %v772_v21 = vmul.f32 %v4904_v18, %v4904_v18 }
 0x181   : > { %790 = vadd.xlane.f32.xlu2 %v771_v5  ;;  %713 = vadd.xlane.f32.xlu0 %v4860_v45 }
 0x182   : > { %715 = vadd.xlane.f32.xlu1 %v688_v6  ;;  %v708_v8 = vpop.xlane.xlu2 %707 }
 0x183   : > { %v741_v9 = vmul.f32 %v4866_v51, %v708_v8 }
 0x185   : > { %v4892_v11 = vsub.f32 %v684_v37, %v741_v9 }
 0x187   : > { %v773_v14 = vmul.f32 %v4892_v11, %v4892_v11 }
 0x189   : > { %719 = vadd.xlane.f32.xlu2 %v4894_v12  ;;  %794 = vadd.xlane.f32.xlu0 %v773_v14 }
 0x18a   : > { %788 = vadd.xlane.f32.xlu1 %v770_v15  ;;  %v710_v16 = vpop.xlane.xlu2 %709 }
 0x18b   : > { %v742_v17 = vmul.f32 %v4866_v51, %v710_v16 }
 0x18d   : > { %v4906_v20 = vsub.f32 %v649_v38, %v742_v17 }
 0x18f   : > { %v774_v22 = vmul.f32 %v4906_v20, %v4906_v20 }
 0x191   : > { %792 = vadd.xlane.f32.xlu2 %v772_v21  ;;  %796 = vadd.xlane.f32.xlu0 %v774_v22  ;;  %v4963_v22 = vld [vmem:[#allocation9 + $0x2] ss:$0 sm:$0xff] }
 0x192   : > { %717 = vadd.xlane.f32.xlu1 %v4864_v50 }
 0x199   : > { %721 = vadd.xlane.f32.xlu2 %v4875_v60  ;;  %723 = vadd.xlane.f32.xlu0 %v4913_v23 }
 0x1e4   : > { %v785_v28 = vpop.xlane.xlu0 %784 }
 0x1e5   : > { %v816_v29 = vmul.f32 %v785_v28, %v4866_v51 }
 0x1e7   : > { %v832_v30 = vadd.f32 1e-05, %v816_v29 }
 0x1e9   : > { %4134 = vrsqrt.f32 %v832_v30  ;;  %vm854_vm5 = vweird.f32 %v832_v30 }
 0x1ec   : > { %v787_v31 = vpop.xlane.xlu1 %786  ;;  %v712_v32 = vpop.xlane.xlu0 %711 }
 0x1ed   : > { %v817_v33 = vmul.f32 %v787_v31, %v4866_v51  ;;  %v743_v34 = vmul.f32 %v4866_v51, %v712_v32  ;;  %v4979_v31 = vld [vmem:[#allocation9 + $0x3] ss:$0 sm:$0xff] }
 0x1ef   : > { %v4924_v35 = vpop.eup %4134  ;;  %v833_v36 = vadd.f32 1e-05, %v817_v33  ;;  %v4926_v37 = vsub.f32 %v686_v63, %v743_v34 }
 0x1f0   : > { %v849_v19 = vmul.f32 %v4924_v35, %v832_v30  ;;  %vm855_vm4 = vweird.f32 %v4924_v35 }
 0x1f1   : > { %4136 = vrsqrt.f32 %v833_v36  ;;  %v775_v24 = vmul.f32 %v4926_v37, %v4926_v37  ;;  %vm864_vm1 = vweird.f32 %v833_v36  ;;  %vm4967_vm6 = vmor %vm854_vm5, %vm855_vm4 }
 0x1f2   : > { %v850_v40 = vmul.f32 %v4924_v35, %v849_v19 }
 0x1f3   : > { %798 = vadd.xlane.f32.xlu1 %v775_v24 }
 0x1f4   : > { %v791_v38 = vpop.xlane.xlu2 %790  ;;  %v714_v39 = vpop.xlane.xlu0 %713  ;;  %v851_v52 = vmul.f32 0.5, %v850_v40 }
 0x1f5   : > { %v819_v41 = vmul.f32 %v791_v38, %v4866_v51  ;;  %v716_v42 = vpop.xlane.xlu1 %715  ;;  %v744_v15 = vmul.f32 %v4866_v51, %v714_v39 }
 0x1f6   : > { %v745_v43 = vmul.f32 %v4866_v51, %v716_v42  ;;  %v852_v59 = vsub.f32 1.5, %v851_v52 }
 0x1f7   : > { %v4137_v44 = vpop.eup %4136  ;;  %v835_v46 = vadd.f32 1e-05, %v819_v41  ;;  %v4976_v30 = vsub.f32 %v4860_v45, %v744_v15 }
 0x1f8   : > { %v859_v47 = vmul.f32 %v4137_v44, %v833_v36  ;;  %v4934_v48 = vsub.f32 %v688_v6, %v745_v43  ;;  %vm865_vm2 = vweird.f32 %v4137_v44  ;;  %v853_v14 = vmul.f32 %v4924_v35, %v852_v59 }
 0x1f9   : > { %4138 = vrsqrt.f32 %v835_v46  ;;  %vm4944_vm3 = vmor %vm864_vm1, %vm865_vm2  ;;  %vm884_vm7 = vweird.f32 %v835_v46  ;;  %v776_v40 = vmul.f32 %v4976_v30, %v4976_v30 }
 0x1fa   : > { %v860_v53 = vmul.f32 %v4137_v44, %v859_v47  ;;  %v777_v55 = vmul.f32 %v4934_v48, %v4934_v48  ;;  %v857_v32 = vsel %vm4967_vm6, %v4924_v35, %v853_v14 }
 0x1fb   : > { %727 = vadd.xlane.f32.xlu1 %v4936_v49  ;;  %v1008_v45 = vmul.f32 %v857_v32, %v4869_v54 }
 0x1fc   : > { %v861_v56 = vmul.f32 0.5, %v860_v53  ;;  %802 = vadd.xlane.f32.xlu0 %v777_v55  ;;  %v720_v57 = vpop.xlane.xlu2 %719  ;;  %v795_v58 = vpop.xlane.xlu0 %794 }
 0x1fd   : > { %v747_v61 = vmul.f32 %v4866_v51, %v720_v57  ;;  %v789_v63 = vpop.xlane.xlu1 %788  ;;  %v821_v0 = vmul.f32 %v795_v58, %v4866_v51  ;;  %v1025_v52 = vmul.f32 %v4963_v22, %v1008_v45 }
 0x1fe   : > { %v862_v1 = vsub.f32 1.5, %v861_v56  ;;  %v818_v2 = vmul.f32 %v789_v63, %v4866_v51 }
 0x1ff   : > { %v4139_v3 = vpop.eup %4138  ;;  %v4949_v6 = vsub.f32 %v4894_v12, %v747_v61  ;;  %v4951_v7 = vadd.f32 1e-05, %v821_v0  ;;  %v5005_v63 = vadd.f32 %v4979_v31, %v1025_v52 }
 0x200   : > { %v863_v8 = vmul.f32 %v4137_v44, %v862_v1  ;;  %v879_v9 = vmul.f32 %v4139_v3, %v835_v46  ;;  %v834_v13 = vadd.f32 1e-05, %v818_v2  ;;  %vm885_vm8 = vweird.f32 %v4139_v3 }
 0x201   : > { %4140 = vrsqrt.f32 %v4951_v7  ;;  %v779_v16 = vmul.f32 %v4949_v6, %v4949_v6  ;;  %vm886_vm9 = vmor %vm884_vm7, %vm885_vm8  ;;  %vm904_vm11 = vweird.f32 %v4951_v7 }
 0x202   : > { %v880_v17 = vmul.f32 %v4139_v3, %v879_v9  ;;  %4142 = vrsqrt.f32 %v834_v13  ;;  %v867_v12 = vsel %vm4944_vm3, %v4137_v44, %v863_v8  ;;  %vm874_vm13 = vweird.f32 %v834_v13 }
 0x203   : > { %806 = vadd.xlane.f32.xlu2 %v779_v16  ;;  %725 = vadd.xlane.f32.xlu1 %v4919_v27  ;;  %v1009_v21 = vmul.f32 %v867_v12, %v4878_v62 }
 0x204   : > { %v881_v26 = vmul.f32 0.5, %v880_v17  ;;  %v4971_v28 = vpop.xlane.xlu2 %792  ;;  %v4973_v29 = vpop.xlane.xlu0 %796 }
 0x205   : > { %v1026_v62 = vmul.f32 %v4963_v22, %v1009_v21  ;;  %v718_v43 = vpop.xlane.xlu1 %717  ;;  %v822_v21 = vmul.f32 %v4973_v29, %v4866_v51 }
 0x206   : > { %v882_v33 = vsub.f32 1.5, %v881_v26  ;;  %v746_v57 = vmul.f32 %v4866_v51, %v718_v43 }
 0x207   : > { %v4141_v34 = vpop.eup %4140  ;;  %v4985_v36 = vadd.f32 %v4979_v31, %v1026_v62  ;;  %v5037_v26 = vadd.f32 1e-05, %v822_v21 }
 0x208   : > { %v4143_v19 = vpop.eup %4142  ;;  %v883_v24 = vmul.f32 %v4139_v3, %v882_v33  ;;  %v899_v38 = vmul.f32 %v4141_v34, %v4951_v7  ;;  %vm905_vm12 = vweird.f32 %v4141_v34 }
 0x209   : > { %v869_v39 = vmul.f32 %v4143_v19, %v834_v13  ;;  %1062 = vadd.xlane.f32.xlu0 %v4985_v36  ;;  %vm875_vm10 = vweird.f32 %v4143_v19  ;;  %vm906_vm15 = vmor %vm904_vm11, %vm905_vm12 }
 0x20a   : > { %v900_v41 = vmul.f32 %v4141_v34, %v899_v38  ;;  %v887_v35 = vsel %vm886_vm9, %v4139_v3, %v883_v24  ;;  %vm876_vm14 = vmor %vm874_vm13, %vm875_vm10  ;;  %v5012_v3 = vsub.f32 %v4864_v50, %v746_v57  ;;  %v820_v24 = vmul.f32 %v4971_v28, %v4866_v51 }
 0x20b   : > { %v870_v42 = vmul.f32 %v4143_v19, %v869_v39  ;;  %800 = vadd.xlane.f32.xlu2 %v776_v40  ;;  %v1011_v44 = vmul.f32 %v887_v35, %v4883_v4  ;;  %vm914_vm10 = vweird.f32 %v5037_v26 }
 0x20c   : > { %v901_v46 = vmul.f32 0.5, %v900_v41  ;;  %v724_v47 = vpop.xlane.xlu0 %723  ;;  %v722_v58 = vpop.xlane.xlu2 %721  ;;  %v778_v14 = vmul.f32 %v5012_v3, %v5012_v3  ;;  %v5049_v40 = vadd.f32 1e-05, %v820_v24 }
 0x20d   : > { %v871_v53 = vmul.f32 0.5, %v870_v42  ;;  %v749_v54 = vmul.f32 %v4866_v51, %v724_v47  ;;  %v1028_v55 = vmul.f32 %v4963_v22, %v1011_v44  ;;  %v748_v1 = vmul.f32 %v4866_v51, %v722_v58 }
 0x20e   : > { %v902_v56 = vsub.f32 1.5, %v901_v46  ;;  %vm894_vm13 = vweird.f32 %v5049_v40 }
 0x20f   : > { %v872_v59 = vsub.f32 1.5, %v871_v53  ;;  %v4998_v61 = vsub.f32 %v4913_v23, %v749_v54  ;;  %v5001_v4 = vadd.f32 %v4979_v31, %v1028_v55  ;;  %v5017_v8 = vsub.f32 %v4875_v60, %v748_v1 }
 0x210   : > { %v903_v23 = vmul.f32 %v4141_v34, %v902_v56 }
 0x211   : > { %v873_v0 = vmul.f32 %v4143_v19, %v872_v59  ;;  %1066 = vadd.xlane.f32.xlu1 %v5001_v4  ;;  %v781_v2 = vmul.f32 %v4998_v61, %v4998_v61  ;;  %v780_v50 = vmul.f32 %v5017_v8, %v5017_v8 }
 0x212   : > { %v907_v9 = vsel %vm906_vm15, %v4141_v34, %v903_v23 }
 0x213   : > { %1060 = vadd.xlane.f32.xlu2 %v5005_v63  ;;  %810 = vadd.xlane.f32.xlu0 %v781_v2  ;;  %v877_v5 = vsel %vm876_vm14, %v4143_v19, %v873_v0  ;;  %v1013_v16 = vmul.f32 %v907_v9, %v4892_v11 }
 0x214   : > { %v1010_v7 = vmul.f32 %v877_v5, %v4890_v10 }
 0x215   : > { %v1030_v60 = vmul.f32 %v4963_v22, %v1013_v16 }
 0x216   : > { %v1027_v13 = vmul.f32 %v4963_v22, %v1010_v7 }
 0x217   : > { %v5031_v10 = vadd.f32 %v4979_v31, %v1030_v60 }
 0x218   : > { %v5025_v15 = vadd.f32 %v4979_v31, %v1027_v13 }
 0x219   : > { %804 = vadd.xlane.f32.xlu1 %v778_v14 }
 0x21b   : > { %808 = vadd.xlane.f32.xlu2 %v780_v50  ;;  %1064 = vadd.xlane.f32.xlu0 %v5025_v15 }
 0x223   : > { %1070 = vadd.xlane.f32.xlu0 %v5031_v10 }
 0x266   : > { %v799_v17 = vpop.xlane.xlu1 %798 }
 0x267   : > { %v823_v12 = vmul.f32 %v799_v17, %v4866_v51 }
 0x269   : > { %v839_v25 = vadd.f32 1e-05, %v823_v12 }
 0x26b   : > { %4144 = vrsqrt.f32 %v839_v25  ;;  %vm924_vm1 = vweird.f32 %v839_v25 }
 0x26c   : > { %4146 = vrsqrt.f32 %v5037_v26 }
 0x26e   : > { %v728_v11 = vpop.xlane.xlu1 %727 }
 0x26f   : > { %v751_v62 = vmul.f32 %v4866_v51, %v728_v11  ;;  %v803_v32 = vpop.xlane.xlu0 %802 }
 0x270   : > { %v825_v33 = vmul.f32 %v803_v32, %v4866_v51 }
 0x271   : > { %v4145_v34 = vpop.eup %4144  ;;  %v5043_v19 = vsub.f32 %v4936_v49, %v751_v62 }
 0x272   : > { %v919_v29 = vmul.f32 %v4145_v34, %v839_v25  ;;  %v841_v38 = vadd.f32 1e-05, %v825_v33  ;;  %v5051_v43 = vpop.eup %4146  ;;  %vm925_vm0 = vweird.f32 %v4145_v34 }
 0x273   : > { %v783_v45 = vmul.f32 %v5043_v19, %v5043_v19  ;;  %v909_v53 = vmul.f32 %v5051_v43, %v5037_v26  ;;  %vm926_vm2 = vmor %vm924_vm1, %vm925_vm0  ;;  %vm915_vm9 = vweird.f32 %v5051_v43 }
 0x274   : > { %v920_v39 = vmul.f32 %v4145_v34, %v919_v29  ;;  %4148 = vrsqrt.f32 %v841_v38  ;;  %vm944_vm3 = vweird.f32 %v841_v38  ;;  %vm916_vm11 = vmor %vm914_vm10, %vm915_vm9 }
 0x275   : > { %814 = vadd.xlane.f32.xlu1 %v783_v45  ;;  %4150 = vrsqrt.f32 %v5049_v40  ;;  %v910_v1 = vmul.f32 %v5051_v43, %v909_v53 }
 0x276   : > { %v921_v41 = vmul.f32 0.5, %v920_v39  ;;  %v807_v35 = vpop.xlane.xlu2 %806  ;;  %v726_v42 = vpop.xlane.xlu1 %725 }
 0x277   : > { %v827_v49 = vmul.f32 %v807_v35, %v4866_v51  ;;  %v750_v44 = vmul.f32 %v4866_v51, %v726_v42  ;;  %v911_v21 = vmul.f32 0.5, %v910_v1 }
 0x278   : > { %v922_v28 = vsub.f32 1.5, %v921_v41 }
 0x279   : > { %v843_v46 = vadd.f32 1e-05, %v827_v49  ;;  %v5056_v47 = vsub.f32 %v4919_v27, %v750_v44  ;;  %v912_v39 = vsub.f32 1.5, %v911_v21 }
 0x27a   : > { %v4149_v52 = vpop.eup %4148  ;;  %v923_v54 = vmul.f32 %v4145_v34, %v922_v28 }
 0x27b   : > { %v939_v55 = vmul.f32 %v4149_v52, %v841_v38  ;;  %4152 = vrsqrt.f32 %v843_v46  ;;  %v782_v58 = vmul.f32 %v5056_v47, %v5056_v47  ;;  %vm945_vm4 = vweird.f32 %v4149_v52  ;;  %v5071_v13 = vpop.eup %4150 }
 0x27c   : > { %v927_v56 = vsel %vm926_vm2, %v4145_v34, %v923_v54  ;;  %v1063_v57 = vpop.xlane.xlu0 %1062  ;;  %vm5080_vm5 = vmor %vm944_vm3, %vm945_vm4  ;;  %v889_v11 = vmul.f32 %v5071_v13, %v5049_v40  ;;  %vm964_vm6 = vweird.f32 %v843_v46  ;;  %v913_v53 = vmul.f32 %v5051_v43, %v912_v39 }
 0x27d   : > { %v940_v59 = vmul.f32 %v4149_v52, %v939_v55  ;;  %v1093_v27 = vmul.f32 %v1063_v57, %v4866_v51  ;;  %v1015_v0 = vmul.f32 %v927_v56, %v4926_v37  ;;  %812 = vadd.xlane.f32.xlu1 %v782_v58  ;;  %vm895_vm12 = vweird.f32 %v5071_v13 }
 0x27e   : > { %v801_v2 = vpop.xlane.xlu2 %800  ;;  %v890_v35 = vmul.f32 %v5071_v13, %v889_v11  ;;  %vm896_vm14 = vmor %vm894_vm13, %vm895_vm12 }
 0x27f   : > { %v941_v23 = vmul.f32 0.5, %v940_v59  ;;  %v5067_v5 = vsub.f32 %v4985_v36, %v1093_v27  ;;  %v824_v7 = vmul.f32 %v801_v2, %v4866_v51  ;;  %v1032_v9 = vmul.f32 %v4963_v22, %v1015_v0 }
 0x280   : > { %v891_v54 = vmul.f32 0.5, %v890_v35  ;;  %v917_v2 = vsel %vm916_vm11, %v5051_v43, %v913_v53 }
 0x281   : > { %v4153_v14 = vpop.eup %4152  ;;  %v942_v50 = vsub.f32 1.5, %v941_v23  ;;  %v5073_v16 = vadd.f32 1e-05, %v824_v7  ;;  %v5076_v37 = vadd.f32 %v4979_v31, %v1032_v9  ;;  %v1125_v60 = vmul.f32 %v5067_v5, %v5067_v5 }
 0x282   : > { %v959_v12 = vmul.f32 %v4153_v14, %v843_v46  ;;  %vm965_vm7 = vweird.f32 %v4153_v14  ;;  %v892_v23 = vsub.f32 1.5, %v891_v54  ;;  %v1014_v26 = vmul.f32 %v917_v2, %v4906_v20 }
 0x283   : > { %v943_v25 = vmul.f32 %v4149_v52, %v942_v50  ;;  %4154 = vrsqrt.f32 %v5073_v16  ;;  %1074 = vadd.xlane.f32.xlu2 %v5076_v37  ;;  %1142 = vadd.xlane.f32.xlu0 %v1125_v60  ;;  %vm966_vm8 = vmor %vm964_vm6, %vm965_vm7  ;;  %vm934_vm0 = vweird.f32 %v5073_v16 }
 0x284   : > { %v960_v62 = vmul.f32 %v4153_v14, %v959_v12  ;;  %v1067_v32 = vpop.xlane.xlu1 %1066  ;;  %v1031_v60 = vmul.f32 %v4963_v22, %v1014_v26 }
 0x285   : > { %v947_v33 = vsel %vm5080_vm5, %v4149_v52, %v943_v25  ;;  %v1095_v34 = vmul.f32 %v1067_v32, %v4866_v51 }
 0x286   : > { %v961_v24 = vmul.f32 0.5, %v960_v62  ;;  %v5091_v29 = vpop.xlane.xlu2 %1060  ;;  %v811_v38 = vpop.xlane.xlu0 %810  ;;  %v1017_v45 = vmul.f32 %v947_v33, %v4934_v48  ;;  %v5138_v32 = vadd.f32 %v4979_v31, %v1031_v60 }
 0x287   : > { %v5095_v41 = vsub.f32 %v5001_v4, %v1095_v34  ;;  %v829_v52 = vmul.f32 %v811_v38, %v4866_v51 }
 0x288   : > { %v962_v42 = vsub.f32 1.5, %v961_v24  ;;  %v1034_v49 = vmul.f32 %v4963_v22, %v1017_v45 }
 0x289   : > { %v5099_v44 = vpop.eup %4154  ;;  %v1127_v28 = vmul.f32 %v5095_v41, %v5095_v41  ;;  %v5114_v58 = vadd.f32 1e-05, %v829_v52 }
 0x28a   : > { %v963_v46 = vmul.f32 %v4153_v14, %v962_v42  ;;  %v5105_v48 = vadd.f32 %v4979_v31, %v1034_v49  ;;  %v929_v56 = vmul.f32 %v5099_v44, %v5073_v16  ;;  %vm935_vm15 = vweird.f32 %v5099_v44 }
 0x28b   : > { %1146 = vadd.xlane.f32.xlu1 %v1127_v28  ;;  %4156 = vrsqrt.f32 %v5114_v58  ;;  %vm936_vm1 = vmor %vm934_vm0, %vm935_vm15  ;;  %vm984_vm5 = vweird.f32 %v5114_v58 }
 0x28c   : > { %v967_v55 = vsel %vm966_vm8, %v4153_v14, %v963_v46  ;;  %1078 = vadd.xlane.f32.xlu0 %v5105_v48  ;;  %v930_v7 = vmul.f32 %v5099_v44, %v929_v56  ;;  %v893_v14 = vmul.f32 %v5071_v13, %v892_v23  ;;  %v805_v2 = vpop.xlane.xlu1 %804 }
 0x28d   : > { %v1019_v57 = vmul.f32 %v967_v55, %v4949_v6  ;;  %v826_v23 = vmul.f32 %v805_v2, %v4866_v51  ;;  %v3908_v2 = vld [vmem:[#allocation12 + $0x74] sm:$0xf0] }
 0x28e   : > { %v809_v59 = vpop.xlane.xlu2 %808  ;;  %v5116_v27 = vpop.xlane.xlu0 %1064  ;;  %v931_v50 = vmul.f32 0.5, %v930_v7  ;;  %v897_v20 = vsel %vm896_vm14, %v5071_v13, %v893_v14 }
 0x28f   : > { %v828_v0 = vmul.f32 %v809_v59, %v4866_v51  ;;  %v1036_v1 = vmul.f32 %v4963_v22, %v1019_v57  ;;  %v1012_v33 = vmul.f32 %v897_v20, %v4904_v18  ;;  %v842_v7 = vadd.f32 1e-05, %v826_v23  ;;  %v3907_v23 = vld [vmem:[#allocation12 + $0x74] sm:$0xf] }
 0x290   : > { %v932_v21 = vsub.f32 1.5, %v931_v50 }
 0x291   : > { %v844_v9 = vadd.f32 1e-05, %v828_v0  ;;  %v5124_v6 = vadd.f32 %v4979_v31, %v1036_v1  ;;  %v4157_v12 = vpop.eup %4156  ;;  %v1029_v45 = vmul.f32 %v4963_v22, %v1012_v33  ;;  %vm954_vm9 = vweird.f32 %v842_v7 }
 0x292   : > { %v933_v34 = vmul.f32 %v5099_v44, %v932_v21  ;;  %v979_v24 = vmul.f32 %v4157_v12, %v5114_v58  ;;  %vm985_vm6 = vweird.f32 %v4157_v12 }
 0x293   : > { %4158 = vrsqrt.f32 %v844_v9  ;;  %1082 = vadd.xlane.f32.xlu1 %v5124_v6  ;;  %vm974_vm3 = vweird.f32 %v844_v9  ;;  %v5151_v49 = vadd.f32 %v4979_v31, %v1029_v45  ;;  %vm986_vm7 = vmor %vm984_vm5, %vm985_vm6 }
 0x294   : > { %v980_v39 = vmul.f32 %v4157_v12, %v979_v24  ;;  %v937_v18 = vsel %vm936_vm1, %v5099_v44, %v933_v34  ;;  %4160 = vrsqrt.f32 %v842_v7 }
 0x295   : > { %v1016_v28 = vmul.f32 %v937_v18, %v4976_v30  ;;  %v1092_v30 = vmul.f32 %v5091_v29, %v4866_v51 }
 0x296   : > { %v1071_v43 = vpop.xlane.xlu0 %1070  ;;  %v981_v46 = vmul.f32 0.5, %v980_v39 }
 0x297   : > { %v1097_v17 = vmul.f32 %v1071_v43, %v4866_v51  ;;  %v1033_v54 = vmul.f32 %v4963_v22, %v1016_v28  ;;  %v5170_v57 = vsub.f32 %v5005_v63, %v1092_v30 }
 0x298   : > { %v982_v55 = vsub.f32 1.5, %v981_v46 }
 0x299   : > { %v4159_v25 = vpop.eup %4158  ;;  %v5135_v11 = vsub.f32 %v5031_v10, %v1097_v17  ;;  %v5166_v56 = vadd.f32 %v4979_v31, %v1033_v54  ;;  %v1124_v58 = vmul.f32 %v5170_v57, %v5170_v57 }
 0x29a   : > { %v969_v62 = vmul.f32 %v4159_v25, %v844_v9  ;;  %vm975_vm2 = vweird.f32 %v4159_v25  ;;  %v4161_v63 = vpop.eup %4160 }
 0x29b   : > { %v1129_v40 = vmul.f32 %v5135_v11, %v5135_v11  ;;  %1072 = vadd.xlane.f32.xlu1 %v5138_v32  ;;  %vm976_vm4 = vmor %vm974_vm3, %vm975_vm2  ;;  %v949_v9 = vmul.f32 %v4161_v63, %v842_v7  ;;  %vm955_vm8 = vweird.f32 %v4161_v63 }
 0x29c   : > { %v970_v13 = vmul.f32 %v4159_v25, %v969_v62  ;;  %vm956_vm10 = vmor %vm954_vm9, %vm955_vm8 }
 0x29d   : > { %1150 = vadd.xlane.f32.xlu2 %v1129_v40  ;;  %v950_v26 = vmul.f32 %v4161_v63, %v949_v9 }
 0x29e   : > { %v971_v38 = vmul.f32 0.5, %v970_v13 }
 0x29f   : > { %v951_v43 = vmul.f32 0.5, %v950_v26 }
 0x2a0   : > { %v972_v35 = vsub.f32 1.5, %v971_v38 }
 0x2a1   : > { %v952_v60 = vsub.f32 1.5, %v951_v43 }
 0x2a2   : > { %v973_v42 = vmul.f32 %v4159_v25, %v972_v35 }
 0x2a3   : > { %v953_v20 = vmul.f32 %v4161_v63, %v952_v60 }
 0x2a4   : > { %v977_v52 = vsel %vm976_vm4, %v4159_v25, %v973_v42 }
 0x2a5   : > { %1068 = vadd.xlane.f32.xlu2 %v5151_v49  ;;  %v1020_v16 = vmul.f32 %v977_v52, %v5017_v8  ;;  %v983_v8 = vmul.f32 %v4157_v12, %v982_v55  ;;  %v957_v13 = vsel %vm956_vm10, %v4161_v63, %v953_v20  ;;  %v1094_v55 = vmul.f32 %v5116_v27, %v4866_v51  ;;  %v3684_v27 = vld [vmem:[#allocation12 + $0x78] sm:$0xf0] }
 0x2a6   : > { %v1018_v39 = vmul.f32 %v957_v13, %v5012_v3  ;;  %v3687_v26 = vor.u32 %v3907_v23, %v3684_v27  ;;  %v3900_v27 = vld [vmem:[#allocation12 + $0x34] sm:$0xf0] }
 0x2a7   : > { %v1037_v53 = vmul.f32 %v4963_v22, %v1020_v16  ;;  %v987_v59 = vsel %vm986_vm7, %v4157_v12, %v983_v8  ;;  %v5216_v63 = vsub.f32 %v5025_v15, %v1094_v55 }
 0x2a8   : > { %v1021_v0 = vmul.f32 %v987_v59, %v4998_v61  ;;  %v1035_v52 = vmul.f32 %v4963_v22, %v1018_v39  ;;  %1573 = vmatpush.bf16.msra.mxu2 %v3687_v26  ;;  %v3904_v39 = vld [vmem:[#allocation12 + $0x54] sm:$0xf0]  ;;  %v3902_v59 = vld [vmem:[#allocation12 + $0x44] sm:$0xf0] }
 0x2a9   : > { %v5159_v44 = vadd.f32 %v4979_v31, %v1037_v53  ;;  %v1126_v60 = vmul.f32 %v5216_v63, %v5216_v63 }
 0x2aa   : > { %v1038_v29 = vmul.f32 %v4963_v22, %v1021_v0  ;;  %v5206_v30 = vadd.f32 %v4979_v31, %v1035_v52  ;;  %v3668_v52 = vld [vmem:[#allocation12 + $0x58] sm:$0xf0] }
 0x2ab   : > { %1084 = vadd.xlane.f32.xlu1 %v5159_v44 }
 0x2ac   : > { %v5177_v1 = vadd.f32 %v4979_v31, %v1038_v29  ;;  %v3682_v29 = vld [vmem:[#allocation12 + $0x70] sm:$0xf] }
 0x2ad   : > { %1076 = vadd.xlane.f32.xlu2 %v5166_v56  ;;  %v3683_v7 = vor.u32 %v3908_v2, %v3682_v29  ;;  %v3660_v29 = vld [vmem:[#allocation12 + $0x48] sm:$0xf0] }
 0x2af   : > { %1524 = vmatpush.bf16.msra.mxu1 %v3683_v7  ;;  %v3650_v7 = vld [vmem:[#allocation12 + $0x30] sm:$0xf] }
 0x2b0   : > { %v3651_v26 = vor.u32 %v3900_v27, %v3650_v7 }
 0x2b5   : > { %1140 = vadd.xlane.f32.xlu2 %v1124_v58 }
 0x2bd   : > { %1086 = vadd.xlane.f32.xlu2 %v5177_v1 }
 0x2e8   : > { %v815_v14 = vpop.xlane.xlu1 %814 }
 0x2e9   : > { %v831_v50 = vmul.f32 %v815_v14, %v4866_v51 }
 0x2eb   : > { %v847_v61 = vadd.f32 1e-05, %v831_v50 }
 0x2ed   : > { %4162 = vrsqrt.f32 %v847_v61  ;;  %vm1004_vm11 = vweird.f32 %v847_v61 }
 0x2f0   : > { %v813_v17 = vpop.xlane.xlu1 %812 }
 0x2f1   : > { %v830_v12 = vmul.f32 %v813_v17, %v4866_v51  ;;  %v3674_v17 = vld [vmem:[#allocation12 + $0x60] sm:$0xf] }
 0x2f3   : > { %v4163_v21 = vpop.eup %4162  ;;  %v846_v62 = vadd.f32 1e-05, %v830_v12  ;;  %v3906_v12 = vld [vmem:[#allocation12 + $0x64] sm:$0xf0] }
 0x2f4   : > { %v999_v25 = vmul.f32 %v4163_v21, %v847_v61  ;;  %vm1005_vm12 = vweird.f32 %v4163_v21 }
 0x2f5   : > { %4164 = vrsqrt.f32 %v846_v62  ;;  %vm5208_vm13 = vmor %vm1004_vm11, %vm1005_vm12  ;;  %vm994_vm15 = vweird.f32 %v846_v62 }
 0x2f6   : > { %v1075_v40 = vpop.xlane.xlu2 %1074  ;;  %v5183_v33 = vpop.xlane.xlu0 %1142  ;;  %v1000_v24 = vmul.f32 %v4163_v21, %v999_v25  ;;  %v3675_v25 = vor.u32 %v3906_v12, %v3674_v17  ;;  %v3897_v17 = vld [vmem:[#allocation12 + $0x24] sm:$0xf] }
 0x2f7   : > { %v1099_v34 = vmul.f32 %v1075_v40, %v4866_v51  ;;  %v3905_v40 = vld [vmem:[#allocation12 + $0x64] sm:$0xf] }
 0x2f8   : > { %v1001_v18 = vmul.f32 0.5, %v1000_v24  ;;  %1525 = vmatpush.bf16.msra.mxu1 %v3675_v25 }
 0x2f9   : > { %v5187_v38 = vsub.f32 %v5076_v37, %v1099_v34  ;;  %v3676_v34 = vld [vmem:[#allocation12 + $0x68] sm:$0xf0] }
 0x2fa   : > { %v1002_v16 = vsub.f32 1.5, %v1001_v18  ;;  %v3679_v24 = vor.u32 %v3905_v40, %v3676_v34  ;;  %v3903_v18 = vld [vmem:[#allocation12 + $0x54] sm:$0xf]  ;;  %v3634_v40 = vld [vmem:[#allocation12 + $0x10] sm:$0xf] }
 0x2fb   : > { %v1131_v45 = vmul.f32 %v5187_v38, %v5187_v38  ;;  %v5192_v35 = vpop.eup %4164  ;;  %v3896_v34 = vld [vmem:[#allocation12 + $0x14] sm:$0xf0] }
 0x2fc   : > { %v989_v42 = vmul.f32 %v5192_v35, %v846_v62  ;;  %v1003_v8 = vmul.f32 %v4163_v21, %v1002_v16  ;;  %vm995_vm14 = vweird.f32 %v5192_v35  ;;  %1574 = vmatpush.bf16.msra.mxu2 %v3679_v24  ;;  %v3671_v16 = vor.u32 %v3903_v18, %v3668_v52  ;;  %v3895_v24 = vld [vmem:[#allocation12 + $0x14] sm:$0xf]  ;;  %v3893_v52 = vld [vmem:[#allocation12 + $0x4] sm:$0xf] }
 0x2fd   : > { %1154 = vadd.xlane.f32.xlu0 %v1131_v45  ;;  %vm5231_vm0 = vmor %vm994_vm15, %vm995_vm14  ;;  %v3666_v45 = vld [vmem:[#allocation12 + $0x50] sm:$0xf] }
 0x2fe   : > { %v5195_v28 = vpop.xlane.xlu1 %1146  ;;  %v990_v53 = vmul.f32 %v5192_v35, %v989_v42  ;;  %v1007_v14 = vsel %vm5208_vm13, %v4163_v21, %v1003_v8  ;;  %v3658_v8 = vld [vmem:[#allocation12 + $0x40] sm:$0xf] }
 0x2ff   : > { %v1079_v46 = vpop.xlane.xlu0 %1078  ;;  %v1023_v15 = vmul.f32 %v1007_v14, %v5043_v19  ;;  %v3652_v14 = vld [vmem:[#allocation12 + $0x38] sm:$0xf0] }
 0x300   : > { %v1101_v54 = vmul.f32 %v1079_v46, %v4866_v51  ;;  %v991_v58 = vmul.f32 0.5, %v990_v53  ;;  %v3667_v46 = vor.u32 %v3904_v39, %v3666_v45  ;;  %v1173_v53 = vmul.f32 %v5183_v33, %v4866_v51  ;;  %1575 = vmatpush.bf16.msra.mxu2 %v3671_v16  ;;  %v3626_v45 = vld [vmem:[#allocation12] sm:$0xf]  ;;  %v3628_v16 = vld [vmem:[#allocation12 + $0x8] sm:$0xf0] }
 0x301   : > { %v1040_v19 = vmul.f32 %v4963_v22, %v1023_v15  ;;  %v3898_v15 = vld [vmem:[#allocation12 + $0x24] sm:$0xf0] }
 0x302   : > { %v5201_v3 = vsub.f32 %v5105_v48, %v1101_v54  ;;  %v992_v50 = vsub.f32 1.5, %v991_v58  ;;  %1526 = vmatpush.bf16.msra.mxu1 %v3667_v46  ;;  %v3659_v58 = vor.u32 %v3902_v59, %v3658_v8  ;;  %v5248_v2 = vadd.f32 1e-05, %v1173_v53  ;;  %v3894_v46 = vld [vmem:[#allocation12 + $0x4] sm:$0xf0] }
 0x303   : > { %v5244_v54 = vadd.f32 %v4979_v31, %v1040_v19  ;;  %v3636_v19 = vld [vmem:[#allocation12 + $0x18] sm:$0xf0]  ;;  %v3627_v53 = vor.u32 %v3894_v46, %v3626_v45  ;;  %v3631_v8 = vor.u32 %v3893_v52, %v3628_v16 }
 0x304   : > { %v1133_v0 = vmul.f32 %v5201_v3, %v5201_v3  ;;  %v993_v20 = vmul.f32 %v5192_v35, %v992_v50  ;;  %4166 = vrsqrt.f32 %v5248_v2  ;;  %vm1220_vm2 = vweird.f32 %v5248_v2 }
 0x305   : > { %1080 = vadd.xlane.f32.xlu0 %v5206_v30 }
 0x306   : > { %1158 = vadd.xlane.f32.xlu2 %v1133_v0  ;;  %v1083_v9 = vpop.xlane.xlu1 %1082  ;;  %v997_v62 = vsel %vm5231_vm0, %v5192_v35, %v993_v20  ;;  %v3901_v0 = vld [vmem:[#allocation12 + $0x44] sm:$0xf]  ;;  %1527 = vmatpush.bf16.msra.mxu1 %v3659_v58  ;;  %vm1665_vm0 = vcmask 1041409  }
 0x307   : > { %v1103_v61 = vmul.f32 %v1083_v9, %v4866_v51  ;;  %v1022_v55 = vmul.f32 %v997_v62, %v5056_v47  ;;  %v3663_v35 = vor.u32 %v3901_v0, %v3660_v29  ;;  %v3899_v47 = vld [vmem:[#allocation12 + $0x34] sm:$0xf]  ;;  %v3639_v62 = vor.u32 %v3895_v24, %v3636_v19 }
 0x308   : > { %v3655_v50 = vor.u32 %v3899_v47, %v3652_v14  ;;  %v5285_v19 = vld [vmem:[#allocation9 + $0x5] ss:$0 sm:$0xff] }
 0x309   : > { %v5222_v43 = vsub.f32 %v5124_v6, %v1103_v61  ;;  %v1039_v33 = vmul.f32 %v4963_v22, %v1022_v55  ;;  %1576 = vmatpush.bf16.msra.mxu2 %v3663_v35  ;;  %v3644_v22 = vld [vmem:[#allocation12 + $0x28] sm:$0xf0] }
 0x30a   : > { %1528 = vmatpush.bf16.msra.mxu1 %v3651_v26  ;;  %v3647_v20 = vor.u32 %v3897_v17, %v3644_v22  ;;  %v4167_v39 = vpop.eup %4166 }
 0x30b   : > { %v1135_v21 = vmul.f32 %v5222_v43, %v5222_v43  ;;  %v5255_v61 = vadd.f32 %v4979_v31, %v1039_v33  ;;  %v3635_v31 = vor.u32 %v3896_v34, %v3634_v40  ;;  %v1215_v59 = vmul.f32 %v4167_v39, %v5248_v2  ;;  %v5278_v40 = vld [vmem:[#allocation9 + $0x4] ss:$0 sm:$0xff] }
 0x30c   : > { %vm1221_vm1 = vweird.f32 %v4167_v39 }
 0x30d   : > { %1144 = vadd.xlane.f32.xlu0 %v1126_v60  ;;  %1577 = vmatpush.bf16.msra.mxu2 %v3655_v50  ;;  %v3642_v60 = vld [vmem:[#allocation12 + $0x20] sm:$0xf]  ;;  %v1216_v58 = vmul.f32 %v4167_v39, %v1215_v59  ;;  %vm1222_vm3 = vmor %vm1220_vm2, %vm1221_vm1  ;;  %vm1668_vm1 = vcmask 1042434   ;;  %vm1671_vm2 = vcmask 1043459  }
 0x30e   : > { %1162 = vadd.xlane.f32.xlu2 %v1135_v21  ;;  %v5250_v23 = vpop.xlane.xlu1 %1072  ;;  %v3643_v12 = vor.u32 %v3898_v15, %v3642_v60 }
 0x30f   : > { %v1217_v35 = vmul.f32 0.5, %v1216_v58 }
 0x310   : > { %v5236_v42 = vpop.xlane.xlu2 %1150  ;;  %1529 = vmatpush.bf16.msra.mxu1 %v3643_v12 }
 0x311   : > { %1578 = vmatpush.bf16.msra.mxu2 %v3647_v20  ;;  %v1218_v33 = vsub.f32 1.5, %v1217_v35 }
 0x313   : > { %v1219_v14 = vmul.f32 %v4167_v39, %v1218_v33 }
 0x314   : > { %1530 = vmatpush.bf16.msra.mxu1 %v3635_v31 }
 0x315   : > { %1090 = vadd.xlane.f32.xlu0 %v5244_v54  ;;  %1579 = vmatpush.bf16.msra.mxu2 %v3639_v62  ;;  %v1223_v22 = vsel %vm1222_vm3, %v4167_v39, %v1219_v14 }
 0x318   : > { %v1069_v9 = vpop.xlane.xlu2 %1068  ;;  %1531 = vmatpush.bf16.msra.mxu1 %v3627_v53 }
 0x319   : > { %1580 = vmatpush.bf16.msra.mxu2 %v3631_v8  ;;  %v1096_v60 = vmul.f32 %v1069_v9, %v4866_v51 }
 0x31b   : > { %v5275_v20 = vsub.f32 %v5151_v49, %v1096_v60 }
 0x31d   : > { %1088 = vadd.xlane.f32.xlu0 %v5255_v61  ;;  %v1128_v2 = vmul.f32 %v5275_v20, %v5275_v20 }
 0x31e   : > { %v1085_v21 = vpop.xlane.xlu1 %1084 }
 0x31f   : > { %v1104_v25 = vmul.f32 %v1085_v21, %v4866_v51 }
 0x320   : > { %v1077_v13 = vpop.xlane.xlu2 %1076 }
 0x321   : > { %v5260_v18 = vsub.f32 %v5159_v44, %v1104_v25  ;;  %v1365_v25 = vmul.f32 %v1223_v22, %v5067_v5  ;;  %v1100_v34 = vmul.f32 %v1077_v13, %v4866_v51 }
 0x323   : > { %v1136_v55 = vmul.f32 %v5260_v18, %v5260_v18  ;;  %v1382_v49 = vmul.f32 %v5278_v40, %v1365_v25  ;;  %v5288_v5 = vsub.f32 %v5166_v56, %v1100_v34  ;;  %v1177_v56 = vmul.f32 %v5236_v42, %v4866_v51 }
 0x325   : > { %1164 = vadd.xlane.f32.xlu0 %v1136_v55  ;;  %v5293_v13 = vadd.f32 %v5285_v19, %v1382_v49  ;;  %v1132_v62 = vmul.f32 %v5288_v5, %v5288_v5  ;;  %v1193_v16 = vadd.f32 1e-05, %v1177_v56 }
 0x327   : > { %vm1260_vm11 = vweird.f32 %v1193_v16 }
 0x328   : > { %v1141_v0 = vpop.xlane.xlu2 %1140 }
 0x329   : > { %v1172_v44 = vmul.f32 %v1141_v0, %v4866_v51 }
 0x32b   : > { %v1188_v29 = vadd.f32 1e-05, %v1172_v44 }
 0x32d   : > { %4168 = vrsqrt.f32 %v1188_v29  ;;  %vm1210_vm5 = vweird.f32 %v1188_v29 }
 0x330   : > { %v1087_v7 = vpop.xlane.xlu2 %1086 }
 0x331   : > { %v1105_v27 = vmul.f32 %v1087_v7, %v4866_v51 }
 0x333   : > { %v4169_v47 = vpop.eup %4168  ;;  %v5268_v26 = vsub.f32 %v5177_v1, %v1105_v27 }
 0x334   : > { %v1205_v50 = vmul.f32 %v4169_v47, %v1188_v29  ;;  %vm1211_vm4 = vweird.f32 %v4169_v47 }
 0x335   : > { %v1137_v15 = vmul.f32 %v5268_v26, %v5268_v26  ;;  %vm1212_vm6 = vmor %vm1210_vm5, %vm1211_vm4 }
 0x336   : > { %v1206_v17 = vmul.f32 %v4169_v47, %v1205_v50 }
 0x337   : > { %1166 = vadd.xlane.f32.xlu1 %v1137_v15 }
 0x338   : > { %v1207_v12 = vmul.f32 0.5, %v1206_v17 }
 0x33a   : > { %v1208_v21 = vsub.f32 1.5, %v1207_v12 }
 0x33c   : > { %v1209_v9 = vmul.f32 %v4169_v47, %v1208_v21 }
 0x33e   : > { %v1213_v24 = vsel %vm1212_vm6, %v4169_v47, %v1209_v9 }
 0x33f   : > { %1148 = vadd.xlane.f32.xlu1 %v1128_v2  ;;  %v1364_v31 = vmul.f32 %v1213_v24, %v5170_v57  ;;  %v1175_v57 = vmul.f32 %v5195_v28, %v4866_v51 }
 0x341   : > { %v1381_v45 = vmul.f32 %v5278_v40, %v1364_v31  ;;  %v1191_v52 = vadd.f32 1e-05, %v1175_v57 }
 0x343   : > { %v1398_v39 = vadd.f32 %v5285_v19, %v1381_v45  ;;  %4170 = vrsqrt.f32 %v1191_v52  ;;  %vm1240_vm9 = vweird.f32 %v1191_v52 }
 0x344   : > { %4172 = vrsqrt.f32 %v1193_v16 }
 0x345   : > { %v1414_v46 = vpack.c.bf16 %v5293_v13, %v1398_v39 }
 0x347   : > { %1156 = vadd.xlane.f32.xlu1 %v1132_v62  ;;  %1532 = vmatmul.bf16.vlgmr.msra.gmra.mxu1 %v1414_v46 }
 0x348   : > { %1581 = vmatmul.bf16.vlgmr.msra.gmra.mxu2 %v1414_v46 }
 0x349   : > { %v4171_v53 = vpop.eup %4170 }
 0x34a   : > { %v4173_v55 = vpop.eup %4172  ;;  %v1235_v8 = vmul.f32 %v4171_v53, %v1191_v52  ;;  %vm1241_vm7 = vweird.f32 %v4171_v53 }
 0x34b   : > { %v1255_v59 = vmul.f32 %v4173_v55, %v1193_v16  ;;  %vm1261_vm8 = vweird.f32 %v4173_v55  ;;  %vm1242_vm10 = vmor %vm1240_vm9, %vm1241_vm7 }
 0x34c   : > { %v1236_v58 = vmul.f32 %v4171_v53, %v1235_v8  ;;  %vm1262_vm12 = vmor %vm1260_vm11, %vm1261_vm8 }
 0x34d   : > { %v1256_v0 = vmul.f32 %v4173_v55, %v1255_v59 }
 0x34e   : > { %v1237_v44 = vmul.f32 0.5, %v1236_v58 }
 0x34f   : > { %v1257_v29 = vmul.f32 0.5, %v1256_v0 }
 0x350   : > { %v1238_v35 = vsub.f32 1.5, %v1237_v44 }
 0x351   : > { %v1258_v33 = vsub.f32 1.5, %v1257_v29  ;;  %v1638_v29 = vpack.c.bf16 %v5293_v13, %v5293_v13 }
 0x352   : > { %v1239_v27 = vmul.f32 %v4171_v53, %v1238_v35 }
 0x353   : > { %v1259_v42 = vmul.f32 %v4173_v55, %v1258_v33 }
 0x354   : > { %v1243_v14 = vsel %vm1242_vm10, %v4171_v53, %v1239_v27 }
 0x355   : > { %v1263_v50 = vsel %vm1262_vm12, %v4173_v55, %v1259_v42  ;;  %v1367_v17 = vmul.f32 %v1243_v14, %v5095_v41 }
 0x356   : > { %v1369_v12 = vmul.f32 %v1263_v50, %v5135_v11 }
 0x357   : > { %v1384_v34 = vmul.f32 %v5278_v40, %v1367_v17 }
 0x358   : > { %v1386_v24 = vmul.f32 %v5278_v40, %v1369_v12 }
 0x359   : > { %v5315_v11 = vadd.f32 %v5285_v19, %v1384_v34 }
 0x35a   : > { %v5318_v39 = vadd.f32 %v5285_v19, %v1386_v24 }
 0x35b   : > { %v1639_v57 = vpack.c.bf16 %v5315_v11, %v5315_v11 }
 0x35c   : > { %v1640_v52 = vpack.c.bf16 %v5318_v39, %v5318_v39 }
 0x35d   : > { %v1657_v58 = vunpack.c.l.b16 %v1639_v57 }
 0x35e   : > { %v1658_v0 = vunpack.c.l.b16 %v1640_v52 }
 0x35f   : > { %v1664_v42 = vrot.slane %v1657_v58, 7 }
 0x360   : > { %v1667_v50 = vrot.slane %v1658_v0, 6 }
 0x370   : > { %v1155_v7 = vpop.xlane.xlu0 %1154 }
 0x371   : > { %v1179_v28 = vmul.f32 %v1155_v7, %v4866_v51 }
 0x373   : > { %v1195_v47 = vadd.f32 1e-05, %v1179_v28 }
 0x375   : > { %4174 = vrsqrt.f32 %v1195_v47  ;;  %vm1280_vm14 = vweird.f32 %v1195_v47 }
 0x378   : > { %v1081_v60 = vpop.xlane.xlu0 %1080 }
 0x379   : > { %v1102_v15 = vmul.f32 %v1081_v60, %v4866_v51  ;;  %v1159_v31 = vpop.xlane.xlu2 %1158  ;;  %v1656_v60 = vunpack.c.l.b16 %v1638_v29 }
 0x37a   : > { %v1181_v33 = vmul.f32 %v1159_v31, %v4866_v51 }
 0x37b   : > { %v4175_v22 = vpop.eup %4174  ;;  %v5307_v21 = vsub.f32 %v5206_v30, %v1102_v15  ;;  %v1666_v34 = vsel %vm1665_vm0, %v1664_v42, %v1656_v60 }
 0x37c   : > { %v1275_v25 = vmul.f32 %v4175_v22, %v1195_v47  ;;  %vm1281_vm13 = vweird.f32 %v4175_v22  ;;  %v1098_v47 = vmul.f32 %v5250_v23, %v4866_v51  ;;  %v1197_v15 = vadd.f32 1e-05, %v1181_v33 }
 0x37d   : > { %v1134_v9 = vmul.f32 %v5307_v21, %v5307_v21  ;;  %vm1282_vm15 = vmor %vm1280_vm14, %vm1281_vm13  ;;  %v1669_v31 = vsel %vm1668_vm1, %v1667_v50, %v1666_v34 }
 0x37e   : > { %v1276_v2 = vmul.f32 %v4175_v22, %v1275_v25  ;;  %v5346_v23 = vsub.f32 %v5138_v32, %v1098_v47  ;;  %vm1300_vm8 = vweird.f32 %v1197_v15 }
 0x37f   : > { %1160 = vadd.xlane.f32.xlu1 %v1134_v9 }
 0x380   : > { %v1277_v49 = vmul.f32 0.5, %v1276_v2  ;;  %v1145_v45 = vpop.xlane.xlu0 %1144  ;;  %v1130_v32 = vmul.f32 %v5346_v23, %v5346_v23 }
 0x381   : > { %v1174_v41 = vmul.f32 %v1145_v45, %v4866_v51  ;;  %v1163_v8 = vpop.xlane.xlu2 %1162 }
 0x382   : > { %v1278_v30 = vsub.f32 1.5, %v1277_v49 }
 0x383   : > { %v1190_v62 = vadd.f32 1e-05, %v1174_v41 }
 0x384   : > { %v1279_v46 = vmul.f32 %v4175_v22, %v1278_v30 }
 0x385   : > { %4176 = vrsqrt.f32 %v1190_v62  ;;  %vm1230_vm4 = vweird.f32 %v1190_v62 }
 0x386   : > { %v1283_v56 = vsel %vm1282_vm15, %v4175_v22, %v1279_v46  ;;  %4178 = vrsqrt.f32 %v1197_v15 }
 0x387   : > { %v1371_v16 = vmul.f32 %v1283_v56, %v5187_v38  ;;  %v1183_v38 = vmul.f32 %v1163_v8, %v4866_v51 }
 0x388   : > { %v1091_v53 = vpop.xlane.xlu0 %1090 }
 0x389   : > { %v1388_v55 = vmul.f32 %v5278_v40, %v1371_v16  ;;  %v1107_v59 = vmul.f32 %v1091_v53, %v4866_v51  ;;  %v1199_v12 = vadd.f32 1e-05, %v1183_v38 }
 0x38b   : > { %v4177_v44 = vpop.eup %4176  ;;  %v5330_v35 = vadd.f32 %v5285_v19, %v1388_v55  ;;  %v5334_v7 = vsub.f32 %v5244_v54, %v1107_v59  ;;  %4180 = vrsqrt.f32 %v1199_v12  ;;  %vm1320_vm10 = vweird.f32 %v1199_v12 }
 0x38c   : > { %v1225_v28 = vmul.f32 %v4177_v44, %v1190_v62  ;;  %vm1231_vm3 = vweird.f32 %v4177_v44 }
 0x38d   : > { %v1641_v27 = vpack.c.bf16 %v5330_v35, %v5330_v35  ;;  %v1139_v14 = vmul.f32 %v5334_v7, %v5334_v7  ;;  %vm1232_vm5 = vmor %vm1230_vm4, %vm1231_vm3 }
 0x38e   : > { %v1226_v13 = vmul.f32 %v4177_v44, %v1225_v28 }
 0x38f   : > { %v1659_v17 = vunpack.c.l.b16 %v1641_v27  ;;  %1170 = vadd.xlane.f32.xlu2 %v1139_v14 }
 0x390   : > { %v1227_v22 = vmul.f32 0.5, %v1226_v13  ;;  %v1089_v25 = vpop.xlane.xlu0 %1088 }
 0x391   : > { %v1106_v9 = vmul.f32 %v1089_v25, %v4866_v51  ;;  %v1670_v2 = vrot.slane %v1659_v17, 5 }
 0x392   : > { %v1228_v24 = vsub.f32 1.5, %v1227_v22 }
 0x393   : > { %v5350_v49 = vsub.f32 %v5255_v61, %v1106_v9  ;;  %v5353_v45 = vsel %vm1671_vm2, %v1670_v2, %v1669_v31  ;;  %v4179_v61 = vpop.eup %4178 }
 0x394   : > { %v1229_v41 = vmul.f32 %v4177_v44, %v1228_v24  ;;  %v4181_v52 = vpop.eup %4180  ;;  %v1295_v53 = vmul.f32 %v4179_v61, %v1197_v15  ;;  %vm1301_vm6 = vweird.f32 %v4179_v61 }
 0x395   : > { %v1138_v30 = vmul.f32 %v5350_v49, %v5350_v49  ;;  %v1315_v62 = vmul.f32 %v4181_v52, %v1199_v12  ;;  %vm1321_vm7 = vweird.f32 %v4181_v52  ;;  %vm1302_vm9 = vmor %vm1300_vm8, %vm1301_vm6  ;;  %vm1677_vm6 = vcmask 1045509  }
 0x396   : > { %v1233_v46 = vsel %vm1232_vm5, %v4177_v44, %v1229_v41  ;;  %v1296_v8 = vmul.f32 %v4179_v61, %v1295_v53  ;;  %vm1322_vm11 = vmor %vm1320_vm10, %vm1321_vm7  ;;  %vm1674_vm5 = vcmask 1044484   ;;  %vm1680_vm7 = vcmask 1046534  }
 0x397   : > { %1168 = vadd.xlane.f32.xlu0 %v1138_v30  ;;  %v1366_v57 = vmul.f32 %v1233_v46, %v5216_v63  ;;  %1152 = vadd.xlane.f32.xlu2 %v1130_v32  ;;  %v1316_v59 = vmul.f32 %v4181_v52, %v1315_v62 }
 0x398   : > { %v1297_v58 = vmul.f32 0.5, %v1296_v8  ;;  %v5387_v8 = vld [vmem:[%s6010_s6] sm:$0x3] }
 0x399   : > { %v1383_v56 = vmul.f32 %v5278_v40, %v1366_v57  ;;  %v1317_v0 = vmul.f32 0.5, %v1316_v59 }
 0x39a   : > { %v1298_v44 = vsub.f32 1.5, %v1297_v58  ;;  %v5392_v58 = vperm.slane %v5387_v8, 1 }
 0x39b   : > { %v1400_v16 = vadd.f32 %v5285_v19, %v1383_v56  ;;  %v1318_v29 = vsub.f32 1.5, %v1317_v0 }
 0x39c   : > { %v1299_v38 = vmul.f32 %v4179_v61, %v1298_v44 }
 0x39d   : > { %v1415_v55 = vpack.c.bf16 %v5315_v11, %v1400_v16  ;;  %v1319_v28 = vmul.f32 %v4181_v52, %v1318_v29 }
 0x39e   : > { %v1303_v11 = vsel %vm1302_vm9, %v4179_v61, %v1299_v38 }
 0x39f   : > { %1537 = vmatmul.bf16.gmra.mxu1 %v1415_v55  ;;  %1586 = vmatmul.bf16.gmra.mxu2 %v1415_v55  ;;  %v1323_v42 = vsel %vm1322_vm11, %v4181_v52, %v1319_v28  ;;  %v1373_v13 = vmul.f32 %v1303_v11, %v5201_v3 }
 0x3a0   : > { %v1375_v50 = vmul.f32 %v1323_v42, %v5222_v43 }
 0x3a1   : > { %v1390_v25 = vmul.f32 %v5278_v40, %v1373_v13 }
 0x3a2   : > { %v1392_v15 = vmul.f32 %v5278_v40, %v1375_v50  ;;  %v3915_v50 = vld [vmem:[#allocation11 + $0x30] sm:$0xff] }
 0x3a3   : > { %v5370_v34 = vadd.f32 %v5285_v19, %v1390_v25  ;;  %v3910_v25 = vld [vmem:[#allocation11 + $0x8] sm:$0xff] }
 0x3a4   : > { %v5373_v3 = vadd.f32 %v5285_v19, %v1392_v15 }
 0x3a5   : > { %v1642_v41 = vpack.c.bf16 %v5370_v34, %v5370_v34 }
 0x3a6   : > { %v1643_v46 = vpack.c.bf16 %v5373_v3, %v5373_v3 }
 0x3a7   : > { %v1660_v52 = vunpack.c.l.b16 %v1642_v41 }
 0x3a8   : > { %v1661_v53 = vunpack.c.l.b16 %v1643_v46 }
 0x3a9   : > { %v1673_v59 = vrot.slane %v1660_v52, 4 }
 0x3aa   : > { %v1167_v63 = vpop.xlane.xlu1 %1166  ;;  %v1676_v44 = vrot.slane %v1661_v53, 3 }
 0x3ab   : > { %v1185_v33 = vmul.f32 %v1167_v63, %v4866_v51  ;;  %v1675_v28 = vsel %vm1674_vm5, %v1673_v59, %v5353_v45  ;;  %v3914_v45 = vld [vmem:[#allocation11 + $0x28] sm:$0xff] }
 0x3ac   : > { %v1678_v42 = vsel %vm1677_vm6, %v1676_v44, %v1675_v28 }
 0x3ad   : > { %v1201_v27 = vadd.f32 1e-05, %v1185_v33 }
 0x3af   : > { %4182 = vrsqrt.f32 %v1201_v27  ;;  %vm1340_vm13 = vweird.f32 %v1201_v27 }
 0x3b2   : > { %v1149_v47 = vpop.xlane.xlu1 %1148 }
 0x3b3   : > { %v1176_v14 = vmul.f32 %v1149_v47, %v4866_v51 }
 0x3b5   : > { %v4183_v60 = vpop.eup %4182  ;;  %v1192_v17 = vadd.f32 1e-05, %v1176_v14  ;;  %v3916_v14 = vld [vmem:[#allocation11 + $0x38] sm:$0xff] }
 0x3b6   : > { %v1335_v22 = vmul.f32 %v4183_v60, %v1201_v27  ;;  %vm1341_vm12 = vweird.f32 %v4183_v60  ;;  %1735 = vmatpush.bf16.msra.mxu3 %v3916_v14 }
 0x3b7   : > { %4184 = vrsqrt.f32 %v1192_v17  ;;  %vm1342_vm14 = vmor %vm1340_vm13, %vm1341_vm12  ;;  %vm1250_vm3 = vweird.f32 %v1192_v17 }
 0x3b8   : > { %v1336_v12 = vmul.f32 %v4183_v60, %v1335_v22  ;;  %v3911_v22 = vld [vmem:[#allocation11 + $0x10] sm:$0xff] }
 0x3ba   : > { %v1337_v9 = vmul.f32 0.5, %v1336_v12  ;;  %1736 = vmatpush.bf16.msra.mxu3 %v3915_v50  ;;  %v1157_v15 = vpop.xlane.xlu1 %1156 }
 0x3bc   : > { %v1338_v2 = vsub.f32 1.5, %v1337_v9 }
 0x3bd   : > { %v4185_v24 = vpop.eup %4184 }
 0x3be   : > { %v1339_v43 = vmul.f32 %v4183_v60, %v1338_v2  ;;  %v1245_v31 = vmul.f32 %v4185_v24, %v1192_v17  ;;  %vm1251_vm15 = vweird.f32 %v4185_v24  ;;  %1737 = vmatpush.bf16.msra.mxu3 %v3914_v45  ;;  %v3912_v17 = vld [vmem:[#allocation11 + $0x18] sm:$0xff]  ;;  %v3909_v2 = vld [vmem:[#allocation11] sm:$0xff] }
 0x3bf   : > { %vm1252_vm4 = vmor %vm1250_vm3, %vm1251_vm15 }
 0x3c0   : > { %v1343_v30 = vsel %vm1342_vm14, %v4183_v60, %v1339_v43  ;;  %v1246_v32 = vmul.f32 %v4185_v24, %v1245_v31  ;;  %v3913_v60 = vld [vmem:[#allocation11 + $0x20] sm:$0xff]  ;;  %vm1683_vm14 = vcmask 1047559  }
 0x3c1   : > { %v1377_v57 = vmul.f32 %v1343_v30, %v5268_v26 }
 0x3c2   : > { %v1247_v61 = vmul.f32 0.5, %v1246_v32  ;;  %1738 = vmatpush.bf16.msra.mxu3 %v3913_v60 }
 0x3c3   : > { %v1394_v56 = vmul.f32 %v5278_v40, %v1377_v57 }
 0x3c4   : > { %v1248_v16 = vsub.f32 1.5, %v1247_v61 }
 0x3c5   : > { %v5382_v62 = vadd.f32 %v5285_v19, %v1394_v56 }
 0x3c6   : > { %v1249_v55 = vmul.f32 %v4185_v24, %v1248_v16  ;;  %1739 = vmatpush.bf16.msra.mxu3 %v3912_v17 }
 0x3c7   : > { %v1644_v26 = vpack.c.bf16 %v5382_v62, %v5382_v62 }
 0x3c8   : > { %v1253_v0 = vsel %vm1252_vm4, %v4185_v24, %v1249_v55 }
 0x3c9   : > { %v1368_v29 = vmul.f32 %v1253_v0, %v5275_v20  ;;  %v1662_v63 = vunpack.c.l.b16 %v1644_v26 }
 0x3ca   : > { %1740 = vmatpush.bf16.msra.mxu3 %v3911_v22 }
 0x3cb   : > { %v1582_v33 = vpop.f32.mrf.mxu2  ;;  %v1385_v38 = vmul.f32 %v5278_v40, %v1368_v29  ;;  %v1679_v27 = vrot.slane %v1662_v63, 2 }
 0x3cc   : > { %v5399_v11 = vadd.f32 %v1582_v33, %v5392_v58 }
 0x3cd   : > { %v1402_v47 = vadd.f32 %v5285_v19, %v1385_v38  ;;  %v5404_v13 = vsel %vm1680_vm7, %v1679_v27, %v1678_v42 }
 0x3ce   : > { %1741 = vmatpush.bf16.msra.mxu3 %v3910_v25 }
 0x3cf   : > { %v1416_v20 = vpack.c.bf16 %v5318_v39, %v1402_v47  ;;  %v1180_v39 = vmul.f32 %v1157_v15, %v4866_v51 }
 0x3d1   : > { %1542 = vmatmul.bf16.gmra.mxu1 %v1416_v20  ;;  %1591 = vmatmul.bf16.gmra.mxu2 %v1416_v20  ;;  %v1196_v43 = vadd.f32 1e-05, %v1180_v39 }
 0x3d2   : > { %1742 = vmatpush.bf16.msra.mxu3 %v3909_v2 }
 0x3d3   : > { %v5411_v38 = vpop.f32.mrf.mxu2  ;;  %vm1290_vm3 = vweird.f32 %v1196_v43 }
 0x3f2   : > { %v1161_v57 = vpop.xlane.xlu1 %1160 }
 0x3f3   : > { %v1182_v16 = vmul.f32 %v1161_v57, %v4866_v51 }
 0x3f5   : > { %v1198_v44 = vadd.f32 1e-05, %v1182_v16 }
 0x402   : > { %v1171_v12 = vpop.xlane.xlu2 %1170 }
 0x403   : > { %v1187_v9 = vmul.f32 %v1171_v12, %v4866_v51  ;;  %v1165_v12 = vpop.xlane.xlu0 %1164 }
 0x405   : > { %v1203_v24 = vadd.f32 1e-05, %v1187_v9 }
 0x407   : > { %4186 = vrsqrt.f32 %v1203_v24  ;;  %vm1360_vm9 = vweird.f32 %v1203_v24 }
 0x408   : > { %4188 = vrsqrt.f32 %v1196_v43 }
 0x40a   : > { %v1153_v31 = vpop.xlane.xlu2 %1152 }
 0x40b   : > { %v1178_v41 = vmul.f32 %v1153_v31, %v4866_v51 }
 0x40d   : > { %v4187_v30 = vpop.eup %4186  ;;  %v1194_v32 = vadd.f32 1e-05, %v1178_v41  ;;  %v1184_v41 = vmul.f32 %v1165_v12, %v4866_v51 }
 0x40e   : > { %v1355_v46 = vmul.f32 %v4187_v30, %v1203_v24  ;;  %v4189_v56 = vpop.eup %4188  ;;  %vm1361_vm8 = vweird.f32 %v4187_v30 }
 0x40f   : > { %4190 = vrsqrt.f32 %v1194_v32  ;;  %v1285_v53 = vmul.f32 %v4189_v56, %v1196_v43  ;;  %vm1362_vm10 = vmor %vm1360_vm9, %vm1361_vm8  ;;  %vm1270_vm12 = vweird.f32 %v1194_v32  ;;  %vm1291_vm15 = vweird.f32 %v4189_v56 }
 0x410   : > { %v1356_v61 = vmul.f32 %v4187_v30, %v1355_v46  ;;  %4192 = vrsqrt.f32 %v1198_v44  ;;  %vm1292_vm4 = vmor %vm1290_vm3, %vm1291_vm15  ;;  %vm1310_vm9 = vweird.f32 %v1198_v44 }
 0x411   : > { %v1286_v29 = vmul.f32 %v4189_v56, %v1285_v53 }
 0x412   : > { %v1357_v52 = vmul.f32 0.5, %v1356_v61 }
 0x413   : > { %v1287_v47 = vmul.f32 0.5, %v1286_v29 }
 0x414   : > { %v1358_v55 = vsub.f32 1.5, %v1357_v52  ;;  %v1200_v52 = vadd.f32 1e-05, %v1184_v41 }
 0x415   : > { %v4191_v26 = vpop.eup %4190  ;;  %v1288_v60 = vsub.f32 1.5, %v1287_v47 }
 0x416   : > { %v1359_v59 = vmul.f32 %v4187_v30, %v1358_v55  ;;  %v1265_v0 = vmul.f32 %v4191_v26, %v1194_v32  ;;  %vm1271_vm11 = vweird.f32 %v4191_v26  ;;  %v4193_v22 = vpop.eup %4192  ;;  %4194 = vrsqrt.f32 %v1200_v52 }
 0x417   : > { %vm1272_vm13 = vmor %vm1270_vm12, %vm1271_vm11  ;;  %v1289_v24 = vmul.f32 %v4189_v56, %v1288_v60  ;;  %v1305_v31 = vmul.f32 %v4193_v22, %v1198_v44  ;;  %vm1311_vm8 = vweird.f32 %v4193_v22  ;;  %vm1330_vm12 = vweird.f32 %v1200_v52 }
 0x418   : > { %v1363_v63 = vsel %vm1362_vm10, %v4187_v30, %v1359_v59  ;;  %v1266_v33 = vmul.f32 %v4191_v26, %v1265_v0  ;;  %v1169_v59 = vpop.xlane.xlu0 %1168  ;;  %vm1312_vm10 = vmor %vm1310_vm9, %vm1311_vm8  ;;  %vm1791_vm8 = vcmask 523264   ;;  %vm1877_vm9 = vcmask 130112  }
 0x419   : > { %v1379_v28 = vmul.f32 %v1363_v63, %v5334_v7  ;;  %v1306_v57 = vmul.f32 %v4193_v22, %v1305_v31  ;;  %v1293_v61 = vsel %vm1292_vm4, %v4189_v56, %v1289_v24 }
 0x41a   : > { %v1267_v27 = vmul.f32 0.5, %v1266_v33  ;;  %v1372_v55 = vmul.f32 %v1293_v61, %v5288_v5 }
 0x41b   : > { %v1396_v42 = vmul.f32 %v5278_v40, %v1379_v28 }
 0x41c   : > { %v1268_v20 = vsub.f32 1.5, %v1267_v27  ;;  %v1389_v43 = vmul.f32 %v5278_v40, %v1372_v55  ;;  %v4195_v0 = vpop.eup %4194 }
 0x41d   : > { %v5416_v14 = vadd.f32 %v5285_v19, %v1396_v42  ;;  %v1325_v63 = vmul.f32 %v4195_v0, %v1200_v52  ;;  %vm1331_vm11 = vweird.f32 %v4195_v0  ;;  %v4125_v52 = vld [vmem:[#allocation9 + $0x6] ss:$0 sm:$0xff] }
 0x41e   : > { %v1269_v50 = vmul.f32 %v4191_v26, %v1268_v20  ;;  %v1406_v56 = vadd.f32 %v5285_v19, %v1389_v43 }
 0x41f   : > { %v1645_v45 = vpack.c.bf16 %v5416_v14, %v5416_v14  ;;  %v1326_v27 = vmul.f32 %v4195_v0, %v1325_v63 }
 0x420   : > { %v1273_v17 = vsel %vm1272_vm13, %v4191_v26, %v1269_v50  ;;  %v1418_v28 = vpack.c.bf16 %v5370_v34, %v1406_v56  ;;  %vm1332_vm13 = vmor %vm1330_vm12, %vm1331_vm11  ;;  %vm1909_vm11 = vcmask 130048  }
 0x421   : > { %v1663_v25 = vunpack.c.l.b16 %v1645_v45  ;;  %v1370_v15 = vmul.f32 %v1273_v17, %v5346_v23  ;;  %v1327_v47 = vmul.f32 0.5, %v1326_v27 }
 0x422   : > { %v1587_v7 = vpop.f32.mrf.mxu2 }
 0x423   : > { %v5422_v39 = vadd.f32 %v1587_v7, %v5392_v58  ;;  %v1682_v9 = vrot.slane %v1663_v25, 1  ;;  %v1387_v2 = vmul.f32 %v5278_v40, %v1370_v15  ;;  %v1328_v45 = vsub.f32 1.5, %v1327_v47 }
 0x425   : > { %v1684_v30 = vsel %vm1683_vm14, %v1682_v9, %v5404_v13  ;;  %v1404_v32 = vadd.f32 %v5285_v19, %v1387_v2  ;;  %v1307_v13 = vmul.f32 0.5, %v1306_v57  ;;  %v1329_v44 = vmul.f32 %v4195_v0, %v1328_v45 }
 0x426   : > { %v1685_v23 = vpack.c.b16 %v1684_v30, %v1684_v30 }
 0x427   : > { %v1417_v46 = vpack.c.bf16 %v5330_v35, %v1404_v32  ;;  %v1308_v26 = vsub.f32 1.5, %v1307_v13  ;;  %v1186_v35 = vmul.f32 %v1169_v59, %v4866_v51 }
 0x428   : > { %1743 = vmatmul.bf16.vlgmr.msra.gmra.mxu3 %v1685_v23 }
 0x429   : > { %1547 = vmatmul.bf16.gmra.mxu1 %v1417_v46  ;;  %1596 = vmatmul.bf16.gmra.mxu2 %v1417_v46  ;;  %v1309_v29 = vmul.f32 %v4193_v22, %v1308_v26  ;;  %v1202_v33 = vadd.f32 1e-05, %v1186_v35  ;;  %v1533_v46 = vpop.f32.mrf.mxu1 }
 0x42a   : > { %v1589_v16 = vpop.f32.mrf.mxu2 }
 0x42b   : > { %v5431_v53 = vadd.f32 %v1589_v16, %v5392_v58  ;;  %v1313_v5 = vsel %vm1312_vm10, %v4193_v22, %v1309_v29  ;;  %4196 = vrsqrt.f32 %v1202_v33  ;;  %v1333_v22 = vsel %vm1332_vm13, %v4195_v0, %v1329_v44 }
 0x42c   : > { %v1374_v42 = vmul.f32 %v1313_v5, %v5307_v21  ;;  %v1376_v21 = vmul.f32 %v1333_v22, %v5260_v18  ;;  %vm1350_vm3 = vweird.f32 %v1202_v33 }
 0x42e   : > { %v1391_v20 = vmul.f32 %v5278_v40, %v1374_v42  ;;  %v1393_v12 = vmul.f32 %v5278_v40, %v1376_v21 }
 0x430   : > { %v1408_v60 = vadd.f32 %v5285_v19, %v1391_v20 }
 0x431   : > { %v4197_v50 = vpop.eup %4196  ;;  %v1535_v57 = vpop.f32.mrf.mxu1 }
 0x432   : > { %v1345_v17 = vmul.f32 %v4197_v50, %v1202_v33  ;;  %v1419_v7 = vpack.c.bf16 %v5373_v3, %v1408_v60  ;;  %vm1351_vm15 = vweird.f32 %v4197_v50  ;;  %v1410_v3 = vadd.f32 %v5285_v19, %v1393_v12 }
 0x433   : > { %vm1352_vm4 = vmor %vm1350_vm3, %vm1351_vm15 }
 0x434   : > { %v1346_v34 = vmul.f32 %v4197_v50, %v1345_v17  ;;  %v1420_v31 = vpack.c.bf16 %v5382_v62, %v1410_v3  ;;  %v5456_v62 = vperm.slane %v5387_v8, 0 }
 0x436   : > { %v1347_v25 = vmul.f32 0.5, %v1346_v34 }
 0x438   : > { %v1348_v15 = vsub.f32 1.5, %v1347_v25 }
 0x439   : > { %1552 = vmatmul.bf16.gmra.mxu1 %v1418_v28  ;;  %1601 = vmatmul.bf16.gmra.mxu2 %v1418_v28  ;;  %v1538_v55 = vpop.f32.mrf.mxu1 }
 0x43a   : > { %v1349_v2 = vmul.f32 %v4197_v50, %v1348_v15  ;;  %v1539_v33 = vadd.f32 %v1538_v55, %v5456_v62 }
 0x43c   : > { %v1353_v41 = vsel %vm1352_vm4, %v4197_v50, %v1349_v2 }
 0x43d   : > { %v1378_v18 = vmul.f32 %v1353_v41, %v5350_v49 }
 0x43f   : > { %v1395_v30 = vmul.f32 %v5278_v40, %v1378_v18 }
 0x441   : > { %v1412_v32 = vadd.f32 %v5285_v19, %v1395_v30  ;;  %v1534_v19 = vadd.f32 %v1533_v46, %v5456_v62  ;;  %v1540_v35 = vpop.f32.mrf.mxu1 }
 0x442   : > { %v1541_v60 = vadd.f32 %v1540_v35, %v5456_v62 }
 0x443   : > { %v1421_v23 = vpack.c.bf16 %v5416_v14, %v1412_v32  ;;  %v1536_v14 = vadd.f32 %v1535_v57, %v5456_v62 }
 0x449   : > { %1557 = vmatmul.bf16.gmra.mxu1 %v1419_v7  ;;  %1606 = vmatmul.bf16.gmra.mxu2 %v1419_v7 }
 0x44e   : > { %v1543_v29 = vpop.f32.mrf.mxu1 }
 0x454   : > { %v1592_v9 = vpop.f32.mrf.mxu2 }
 0x455   : > { %v5445_v24 = vadd.f32 %v1592_v9, %v5392_v58  ;;  %v1544_v9 = vadd.f32 %v1543_v29, %v5456_v62 }
 0x456   : > { %v1545_v27 = vpop.f32.mrf.mxu1 }
 0x457   : > { %v1546_v47 = vadd.f32 %v1545_v27, %v5456_v62 }
 0x459   : > { %1562 = vmatmul.bf16.gmra.mxu1 %v1420_v31  ;;  %1611 = vmatmul.bf16.gmra.mxu2 %v1420_v31 }
 0x45c   : > { %v5453_v61 = vpop.f32.mrf.mxu2 }
 0x469   : > { %1567 = vmatmul.bf16.gmra.mxu1 %v1421_v23  ;;  %1616 = vmatmul.bf16.gmra.mxu2 %v1421_v23 }
 0x4a6   : > { %v1548_v44 = vpop.f32.mrf.mxu1 }
 0x4a7   : > { %v1549_v46 = vadd.f32 %v1548_v44, %v5456_v62 }
 0x4ab   : > { %v1744_v16 = vpop.f32.mrf.mxu3 }
 0x4ac   : > { %v5458_v13 = vadd.f32 %v4125_v52, %v1744_v16  ;;  %v1597_v49 = vpop.f32.mrf.mxu2 }
 0x4ad   : > { %v5461_v40 = vadd.f32 %v1597_v49, %v5392_v58 }
 0x4ae   : > { %v1759_v43 = vperm.slane %v5458_v13, 0  ;;  %v1752_v56 = vrot.slane %v5458_v13, 1  ;;  %v1753_v5 = vrot.slane %v5458_v13, 2  ;;  %v1754_v34 = vrot.slane %v5458_v13, 3  ;;  %v1550_v22 = vpop.f32.mrf.mxu1 }
 0x4af   : > { %v1551_v25 = vadd.f32 %v1550_v22, %v5456_v62  ;;  %v1755_v31 = vrot.slane %v5458_v13, 4 }
 0x4b0   : > { %v1776_v26 = vmul.f32 %v1759_v43, %v1536_v14  ;;  %v1775_v59 = vmul.f32 %v1759_v43, %v1534_v19  ;;  %v1760_v63 = vperm.slane %v1752_v56, 0  ;;  %v1761_v42 = vperm.slane %v1753_v5, 0 }
 0x4b1   : > { %v1762_v21 = vperm.slane %v1754_v34, 0  ;;  %v1763_v18 = vperm.slane %v1755_v31, 0 }
 0x4b2   : > { %2144 = vrot.lane.b32.xlu2 %v1776_v26, %s4586_s25  ;;  %2142 = vrot.lane.b32.xlu1 %v1775_v59, %s4586_s25  ;;  %v1795_v8 = vsel %vm1791_vm8, %v1776_v26, 0.0  ;;  %v1777_v28 = vmul.f32 %v1760_v63, %v1539_v33  ;;  %v1780_v20 = vmul.f32 %v1761_v42, %v1546_v47  ;;  %v1792_v45 = vsel %vm1791_vm8, %v1775_v59, 0.0 }
 0x4b3   : > { %v1746_v0 = vpop.f32.mrf.mxu3  ;;  %1796 = vadd.xlane.f32.xlu0 %v1795_v8  ;;  %v1778_v17 = vmul.f32 %v1760_v63, %v1541_v60  ;;  %v1782_v15 = vmul.f32 %v1762_v21, %v1551_v25  ;;  %v1779_v2 = vmul.f32 %v1761_v42, %v1544_v9  ;;  %v1781_v57 = vmul.f32 %v1762_v21, %v1549_v46 }
 0x4b4   : > { %v1798_v50 = vsel %vm1791_vm8, %v1777_v28, 0.0  ;;  %v1807_v23 = vsel %vm1791_vm8, %v1780_v20, 0.0  ;;  %v1756_v26 = vrot.slane %v5458_v13, 5  ;;  %v1748_v8 = vlaneseq }
 0x4b5   : > { %v1801_v7 = vsel %vm1791_vm8, %v1778_v17, 0.0  ;;  %v1813_v12 = vsel %vm1791_vm8, %v1782_v15, 0.0  ;;  %v1804_v32 = vsel %vm1791_vm8, %v1779_v2, 0.0  ;;  %v1810_v16 = vsel %vm1791_vm8, %v1781_v57, 0.0 }
 0x4b6   : > { %v1553_v3 = vpop.f32.mrf.mxu1  ;;  %v1764_v0 = vperm.slane %v1756_v26, 0  ;;  %v5503_v63 = vand.u32 127, %v1748_v8 }
 0x4b7   : > { %v1554_v41 = vadd.f32 %v1553_v3, %v5456_v62  ;;  %v1757_v3 = vrot.slane %v5458_v13, 6 }
 0x4b8   : > { %v5509_v27 = vadd.s32 4294967288, %v5503_v63  ;;  %vm1750_vm10 = vcmp.le.s32.totalorder %v5503_v63, 8 }
 0x4b9   : > { %v1783_v30 = vmul.f32 %v1763_v18, %v1554_v41 }
 0x4bb   : > { %v1816_v49 = vsel %vm1791_vm8, %v1783_v30, 0.0 }
 0x4be   : > { %v1555_v52 = vpop.f32.mrf.mxu1 }
 0x4bf   : > { %v1556_v55 = vadd.f32 %v1555_v52, %v5456_v62 }
 0x4c1   : > { %v1784_v14 = vmul.f32 %v1763_v18, %v1556_v55  ;;  %v1765_v18 = vperm.slane %v1757_v3, 0 }
 0x4c3   : > { %v1819_v9 = vsel %vm1791_vm8, %v1784_v14, 0.0 }
 0x4c6   : > { %v1558_v19 = vpop.f32.mrf.mxu1 }
 0x4c7   : > { %2146 = vrot.lane.b32.xlu0 %v1777_v28, %s4586_s25  ;;  %v1559_v29 = vadd.f32 %v1558_v19, %v5456_v62 }
 0x4c9   : > { %v1785_v5 = vmul.f32 %v1764_v0, %v1559_v29 }
 0x4cb   : > { %v1822_v41 = vsel %vm1791_vm8, %v1785_v5, 0.0 }
 0x4ce   : > { %v1560_v43 = vpop.f32.mrf.mxu1 }
 0x4cf   : > { %2152 = vrot.lane.b32.xlu0 %v1780_v20, %s4586_s25  ;;  %v1561_v59 = vadd.f32 %v1560_v43, %v5456_v62 }
 0x4d1   : > { %v1786_v56 = vmul.f32 %v1764_v0, %v1561_v59 }
 0x4d3   : > { %v1825_v46 = vsel %vm1791_vm8, %v1786_v56, 0.0 }
 0x4db   : > { %1799 = vadd.xlane.f32.xlu2 %v1798_v50 }
 0x4dc   : > { %1793 = vadd.xlane.f32.xlu1 %v1792_v45 }
 0x4e4   : > { %1802 = vadd.xlane.f32.xlu1 %v1801_v7 }
 0x4f3   : > { %2148 = vrot.lane.b32.xlu2 %v1778_v17, %s4586_s25 }
 0x4f9   : > { %1814 = vadd.xlane.f32.xlu0 %v1813_v12  ;;  %v1563_v12 = vpop.f32.mrf.mxu1 }
 0x4fd   : > { %2150 = vrot.lane.b32.xlu1 %v1779_v2, %s4586_s25 }
 0x501   : > { %v1565_v2 = vpop.f32.mrf.mxu1 }
 0x502   : > { %v1566_v31 = vadd.f32 %v1565_v2, %v5456_v62 }
 0x50c   : > { %v5505_v33 = vpop.permute.xlu2 %2144 }
 0x50d   : > { %2158 = vrot.lane.b32.xlu0 %v1783_v30, %s4586_s25  ;;  %v1788_v30 = vmul.f32 %v1765_v18, %v1566_v31 }
 0x51c   : > { %1805 = vadd.xlane.f32.xlu2 %v1804_v32  ;;  %v1831_v32 = vsel %vm1791_vm8, %v1788_v30, 0.0 }
 0x524   : > { %v5498_v35 = vpop.permute.xlu1 %2142 }
 0x526   : > { %v1797_v28 = vpop.xlane.xlu0 %1796 }
 0x527   : > { %1808 = vadd.xlane.f32.xlu1 %v1807_v23  ;;  %v1841_v42 = vmul.f32 0.125, %v1797_v28  ;;  %v1564_v23 = vadd.f32 %v1563_v12, %v5456_v62 }
 0x529   : > { %v1876_v50 = vperm.slane %v1841_v42, %v5509_v27  ;;  %v1787_v52 = vmul.f32 %v1765_v18, %v1564_v23 }
 0x52b   : > { %v1828_v55 = vsel %vm1791_vm8, %v1787_v52, 0.0 }
 0x52f   : > { %1811 = vadd.xlane.f32.xlu1 %v1810_v16  ;;  %v1758_v16 = vrot.slane %v5458_v13, 7 }
 0x534   : > { %2154 = vrot.lane.b32.xlu2 %v1781_v57, %s4586_s25  ;;  %v1568_v57 = vpop.f32.mrf.mxu1 }
 0x537   : > { %1817 = vadd.xlane.f32.xlu0 %v1816_v49  ;;  %v1569_v49 = vadd.f32 %v1568_v57, %v5456_v62 }
 0x539   : > { %v2147_v0 = vpop.permute.xlu0 %2146 }
 0x53c   : > { %2160 = vrot.lane.b32.xlu2 %v1784_v14, %s4586_s25  ;;  %v1570_v19 = vpop.f32.mrf.mxu1  ;;  %v1766_v14 = vperm.slane %v1758_v16, 0 }
 0x53d   : > { %v1571_v26 = vadd.f32 %v1570_v19, %v5456_v62 }
 0x53e   : > { %v1789_v43 = vmul.f32 %v1766_v14, %v1569_v49 }
 0x53f   : > { %v5532_v59 = vmul.f32 %v1766_v14, %v1571_v26 }
 0x540   : > { %v1834_v12 = vsel %vm1791_vm8, %v1789_v43, 0.0 }
 0x541   : > { %v2153_v29 = vpop.permute.xlu0 %2152 }
 0x542   : > { %v2205_v3 = vsel %vm1791_vm8, %v2153_v29, 0.0 }
 0x548   : > { %2156 = vrot.lane.b32.xlu1 %v1782_v15, %s4586_s25 }
 0x54b   : > { %2164 = vrot.lane.b32.xlu0 %v1786_v56, %s4586_s25 }
 0x54e   : > { %v1800_v60 = vpop.xlane.xlu2 %1799 }
 0x54f   : > { %v1794_v47 = vpop.xlane.xlu1 %1793  ;;  %v1842_v44 = vmul.f32 0.125, %v1800_v60 }
 0x550   : > { %v1840_v20 = vmul.f32 0.125, %v1794_v47  ;;  %2162 = vrot.lane.b32.xlu1 %v1785_v5, %s4586_s25 }
 0x551   : > { %v1879_v22 = vperm.slane %v1842_v44, %v5503_v63 }
 0x552   : > { %v1874_v45 = vperm.slane %v1840_v20, %v5503_v63 }
 0x554   : > { %v1878_v17 = vsel %vm1877_vm9, %v1876_v50, %v1874_v45 }
 0x556   : > { %v2149_v13 = vpop.permute.xlu2 %2148 }
 0x557   : > { %v1803_v7 = vpop.xlane.xlu1 %1802  ;;  %v2199_v18 = vsel %vm1791_vm8, %v2149_v13, 0.0 }
 0x558   : > { %v1843_v34 = vmul.f32 0.125, %v1803_v7 }
 0x55a   : > { %v1880_v25 = vperm.slane %v1843_v34, %v5509_v27 }
 0x55c   : > { %v1881_v21 = vsel %vm1877_vm9, %v1880_v25, %v1879_v22 }
 0x55d   : > { %v1900_v15 = vsel %vm1665_vm0, %v1881_v21, %v1878_v17 }
 0x565   : > { %1820 = vadd.xlane.f32.xlu2 %v1819_v9  ;;  %v2193_v9 = vsel %vm1791_vm8, %v5505_v33, 0.0 }
 0x56c   : > { %v1815_v50 = vpop.xlane.xlu0 %1814 }
 0x56d   : > { %1823 = vadd.xlane.f32.xlu2 %v1822_v41  ;;  %v1847_v17 = vmul.f32 0.125, %v1815_v50 }
 0x56f   : > { %v2151_v56 = vpop.permute.xlu1 %2150  ;;  %v1886_v34 = vperm.slane %v1847_v17, %v5509_v27 }
 0x575   : > { %1832 = vadd.xlane.f32.xlu0 %v1831_v32 }
 0x57a   : > { %1826 = vadd.xlane.f32.xlu1 %v1825_v46  ;;  %v2202_v46 = vsel %vm1791_vm8, %v2151_v56, 0.0 }
 0x57f   : > { %v2159_v2 = vpop.permute.xlu0 %2158 }
 0x582   : > { %1829 = vadd.xlane.f32.xlu1 %v1828_v55  ;;  %v2214_v55 = vsel %vm1791_vm8, %v2159_v2, 0.0 }
 0x585   : > { %2166 = vrot.lane.b32.xlu2 %v1787_v52, %s4586_s25 }
 0x589   : > { %2170 = vrot.lane.b32.xlu0 %v1789_v43, %s4586_s25 }
 0x58d   : > { %2172 = vrot.lane.b32.xlu2 %v5532_v59, %s4586_s25 }
 0x58f   : > { %v1806_v28 = vpop.xlane.xlu2 %1805 }
 0x590   : > { %v1844_v5 = vmul.f32 0.125, %v1806_v28 }
 0x592   : > { %v1882_v20 = vperm.slane %v1844_v5, %v5503_v63 }
 0x597   : > { %v2155_v31 = vpop.permute.xlu2 %2154 }
 0x598   : > { %v2208_v32 = vsel %vm1791_vm8, %v2155_v31, 0.0 }
 0x59a   : > { %v1809_v42 = vpop.xlane.xlu1 %1808 }
 0x59b   : > { %v1845_v47 = vmul.f32 0.125, %v1809_v42  ;;  %2168 = vrot.lane.b32.xlu1 %v1788_v30, %s4586_s25  ;;  %v2196_v30 = vsel %vm1791_vm8, %v2147_v0, 0.0  ;;  %s4508_s25 = scalar_lea.hbm %s6015_s11, 32 }
 0x59c   : > { %p4510_p6 = scmp.lt.s32.totalorder %s4508_s25, %s4504_s16 }
 0x59d   : > { %v1883_v62 = vperm.slane %v1845_v47, %v5509_v27 }
 0x59e   : > { %p4511_p7 = por %p4510_p6, %p4509_p5 }
 0x59f   : > { %v1884_v45 = vsel %vm1877_vm9, %v1883_v62, %v1882_v20  ;;  %v2161_v52 = vpop.permute.xlu2 %2160 }
 0x5a0   : > { %v1901_v60 = vsel %vm1668_vm1, %v1884_v45, %v1900_v15  ;;  %v2190_v15 = vsel %vm1791_vm8, %v5498_v35, 0.0  ;;  %v2217_v16 = vsel %vm1791_vm8, %v2161_v52, 0.0  ;;  %p4512_p8 = pnand %p4511_p7, %p4507_p11 }
 0x5a2   : > { %v1812_v44 = vpop.xlane.xlu1 %1811 }
 0x5a3   : > { %v1846_v7 = vmul.f32 0.125, %v1812_v44 }
 0x5a5   : > { %v1885_v22 = vperm.slane %v1846_v7, %v5503_v63  ;;  %v1837_v7 = vsel %vm1791_vm8, %v5532_v59, 0.0 }
 0x5a7   : > { %v1887_v25 = vsel %vm1877_vm9, %v1886_v34, %v1885_v22 }
 0x5a8   : > { %v1902_v21 = vsel %vm1671_vm2, %v1887_v25, %v1901_v60 }
 0x5aa   : > { %v1818_v41 = vpop.xlane.xlu0 %1817 }
 0x5ab   : > { %v1848_v49 = vmul.f32 0.125, %v1818_v41 }
 0x5ad   : > { %v1888_v0 = vperm.slane %v1848_v49, %v5503_v63 }
 0x5b3   : > { %1835 = vadd.xlane.f32.xlu0 %v1834_v12 }
 0x5b6   : > { %2194 = vadd.xlane.f32.xlu2 %v2193_v9 }
 0x5ba   : > { %v2157_v33 = vpop.permute.xlu1 %2156 }
 0x5bb   : > { %2191 = vadd.xlane.f32.xlu0 %v2190_v15  ;;  %v2211_v35 = vsel %vm1791_vm8, %v2157_v33, 0.0 }
 0x5bd   : > { %v2165_v23 = vpop.permute.xlu0 %2164 }
 0x5be   : > { %2206 = vadd.xlane.f32.xlu2 %v2205_v3  ;;  %v2223_v57 = vsel %vm1791_vm8, %v2165_v23, 0.0 }
 0x5c2   : > { %v2163_v19 = vpop.permute.xlu1 %2162 }
 0x5c3   : > { %2200 = vadd.xlane.f32.xlu0 %v2199_v18  ;;  %v2220_v26 = vsel %vm1791_vm8, %v2163_v19, 0.0 }
 0x5c5   : > { %2197 = vadd.xlane.f32.xlu1 %v2196_v30 }
 0x5c6   : > { %2209 = vadd.xlane.f32.xlu2 %v2208_v32 }
 0x5cb   : > { %2203 = vadd.xlane.f32.xlu0 %v2202_v46 }
 0x5cd   : > { %2212 = vadd.xlane.f32.xlu1 %v2211_v35 }
 0x5ce   : > { %2224 = vadd.xlane.f32.xlu2 %v2223_v57 }
 0x5d3   : > { %2218 = vadd.xlane.f32.xlu0 %v2217_v16 }
 0x5d5   : > { %2215 = vadd.xlane.f32.xlu1 %v2214_v55 }
 0x5d8   : > { %v1821_v14 = vpop.xlane.xlu2 %1820 }
 0x5d9   : > { %v1849_v43 = vmul.f32 0.125, %v1821_v14 }
 0x5db   : > { %v1889_v13 = vperm.slane %v1849_v43, %v5509_v27  ;;  %2221 = vadd.xlane.f32.xlu0 %v2220_v26 }
 0x5dd   : > { %v1890_v56 = vsel %vm1877_vm9, %v1889_v13, %v1888_v0 }
 0x5de   : > { %v1903_v29 = vsel %vm1674_vm5, %v1890_v56, %v1902_v21 }
 0x5e0   : > { %v1824_v28 = vpop.xlane.xlu2 %1823 }
 0x5e1   : > { %v1850_v47 = vmul.f32 0.125, %v1824_v28 }
 0x5e3   : > { %v1891_v50 = vperm.slane %v1850_v47, %v5503_v63 }
 0x5e8   : > { %v2167_v5 = vpop.permute.xlu2 %2166  ;;  %v1833_v17 = vpop.xlane.xlu0 %1832 }
 0x5e9   : > { %v2226_v42 = vsel %vm1791_vm8, %v2167_v5, 0.0  ;;  %v1853_v25 = vmul.f32 0.125, %v1833_v17 }
 0x5ea   : > { %2227 = vadd.xlane.f32.xlu2 %v2226_v42 }
 0x5eb   : > { %v1895_v9 = vperm.slane %v1853_v25, %v5509_v27 }
 0x5ed   : > { %v1827_v20 = vpop.xlane.xlu1 %1826 }
 0x5ee   : > { %v1851_v62 = vmul.f32 0.125, %v1827_v20 }
 0x5f0   : > { %v1892_v45 = vperm.slane %v1851_v62, %v5509_v27  ;;  %v2173_v60 = vpop.permute.xlu2 %2172 }
 0x5f1   : > { %v2235_v44 = vsel %vm1791_vm8, %v2173_v60, 0.0 }
 0x5f2   : > { %v1893_v34 = vsel %vm1877_vm9, %v1892_v45, %v1891_v50  ;;  %2236 = vadd.xlane.f32.xlu0 %v2235_v44  ;;  %1838 = vadd.xlane.f32.xlu2 %v1837_v7 }
 0x5f3   : > { %v1904_v22 = vsel %vm1677_vm6, %v1893_v34, %v1903_v29 }
 0x5f5   : > { %v1830_v21 = vpop.xlane.xlu1 %1829 }
 0x5f6   : > { %v1852_v12 = vmul.f32 0.125, %v1830_v21 }
 0x5f8   : > { %v1894_v2 = vperm.slane %v1852_v12, %v5503_v63 }
 0x5fa   : > { %v1896_v15 = vsel %vm1877_vm9, %v1895_v9, %v1894_v2 }
 0x5fb   : > { %v1905_v3 = vsel %vm1680_vm7, %v1896_v15, %v1904_v22  ;;  %v2171_v41 = vpop.permute.xlu0 %2170 }
 0x5fc   : > { %v2232_v18 = vsel %vm1791_vm8, %v2171_v41, 0.0 }
 0x60d   : > { %v2169_v31 = vpop.permute.xlu1 %2168 }
 0x60e   : > { %v2229_v59 = vsel %vm1791_vm8, %v2169_v31, 0.0 }
 0x60f   : > { %2230 = vadd.xlane.f32.xlu1 %v2229_v59 }
 0x617   : > { %2233 = vadd.xlane.f32.xlu1 %v2232_v18 }
 0x626   : > { %v1836_v30 = vpop.xlane.xlu0 %1835 }
 0x627   : > { %v1854_v60 = vmul.f32 0.125, %v1836_v30 }
 0x629   : > { %v2195_v33 = vpop.xlane.xlu2 %2194  ;;  %v1897_v7 = vperm.slane %v1854_v60, %v5503_v63 }
 0x62a   : > { %v2239_v55 = vmul.f32 0.125, %v2195_v33 }
 0x62c   : > { %v2271_v13 = vperm.slane %v2239_v55, %v5509_v27 }
 0x62e   : > { %v2192_v32 = vpop.xlane.xlu0 %2191 }
 0x62f   : > { %v2238_v57 = vmul.f32 0.125, %v2192_v32 }
 0x631   : > { %v2207_v52 = vpop.xlane.xlu2 %2206  ;;  %v2270_v14 = vperm.slane %v2238_v57, %v5503_v63 }
 0x632   : > { %v2243_v19 = vmul.f32 0.125, %v2207_v52 }
 0x633   : > { %v2272_v5 = vsel %vm1877_vm9, %v2271_v13, %v2270_v14 }
 0x634   : > { %v2277_v29 = vperm.slane %v2243_v19, %v5509_v27 }
 0x636   : > { %v2201_v23 = vpop.xlane.xlu0 %2200 }
 0x637   : > { %v2241_v16 = vmul.f32 0.125, %v2201_v23 }
 0x638   : > { %v2198_v46 = vpop.xlane.xlu1 %2197 }
 0x639   : > { %v2240_v35 = vmul.f32 0.125, %v2198_v46  ;;  %v2274_v43 = vperm.slane %v2241_v16, %v5509_v27  ;;  %v2210_v62 = vpop.xlane.xlu2 %2209 }
 0x63a   : > { %v2244_v30 = vmul.f32 0.125, %v2210_v62 }
 0x63b   : > { %v2273_v49 = vperm.slane %v2240_v35, %v5503_v63 }
 0x63c   : > { %v2279_v16 = vperm.slane %v2244_v30, %v5503_v63 }
 0x63d   : > { %v2275_v56 = vsel %vm1877_vm9, %v2274_v43, %v2273_v49 }
 0x63e   : > { %v2204_v26 = vpop.xlane.xlu0 %2203  ;;  %v2294_v42 = vsel %vm1665_vm0, %v2275_v56, %v2272_v5 }
 0x63f   : > { %v2242_v0 = vmul.f32 0.125, %v2204_v26 }
 0x640   : > { %v2213_v9 = vpop.xlane.xlu1 %2212 }
 0x641   : > { %v2276_v28 = vperm.slane %v2242_v0, %v5503_v63  ;;  %v2225_v50 = vpop.xlane.xlu2 %2224  ;;  %v2245_v59 = vmul.f32 0.125, %v2213_v9 }
 0x643   : > { %v2278_v47 = vsel %vm1877_vm9, %v2277_v29, %v2276_v28  ;;  %v2280_v46 = vperm.slane %v2245_v59, %v5509_v27  ;;  %v5626_v59 = vshrl.u32 %v1748_v8, 7 }
 0x644   : > { %v2295_v20 = vsel %vm1668_vm1, %v2278_v47, %v2294_v42 }
 0x645   : > { %v2281_v14 = vsel %vm1877_vm9, %v2280_v46, %v2279_v16  ;;  %4094 = vset.pattern.permute.xlu2 %v5626_v59  ;;  %4092 = vset.pattern.permute.xlu1 %v5626_v59 }
 0x646   : > { %v2219_v2 = vpop.xlane.xlu0 %2218  ;;  %v2296_v5 = vsel %vm1671_vm2, %v2281_v14, %v2295_v20 }
 0x647   : > { %v2247_v33 = vmul.f32 0.125, %v2219_v2 }
 0x648   : > { %v2216_v15 = vpop.xlane.xlu1 %2215 }
 0x649   : > { %v2246_v41 = vmul.f32 0.125, %v2216_v15  ;;  %v2283_v49 = vperm.slane %v2247_v33, %v5509_v27 }
 0x64b   : > { %v2282_v35 = vperm.slane %v2246_v41, %v5503_v63 }
 0x64d   : > { %v2284_v0 = vsel %vm1877_vm9, %v2283_v49, %v2282_v35 }
 0x64e   : > { %v2222_v31 = vpop.xlane.xlu0 %2221 }
 0x64f   : > { %v2248_v32 = vmul.f32 0.125, %v2222_v31 }
 0x651   : > { %v2285_v55 = vperm.slane %v2248_v32, %v5503_v63 }
 0x65d   : > { %v2228_v45 = vpop.xlane.xlu2 %2227 }
 0x65e   : > { %v2250_v57 = vmul.f32 0.125, %v2228_v45 }
 0x660   : > { %v2288_v13 = vperm.slane %v2250_v57, %v5503_v63 }
 0x665   : > { %v1839_v17 = vpop.xlane.xlu2 %1838  ;;  %v2237_v52 = vpop.xlane.xlu0 %2236 }
 0x666   : > { %v1855_v44 = vmul.f32 0.125, %v1839_v17  ;;  %v2253_v26 = vmul.f32 0.125, %v2237_v52 }
 0x668   : > { %v1898_v34 = vperm.slane %v1855_v44, %v5509_v27  ;;  %v2292_v47 = vperm.slane %v2253_v26, %v5509_v27 }
 0x66a   : > { %v1899_v22 = vsel %vm1877_vm9, %v1898_v34, %v1897_v7 }
 0x66b   : > { %v1906_v25 = vsel %vm1683_vm14, %v1899_v22, %v1905_v3  ;;  %v2249_v3 = vmul.f32 0.125, %v2225_v50  ;;  %v2297_v50 = vsel %vm1674_vm5, %v2284_v0, %v2296_v5 }
 0x66c   : > { %v1908_v21 = vsel %vm1750_vm10, %v1906_v25, -1e+30 }
 0x66d   : > { %v1910_v12 = vsel %vm1909_vm11, %v1908_v21, -inf  ;;  %v2286_v43 = vperm.slane %v2249_v3, %v5509_v27 }
 0x66e   : > { %1911 = vmax.xlane.f32.xlu2 %v1910_v12 }
 0x66f   : > { %v2287_v29 = vsel %vm1877_vm9, %v2286_v43, %v2285_v55 }
 0x670   : > { %v2298_v45 = vsel %vm1677_vm6, %v2287_v29, %v2297_v50 }
 0x682   : > { %v2231_v18 = vpop.xlane.xlu1 %2230 }
 0x683   : > { %v2251_v23 = vmul.f32 0.125, %v2231_v18 }
 0x685   : > { %v2289_v19 = vperm.slane %v2251_v23, %v5509_v27 }
 0x687   : > { %v2290_v42 = vsel %vm1877_vm9, %v2289_v19, %v2288_v13 }
 0x688   : > { %v2299_v17 = vsel %vm1680_vm7, %v2290_v42, %v2298_v45 }
 0x68a   : > { %v2234_v56 = vpop.xlane.xlu1 %2233 }
 0x68b   : > { %v2252_v28 = vmul.f32 0.125, %v2234_v56 }
 0x68d   : > { %v2291_v62 = vperm.slane %v2252_v28, %v5503_v63 }
 0x68f   : > { %v2293_v60 = vsel %vm1877_vm9, %v2292_v47, %v2291_v62 }
 0x690   : > { %v2300_v44 = vsel %vm1683_vm14, %v2293_v60, %v2299_v17 }
 0x691   : > { %v2302_v7 = vsel %vm1750_vm10, %v2300_v44, -1e+30 }
 0x692   : > { %v2303_v20 = vsel %vm1909_vm11, %v2302_v7, -inf }
 0x693   : > { %2304 = vmax.xlane.f32.xlu1 %v2303_v20 }
 0x6e1   : > { %v1912_v34 = vpop.xlane.xlu2 %1911 }
 0x6e2   : > { %v1913_v27 = vsub.f32 %v1908_v21, %v1912_v34  ;;  %v5631_v21 = vadd.s32 8, %v5626_v59 }
 0x6e4   : > { %v1914_v22 = vmul.f32 1.442695, %v1913_v27  ;;  %4093 = vset.pattern.permute.xlu0 %v5631_v21 }
 0x6e6   : > { %4198 = vpow2.f32 %v1914_v22 }
 0x6ec   : > { %v4199_v25 = vpop.eup %4198 }
 0x6ed   : > { %v1916_v12 = vsel %vm1909_vm11, %v4199_v25, 0.0 }
 0x6ee   : > { %1917 = vadd.xlane.f32.xlu0 %v1916_v12 }
 0x706   : > { %v2305_v9 = vpop.xlane.xlu1 %2304 }
 0x707   : > { %v2306_v2 = vsub.f32 %v2302_v7, %v2305_v9 }
 0x709   : > { %v2307_v15 = vmul.f32 1.442695, %v2306_v2  ;;  %v5674_v2 = vadd.f32 %v5453_v61, %v5392_v58 }
 0x70b   : > { %4200 = vpow2.f32 %v2307_v15 }
 0x711   : > { %v5621_v31 = vpop.eup %4200 }
 0x712   : > { %v2309_v63 = vsel %vm1909_vm11, %v5621_v31, 0.0 }
 0x713   : > { %2310 = vadd.xlane.f32.xlu2 %v2309_v63 }
 0x761   : > { %v1918_v41 = vpop.xlane.xlu0 %1917 }
 0x762   : > { %4202 = vrcp.f32 %v1918_v41  ;;  %v1930_v33 = vand.u32 2147483648, %v1918_v41  ;;  %v1928_v46 = vand.u32 2147483647, %v1918_v41  ;;  %vm1924_vm13 = vweird.f32 %v1918_v41 }
 0x764   : > { %v1931_v3 = vor.u32 1.1754944e-38, %v1930_v33  ;;  %vm1929_vm3 = vcmp.eq.f32.partialorder %v1928_v46, 8.507059e+37 }
 0x768   : > { %v4203_v18 = vpop.eup %4202 }
 0x769   : > { %v1920_v30 = vmul.f32 %v4203_v18, %v1918_v41  ;;  %vm1925_vm12 = vweird.f32 %v4203_v18  ;;  %v5681_v41 = vadd.f32 %v5411_v38, %v5392_v58 }
 0x76a   : > { %vm1926_vm15 = vmor %vm1924_vm13, %vm1925_vm12  ;;  %vm2447_vm12 = vcmask 1048064  }
 0x76b   : > { %v1921_v32 = vsub.f32 1.0, %v1920_v30 }
 0x76d   : > { %v1922_v23 = vmul.f32 %v4203_v18, %v1921_v32 }
 0x76f   : > { %v1923_v8 = vadd.f32 %v4203_v18, %v1922_v23 }
 0x771   : > { %v1927_v35 = vsel %vm1926_vm15, %v4203_v18, %v1923_v8 }
 0x772   : > { %v1932_v57 = vsel %vm1929_vm3, %v1931_v3, %v1927_v35 }
 0x773   : > { %v5634_v52 = vmul.f32 %v4199_v25, %v1932_v57  ;;  %v1599_v25 = vpop.f32.mrf.mxu2 }
 0x775   : > { %v1947_v16 = vperm.slane %v5634_v52, 1  ;;  %v1934_v55 = vperm.slane %v5634_v52, 0  ;;  %v1960_v49 = vperm.slane %v5634_v52, 2  ;;  %v1986_v13 = vperm.slane %v5634_v52, 4 }
 0x776   : > { %v1973_v56 = vperm.slane %v5634_v52, 3  ;;  %v1999_v45 = vperm.slane %v5634_v52, 5  ;;  %v2012_v17 = vperm.slane %v5634_v52, 6  ;;  %v2025_v34 = vperm.slane %v5634_v52, 7 }
 0x777   : > { %1952 = vperm.xlu2 %4094, %v1947_v16   ;;  %1945 = vperm.xlu0 %4093, %v1934_v55  }
 0x778   : > { %1939 = vperm.xlu1 %4092, %v1934_v55  }
 0x77b   : > { %v1602_v9 = vpop.f32.mrf.mxu2 }
 0x77c   : > { %v5691_v3 = vadd.f32 %v1602_v9, %v5392_v58 }
 0x77f   : > { %4097 = vset.pattern.permute.xlu2 %v5631_v21  ;;  %4096 = vset.pattern.permute.xlu0 %v5626_v59 }
 0x780   : > { %4095 = vset.pattern.permute.xlu1 %v5631_v21 }
 0x783   : > { %v5683_v18 = vpop.f32.mrf.mxu2 }
 0x786   : > { %v2311_v19 = vpop.xlane.xlu2 %2310 }
 0x787   : > { %4204 = vrcp.f32 %v2311_v19  ;;  %1971 = vperm.xlu2 %4097, %v1960_v49   ;;  %1965 = vperm.xlu0 %4096, %v1960_v49   ;;  %v2323_v28 = vand.u32 2147483648, %v2311_v19  ;;  %vm2317_vm9 = vweird.f32 %v2311_v19  ;;  %v2321_v5 = vand.u32 2147483647, %v2311_v19 }
 0x788   : > { %1958 = vperm.xlu1 %4095, %v1947_v16  }
 0x789   : > { %v2324_v47 = vor.u32 1.1754944e-38, %v2323_v28  ;;  %vm2322_vm11 = vcmp.eq.f32.partialorder %v2321_v5, 8.507059e+37 }
 0x78b   : > { %v5697_v57 = vpop.f32.mrf.mxu2 }
 0x78d   : > { %v4205_v14 = vpop.eup %4204 }
 0x78e   : > { %v2313_v43 = vmul.f32 %v4205_v14, %v2311_v19  ;;  %vm2318_vm4 = vweird.f32 %v4205_v14 }
 0x78f   : > { %4100 = vset.pattern.permute.xlu2 %v5626_v59  ;;  %4099 = vset.pattern.permute.xlu0 %v5631_v21  ;;  %vm2319_vm10 = vmor %vm2317_vm9, %vm2318_vm4 }
 0x790   : > { %v2314_v26 = vsub.f32 1.0, %v2313_v43  ;;  %4098 = vset.pattern.permute.xlu1 %v5626_v59 }
 0x792   : > { %v2315_v0 = vmul.f32 %v4205_v14, %v2314_v26 }
 0x794   : > { %v2316_v29 = vadd.f32 %v4205_v14, %v2315_v0  ;;  %v1609_v0 = vpop.f32.mrf.mxu2 }
 0x796   : > { %v2320_v42 = vsel %vm2319_vm10, %v4205_v14, %v2316_v29 }
 0x797   : > { %1991 = vperm.xlu2 %4100, %v1986_v13   ;;  %1984 = vperm.xlu0 %4099, %v1973_v56   ;;  %v2325_v62 = vsel %vm2322_vm11, %v2324_v47, %v2320_v42  ;;  %v5706_v47 = vadd.f32 %v1609_v0, %v5392_v58  ;;  %v5727_v0 = vadd.f32 %v5683_v18, %v5392_v58 }
 0x798   : > { %1978 = vperm.xlu1 %4098, %v1973_v56   ;;  %v5651_v50 = vmul.f32 %v5621_v31, %v2325_v62 }
 0x79a   : > { %v2379_v60 = vperm.slane %v5651_v50, 4  ;;  %v2392_v44 = vperm.slane %v5651_v50, 5  ;;  %v2327_v7 = vperm.slane %v5651_v50, 0  ;;  %v2340_v20 = vperm.slane %v5651_v50, 1 }
 0x79b   : > { %v2353_v12 = vperm.slane %v5651_v50, 2  ;;  %v2366_v63 = vperm.slane %v5651_v50, 3 }
 0x79f   : > { %4103 = vset.pattern.permute.xlu2 %v5631_v21  ;;  %4110 = vset.pattern.permute.xlu0 %v5626_v59 }
 0x7a0   : > { %4101 = vset.pattern.permute.xlu1 %v5631_v21 }
 0x7a7   : > { %2010 = vperm.xlu2 %4103, %v1999_v45   ;;  %2384 = vperm.xlu0 %4110, %v2379_v60  }
 0x7a8   : > { %1997 = vperm.xlu1 %4101, %v1986_v13  }
 0x7af   : > { %4104 = vset.pattern.permute.xlu2 %v5626_v59  ;;  %4113 = vset.pattern.permute.xlu0 %v5631_v21 }
 0x7b0   : > { %4102 = vset.pattern.permute.xlu1 %v5626_v59 }
 0x7b7   : > { %2017 = vperm.xlu2 %4104, %v2012_v17   ;;  %2403 = vperm.xlu0 %4113, %v2392_v44  }
 0x7b8   : > { %2004 = vperm.xlu1 %4102, %v1999_v45  }
 0x7bf   : > { %2332 = vperm.xlu2 %4104, %v2327_v7   ;;  %4114 = vset.pattern.permute.xlu0 %v5626_v59 }
 0x7c0   : > { %4105 = vset.pattern.permute.xlu1 %v5631_v21 }
 0x7c7   : > { %2345 = vperm.xlu2 %4104, %v2340_v20   ;;  %2030 = vperm.xlu0 %4114, %v2025_v34  }
 0x7c8   : > { %2023 = vperm.xlu1 %4105, %v2012_v17  }
 0x7cf   : > { %4107 = vset.pattern.permute.xlu2 %v5631_v21  ;;  %4119 = vset.pattern.permute.xlu0 %v5631_v21 }
 0x7d0   : > { %2338 = vperm.xlu1 %4105, %v2327_v7  }
 0x7d1   : > { %v1953_v27 = vpop.permute.xlu2 %1952 }
 0x7d2   : > { %v2040_v22 = vmul.f32 %v1953_v27, %v5422_v39 }
 0x7d4   : > { %v2063_v13 = vsel %vm1791_vm8, %v2040_v22, 0.0 }
 0x7d7   : > { %2364 = vperm.xlu2 %4107, %v2353_v12  }
 0x7d8   : > { %2351 = vperm.xlu1 %4105, %v2340_v20  }
 0x7df   : > { %4108 = vset.pattern.permute.xlu2 %v5626_v59 }
 0x7e0   : > { %4106 = vset.pattern.permute.xlu1 %v5626_v59 }
 0x7e1   : > { %v1972_v15 = vpop.permute.xlu2 %1971 }
 0x7e2   : > { %v2043_v31 = vmul.f32 %v1972_v15, %v5674_v2 }
 0x7e4   : > { %v2073_v43 = vsel %vm1791_vm8, %v2043_v31, 0.0 }
 0x7e7   : > { %2371 = vperm.xlu2 %4108, %v2366_v63  }
 0x7e8   : > { %2358 = vperm.xlu1 %4106, %v2353_v12  }
 0x7e9   : > { %v1946_v30 = vpop.permute.xlu0 %1945 }
 0x7ea   : > { %v2039_v32 = vmul.f32 %v1946_v30, %v5681_v41  ;;  %v1940_v61 = vpop.permute.xlu1 %1939 }
 0x7eb   : > { %v2038_v33 = vmul.f32 %v1940_v61, %v5399_v11 }
 0x7ec   : > { %v2055_v23 = vsel %vm1791_vm8, %v2039_v32, 0.0 }
 0x7ed   : > { %v2054_v46 = vsel %vm1791_vm8, %v2038_v33, 0.0 }
 0x7ee   : > { %v2056_v8 = vadd.f32 %v2055_v23, %v2054_v46 }
 0x7ef   : > { %4111 = vset.pattern.permute.xlu2 %v5631_v21 }
 0x7f0   : > { %4109 = vset.pattern.permute.xlu1 %v5631_v21  ;;  %v2057_v52 = vrot.slane %v2056_v8, 4 }
 0x7f1   : > { %v1992_v38 = vpop.permute.xlu2 %1991 }
 0x7f2   : > { %v5695_v35 = vmul.f32 %v1992_v38, %v5691_v3  ;;  %v2058_v55 = vadd.f32 %v2057_v52, %v2056_v8 }
 0x7f4   : > { %v2059_v28 = vrot.slane %v2058_v55, 2 }
 0x7f6   : > { %v2060_v17 = vadd.f32 %v2059_v28, %v2058_v55  ;;  %v2405_v55 = vperm.slane %v5651_v50, 6 }
 0x7f7   : > { %2390 = vperm.xlu2 %4111, %v2379_v60  }
 0x7f8   : > { %2377 = vperm.xlu1 %4109, %v2366_v63   ;;  %v2061_v9 = vrot.slane %v2060_v17, 1 }
 0x7f9   : > { %v1966_v16 = vpop.permute.xlu0 %1965 }
 0x7fa   : > { %v2042_v49 = vmul.f32 %v1966_v16, %v5445_v24  ;;  %v1959_v19 = vpop.permute.xlu1 %1958  ;;  %v2062_v61 = vadd.f32 %v2061_v9, %v2060_v17 }
 0x7fb   : > { %v2041_v14 = vmul.f32 %v1959_v19, %v5431_v53 }
 0x7fc   : > { %v2072_v26 = vsel %vm1791_vm8, %v2042_v49, 0.0 }
 0x7fd   : > { %v2074_v56 = vadd.f32 %v2073_v43, %v2072_v26  ;;  %v2064_v29 = vsel %vm1791_vm8, %v2041_v14, 0.0 }
 0x7fe   : > { %v2065_v5 = vadd.f32 %v2064_v29, %v2063_v13 }
 0x7ff   : > { %v2075_v42 = vrot.slane %v2074_v56, 4  ;;  %2036 = vperm.xlu2 %4111, %v2025_v34   ;;  %v5712_v34 = vadd.f32 %v1599_v25, %v5392_v58 }
 0x800   : > { %v2066_v62 = vrot.slane %v2065_v5, 4  ;;  %4112 = vset.pattern.permute.xlu1 %v5626_v59 }
 0x801   : > { %v2076_v45 = vadd.f32 %v2075_v42, %v2074_v56  ;;  %v2011_v60 = vpop.permute.xlu2 %2010 }
 0x802   : > { %v2067_v7 = vadd.f32 %v2066_v62, %v2065_v5  ;;  %v2049_v20 = vmul.f32 %v2011_v60, %v5706_v47  ;;  %v2090_v5 = vsel %vm1791_vm8, %v5695_v35, 0.0  ;;  %v2418_v62 = vperm.slane %v5651_v50, 7  ;;  %v1612_v50 = vpop.f32.mrf.mxu2 }
 0x803   : > { %v2077_v27 = vrot.slane %v2076_v45, 2 }
 0x804   : > { %v2068_v22 = vrot.slane %v2067_v7, 2 }
 0x805   : > { %v2078_v12 = vadd.f32 %v2077_v27, %v2076_v45 }
 0x806   : > { %v2069_v15 = vadd.f32 %v2068_v22, %v2067_v7  ;;  %v5738_v22 = vadd.f32 %v5697_v57, %v5392_v58  ;;  %v5745_v57 = vadd.f32 %v1612_v50, %v5392_v58 }
 0x807   : > { %v2079_v31 = vrot.slane %v2078_v12, 1  ;;  %4115 = vset.pattern.permute.xlu2 %v5626_v59 }
 0x808   : > { %v2070_v63 = vrot.slane %v2069_v15, 1  ;;  %2397 = vperm.xlu1 %4112, %v2392_v44  }
 0x809   : > { %v2080_v30 = vadd.f32 %v2079_v31, %v2078_v12  ;;  %v1985_v32 = vpop.permute.xlu0 %1984  ;;  %v2100_v31 = vsel %vm1791_vm8, %v2049_v20, 0.0 }
 0x80a   : > { %v2071_v33 = vadd.f32 %v2070_v63, %v2069_v15  ;;  %v2045_v23 = vmul.f32 %v1985_v32, %v5712_v34  ;;  %v1979_v46 = vpop.permute.xlu1 %1978 }
 0x80b   : > { %v2044_v8 = vmul.f32 %v1979_v46, %v5461_v40 }
 0x80c   : > { %v2528_v38 = vsel %vm1665_vm0, %v2071_v33, %v2062_v61  ;;  %v2082_v52 = vsel %vm1791_vm8, %v2045_v23, 0.0  ;;  %v1614_v23 = vpop.f32.mrf.mxu2 }
 0x80d   : > { %v2529_v25 = vsel %vm1668_vm1, %v2080_v30, %v2528_v38  ;;  %v2081_v16 = vsel %vm1791_vm8, %v2044_v8, 0.0  ;;  %v5748_v38 = vadd.f32 %v1614_v23, %v5392_v58 }
 0x80e   : > { %v2083_v44 = vadd.f32 %v2082_v52, %v2081_v16 }
 0x80f   : > { %2410 = vperm.xlu2 %4115, %v2405_v55  }
 0x810   : > { %v2084_v49 = vrot.slane %v2083_v44, 4  ;;  %4116 = vset.pattern.permute.xlu1 %v5631_v21 }
 0x811   : > { %v2018_v17 = vpop.permute.xlu2 %2017 }
 0x812   : > { %v2085_v19 = vadd.f32 %v2084_v49, %v2083_v44  ;;  %v2050_v52 = vmul.f32 %v2018_v17, %v5745_v57 }
 0x814   : > { %v2086_v14 = vrot.slane %v2085_v19, 2  ;;  %v2108_v49 = vsel %vm1791_vm8, %v2050_v52, 0.0 }
 0x816   : > { %v2087_v43 = vadd.f32 %v2086_v14, %v2085_v19 }
 0x817   : > { %4118 = vset.pattern.permute.xlu2 %v5631_v21 }
 0x818   : > { %v2088_v26 = vrot.slane %v2087_v43, 1  ;;  %2416 = vperm.xlu1 %4116, %v2405_v55  }
 0x819   : > { %v2333_v30 = vpop.permute.xlu2 %2332 }
 0x81a   : > { %v2089_v13 = vadd.f32 %v2088_v26, %v2087_v43  ;;  %v1998_v56 = vpop.permute.xlu1 %1997  ;;  %v2431_v26 = vmul.f32 %v2333_v30, %v5399_v11 }
 0x81b   : > { %v2047_v29 = vmul.f32 %v1998_v56, %v5727_v0 }
 0x81c   : > { %v2530_v28 = vsel %vm1671_vm2, %v2089_v13, %v2529_v25 }
 0x81d   : > { %v2091_v42 = vsel %vm1791_vm8, %v2047_v29, 0.0 }
 0x81e   : > { %v2092_v21 = vadd.f32 %v2091_v42, %v2090_v5  ;;  %v2448_v42 = vsel %vm2447_vm12, %v2431_v26, 0.0 }
 0x81f   : > { %2429 = vperm.xlu2 %4118, %v2418_v62  }
 0x820   : > { %v2093_v45 = vrot.slane %v2092_v21, 4  ;;  %4117 = vset.pattern.permute.xlu1 %v5626_v59 }
 0x821   : > { %v2346_v25 = vpop.permute.xlu2 %2345 }
 0x822   : > { %v2094_v18 = vadd.f32 %v2093_v45, %v2092_v21 }
 0x824   : > { %v2095_v60 = vrot.slane %v2094_v18, 2 }
 0x826   : > { %v2096_v7 = vadd.f32 %v2095_v60, %v2094_v18 }
 0x828   : > { %v2097_v27 = vrot.slane %v2096_v7, 1  ;;  %2423 = vperm.xlu1 %4117, %v2418_v62   ;;  %v2385_v62 = vpop.permute.xlu0 %2384 }
 0x82a   : > { %v2098_v35 = vadd.f32 %v2097_v27, %v2096_v7  ;;  %v2005_v12 = vpop.permute.xlu1 %2004  ;;  %v2433_v7 = vmul.f32 %v2346_v25, %v5422_v39 }
 0x82b   : > { %v2048_v9 = vmul.f32 %v2005_v12, %v5738_v22 }
 0x82c   : > { %v2531_v15 = vsel %vm1674_vm5, %v2098_v35, %v2530_v28 }
 0x82d   : > { %v2099_v59 = vsel %vm1791_vm8, %v2048_v9, 0.0  ;;  %v1617_v9 = vpop.f32.mrf.mxu2 }
 0x82e   : > { %v2101_v63 = vadd.f32 %v2100_v31, %v2099_v59  ;;  %v5767_v52 = vadd.f32 %v1617_v9, %v5392_v58 }
 0x830   : > { %v2102_v32 = vrot.slane %v2101_v63, 4  ;;  %v5763_v31 = vpop.permute.xlu0 %2403 }
 0x831   : > { %v2365_v13 = vpop.permute.xlu2 %2364 }
 0x832   : > { %v2103_v61 = vadd.f32 %v2102_v32, %v2101_v63 }
 0x834   : > { %v2104_v33 = vrot.slane %v2103_v61, 2 }
 0x836   : > { %v2105_v46 = vadd.f32 %v2104_v33, %v2103_v61 }
 0x838   : > { %v2106_v8 = vrot.slane %v2105_v46, 1 }
 0x83a   : > { %v2107_v20 = vadd.f32 %v2106_v8, %v2105_v46  ;;  %v2024_v16 = vpop.permute.xlu1 %2023  ;;  %v1619_v46 = vpop.f32.mrf.mxu2 }
 0x83b   : > { %v2051_v55 = vmul.f32 %v2024_v16, %v5748_v38  ;;  %v2031_v8 = vpop.permute.xlu0 %2030 }
 0x83c   : > { %v2532_v44 = vsel %vm1677_vm6, %v2107_v20, %v2531_v15  ;;  %v2457_v15 = vsel %vm2447_vm12, %v2433_v7, 0.0  ;;  %v5770_v20 = vadd.f32 %v1619_v46, %v5392_v58  ;;  %v2052_v16 = vmul.f32 %v2031_v8, %v5767_v52 }
 0x83d   : > { %v2109_v19 = vsel %vm1791_vm8, %v2051_v55, 0.0 }
 0x83e   : > { %v2110_v14 = vadd.f32 %v2109_v19, %v2108_v49 }
 0x840   : > { %v2111_v43 = vrot.slane %v2110_v14, 4 }
 0x841   : > { %v2372_v27 = vpop.permute.xlu2 %2371 }
 0x842   : > { %v2112_v56 = vadd.f32 %v2111_v43, %v2110_v14  ;;  %v2339_v29 = vpop.permute.xlu1 %2338 }
 0x843   : > { %v2432_v28 = vmul.f32 %v2339_v29, %v5681_v41  ;;  %v2117_v29 = vsel %vm1791_vm8, %v2052_v16, 0.0 }
 0x844   : > { %v2113_v5 = vrot.slane %v2112_v56, 2 }
 0x845   : > { %v2449_v21 = vsel %vm2447_vm12, %v2432_v28, 0.0 }
 0x846   : > { %v2114_v45 = vadd.f32 %v2113_v5, %v2112_v56  ;;  %v2450_v18 = vadd.f32 %v2449_v21, %v2448_v42 }
 0x848   : > { %v2115_v60 = vrot.slane %v2114_v45, 1  ;;  %v2451_v17 = vrot.slane %v2450_v18, 4 }
 0x84a   : > { %v2116_v11 = vadd.f32 %v2115_v60, %v2114_v45  ;;  %v2452_v35 = vadd.f32 %v2451_v17, %v2450_v18  ;;  %v2352_v12 = vpop.permute.xlu1 %2351 }
 0x84b   : > { %v2434_v50 = vmul.f32 %v2352_v12, %v5431_v53 }
 0x84c   : > { %v2533_v41 = vsel %vm1680_vm7, %v2116_v11, %v2532_v44  ;;  %v2453_v63 = vrot.slane %v2452_v35, 2  ;;  %v2436_v44 = vmul.f32 %v2365_v13, %v5674_v2  ;;  %v2439_v13 = vmul.f32 %v2385_v62, %v5691_v3 }
 0x84d   : > { %v2458_v59 = vsel %vm2447_vm12, %v2434_v50, 0.0 }
 0x84e   : > { %v2459_v30 = vadd.f32 %v2458_v59, %v2457_v15  ;;  %v2454_v39 = vadd.f32 %v2453_v63, %v2452_v35  ;;  %v2467_v42 = vsel %vm2447_vm12, %v2436_v44, 0.0  ;;  %v2484_v7 = vsel %vm2447_vm12, %v2439_v13, 0.0  ;;  %v3921_v13 = vld [vmem:[#allocation14 + $0x20] sm:$0xff] }
 0x850   : > { %v2460_v32 = vrot.slane %v2459_v30, 4  ;;  %v2455_v53 = vrot.slane %v2454_v39, 1 }
 0x851   : > { %v2391_v61 = vpop.permute.xlu2 %2390 }
 0x852   : > { %v2461_v33 = vadd.f32 %v2460_v32, %v2459_v30  ;;  %v2456_v19 = vadd.f32 %v2455_v53, %v2454_v39  ;;  %v2440_v58 = vmul.f32 %v2391_v61, %v5727_v0  ;;  %v2437_v30 = vmul.f32 %v2372_v27, %v5461_v40  ;;  %v3924_v40 = vld [vmem:[#allocation14 + $0x38] sm:$0xff] }
 0x853   : > { %2618 = vmatpush.bf16.msrb.mxu3 %v3924_v40 }
 0x854   : > { %v2462_v23 = vrot.slane %v2461_v33, 2  ;;  %v2485_v60 = vsel %vm2447_vm12, %v2440_v58, 0.0  ;;  %v2475_v46 = vsel %vm2447_vm12, %v2437_v30, 0.0 }
 0x855   : > { %v2486_v35 = vadd.f32 %v2485_v60, %v2484_v7 }
 0x856   : > { %v2463_v25 = vadd.f32 %v2462_v23, %v2461_v33 }
 0x857   : > { %v2487_v15 = vrot.slane %v2486_v35, 4 }
 0x858   : > { %v2464_v55 = vrot.slane %v2463_v25, 1 }
 0x859   : > { %v2037_v49 = vpop.permute.xlu2 %2036  ;;  %v2488_v61 = vadd.f32 %v2487_v15, %v2486_v35 }
 0x85a   : > { %v2465_v14 = vadd.f32 %v2464_v55, %v2463_v25  ;;  %v2053_v43 = vmul.f32 %v2037_v49, %v5770_v20  ;;  %v2359_v26 = vpop.permute.xlu1 %2358 }
 0x85b   : > { %v2435_v56 = vmul.f32 %v2359_v26, %v5445_v24  ;;  %v2489_v25 = vrot.slane %v2488_v61, 2 }
 0x85c   : > { %v2544_v28 = vsel %vm1665_vm0, %v2465_v14, %v2456_v19  ;;  %v2118_v5 = vsel %vm1791_vm8, %v2053_v43, 0.0  ;;  %v3923_v19 = vld [vmem:[#allocation14 + $0x30] sm:$0xff] }
 0x85d   : > { %v2119_v21 = vadd.f32 %v2118_v5, %v2117_v29  ;;  %v2466_v2 = vsel %vm2447_vm12, %v2435_v56, 0.0  ;;  %v2490_v27 = vadd.f32 %v2489_v25, %v2488_v61  ;;  %2619 = vmatpush.bf16.msrb.mxu3 %v3923_v19  ;;  %v3922_v56 = vld [vmem:[#allocation14 + $0x28] sm:$0xff] }
 0x85e   : > { %v2468_v45 = vadd.f32 %v2467_v42, %v2466_v2 }
 0x85f   : > { %v2120_v18 = vrot.slane %v2119_v21, 4 }
 0x860   : > { %v2469_v24 = vrot.slane %v2468_v45, 4 }
 0x861   : > { %v2121_v17 = vadd.f32 %v2120_v18, %v2119_v21  ;;  %2620 = vmatpush.bf16.msrb.mxu3 %v3922_v56 }
 0x862   : > { %v2470_v11 = vadd.f32 %v2469_v24, %v2468_v45 }
 0x863   : > { %v2122_v0 = vrot.slane %v2121_v17, 2 }
 0x864   : > { %v2471_v12 = vrot.slane %v2470_v11, 2 }
 0x865   : > { %v2123_v9 = vadd.f32 %v2122_v0, %v2121_v17  ;;  %2621 = vmatpush.bf16.msrb.mxu3 %v3921_v13  ;;  %v3918_v0 = vld [vmem:[#allocation14 + $0x8] sm:$0xff] }
 0x866   : > { %v2472_v50 = vadd.f32 %v2471_v12, %v2470_v11 }
 0x867   : > { %v2124_v59 = vrot.slane %v2123_v9, 1 }
 0x868   : > { %v2473_v63 = vrot.slane %v2472_v50, 1 }
 0x869   : > { %v2125_v3 = vadd.f32 %v2124_v59, %v2123_v9  ;;  %v2411_v60 = vpop.permute.xlu2 %2410  ;;  %v3917_v9 = vld [vmem:[#allocation14] sm:$0xff] }
 0x86a   : > { %v2474_v62 = vadd.f32 %v2473_v63, %v2472_v50  ;;  %v2378_v32 = vpop.permute.xlu1 %2377  ;;  %v2443_v7 = vmul.f32 %v2411_v60, %v5745_v57 }
 0x86b   : > { %v2438_v39 = vmul.f32 %v2378_v32, %v5712_v34  ;;  %v5788_v33 = vsel %vm1683_vm14, %v2125_v3, %v2533_v41  ;;  %v2491_v34 = vrot.slane %v2490_v27, 1  ;;  %v2442_v41 = vmul.f32 %v5763_v31, %v5706_v47  ;;  %v3920_v31 = vld [vmem:[#allocation14 + $0x18] sm:$0xff] }
 0x86c   : > { %v2545_v23 = vsel %vm1668_vm1, %v2474_v62, %v2544_v28  ;;  %2622 = vmatpush.bf16.msrb.mxu3 %v3920_v31  ;;  %v2502_v15 = vsel %vm2447_vm12, %v2443_v7, 0.0 }
 0x86d   : > { %v2476_v8 = vsel %vm2447_vm12, %v2438_v39, 0.0  ;;  %v2492_v29 = vadd.f32 %v2491_v34, %v2490_v27  ;;  %v2494_v5 = vsel %vm2447_vm12, %v2442_v41, 0.0 }
 0x86e   : > { %v2477_v53 = vadd.f32 %v2476_v8, %v2475_v46 }
 0x870   : > { %v2478_v16 = vrot.slane %v2477_v53, 4 }
 0x872   : > { %v2479_v55 = vadd.f32 %v2478_v16, %v2477_v53 }
 0x874   : > { %v2480_v44 = vrot.slane %v2479_v55, 2 }
 0x876   : > { %v2481_v49 = vadd.f32 %v2480_v44, %v2479_v55 }
 0x878   : > { %v2482_v14 = vrot.slane %v2481_v49, 1 }
 0x879   : > { %v2430_v32 = vpop.permute.xlu2 %2429 }
 0x87a   : > { %v2483_v43 = vadd.f32 %v2482_v14, %v2481_v49  ;;  %v2398_v26 = vpop.permute.xlu1 %2397  ;;  %v2446_v39 = vmul.f32 %v2430_v32, %v5770_v20 }
 0x87b   : > { %v2441_v28 = vmul.f32 %v2398_v26, %v5738_v22  ;;  %v3919_v22 = vld [vmem:[#allocation14 + $0x10] sm:$0xff] }
 0x87c   : > { %v2546_v58 = vsel %vm1671_vm2, %v2483_v43, %v2545_v23  ;;  %2623 = vmatpush.bf16.msrb.mxu3 %v3919_v22  ;;  %v2512_v53 = vsel %vm2447_vm12, %v2446_v39, 0.0 }
 0x87d   : > { %v2493_v42 = vsel %vm2447_vm12, %v2441_v28, 0.0  ;;  %v2547_v21 = vsel %vm1674_vm5, %v2492_v29, %v2546_v58 }
 0x87e   : > { %v2495_v2 = vadd.f32 %v2494_v5, %v2493_v42 }
 0x880   : > { %v2496_v45 = vrot.slane %v2495_v2, 4  ;;  %2624 = vmatpush.bf16.msrb.mxu3 %v3918_v0 }
 0x882   : > { %v2497_v47 = vadd.f32 %v2496_v45, %v2495_v2  ;;  %v4126_v2 = vld [vmem:[#allocation9 + $0x7] ss:$0 sm:$0xff] }
 0x884   : > { %v2498_v18 = vrot.slane %v2497_v47, 2  ;;  %2625 = vmatpush.bf16.msrb.mxu3 %v3917_v9 }
 0x886   : > { %v2499_v24 = vadd.f32 %v2498_v18, %v2497_v47 }
 0x888   : > { %v2500_v17 = vrot.slane %v2499_v24, 1 }
 0x88a   : > { %v2501_v11 = vadd.f32 %v2500_v17, %v2499_v24  ;;  %v2417_v35 = vpop.permute.xlu1 %2416 }
 0x88b   : > { %v2444_v12 = vmul.f32 %v2417_v35, %v5748_v38 }
 0x88c   : > { %v2548_v50 = vsel %vm1677_vm6, %v2501_v11, %v2547_v21 }
 0x88d   : > { %v2503_v59 = vsel %vm2447_vm12, %v2444_v12, 0.0 }
 0x88e   : > { %v2504_v63 = vadd.f32 %v2503_v59, %v2502_v15 }
 0x890   : > { %v2505_v30 = vrot.slane %v2504_v63, 4 }
 0x892   : > { %v2506_v3 = vadd.f32 %v2505_v30, %v2504_v63  ;;  %v3810_v30 = vld [vmem:[#allocation15 + $0x70] sm:$0xf] }
 0x894   : > { %v2507_v62 = vrot.slane %v2506_v3, 2 }
 0x896   : > { %v2508_v57 = vadd.f32 %v2507_v62, %v2506_v3  ;;  %v3940_v3 = vld [vmem:[#allocation15 + $0x74] sm:$0xf0] }
 0x897   : > { %v3811_v62 = vor.u32 %v3940_v3, %v3810_v30  ;;  %v3796_v30 = vld [vmem:[#allocation15 + $0x58] sm:$0xf0]  ;;  %v3786_v3 = vld [vmem:[#allocation15 + $0x40] sm:$0xf] }
 0x898   : > { %v2509_v61 = vrot.slane %v2508_v57, 1 }
 0x899   : > { %2946 = vmatpush.bf16.msrb.mxu0 %v3811_v62  ;;  %v3934_v62 = vld [vmem:[#allocation15 + $0x44] sm:$0xf0] }
 0x89a   : > { %v2510_v23 = vadd.f32 %v2509_v61, %v2508_v57  ;;  %v2424_v38 = vpop.permute.xlu1 %2423 }
 0x89b   : > { %v2445_v46 = vmul.f32 %v2424_v38, %v5767_v52 }
 0x89c   : > { %v2549_v8 = vsel %vm1680_vm7, %v2510_v23, %v2548_v50 }
 0x89d   : > { %v2511_v25 = vsel %vm2447_vm12, %v2445_v46, 0.0 }
 0x89e   : > { %v2513_v16 = vadd.f32 %v2512_v53, %v2511_v25 }
 0x8a0   : > { %v2514_v55 = vrot.slane %v2513_v16, 4 }
 0x8a2   : > { %v2515_v40 = vadd.f32 %v2514_v55, %v2513_v16 }
 0x8a4   : > { %v2516_v27 = vrot.slane %v2515_v40, 2 }
 0x8a6   : > { %v2517_v44 = vadd.f32 %v2516_v27, %v2515_v40 }
 0x8a8   : > { %v2518_v49 = vrot.slane %v2517_v44, 1 }
 0x8aa   : > { %v2519_v19 = vadd.f32 %v2518_v49, %v2517_v44 }
 0x8ac   : > { %v2550_v34 = vsel %vm1683_vm14, %v2519_v19, %v2549_v8 }
 0x8ad   : > { %v2552_v20 = vsel %vm1791_vm8, %v5788_v33, %v2550_v34 }
 0x8ae   : > { %v2569_v14 = vpack.c.bf16 %v2552_v20, %v2552_v20 }
 0x8b0   : > { %2626 = vmatmul.bf16.vlgmr.msrb.gmra.mxu3 %v2569_v14 }
 0x933   : > { %v2627_v52 = vpop.f32.mrf.mxu3 }
 0x934   : > { %v2632_v41 = vrot.slane %v2627_v52, 1  ;;  %v2633_v43 = vrot.slane %v2627_v52, 2  ;;  %v2634_v26 = vrot.slane %v2627_v52, 3  ;;  %v2635_v56 = vrot.slane %v2627_v52, 4 }
 0x935   : > { %v2647_v29 = vadd.f32 %v2627_v52, %v4985_v36  ;;  %v2636_v28 = vrot.slane %v2627_v52, 5  ;;  %v2637_v58 = vrot.slane %v2627_v52, 6  ;;  %v2638_v5 = vrot.slane %v2627_v52, 7 }
 0x936   : > { %v2648_v42 = vadd.f32 %v2632_v41, %v5001_v4  ;;  %v2649_v21 = vadd.f32 %v2633_v43, %v5031_v10  ;;  %v2650_v13 = vadd.f32 %v2634_v26, %v5076_v37  ;;  %v2651_v33 = vadd.f32 %v2635_v56, %v5105_v48 }
 0x937   : > { %v2652_v45 = vadd.f32 %v2636_v28, %v5124_v6  ;;  %v2653_v47 = vadd.f32 %v2637_v58, %v5177_v1  ;;  %v2654_v36 = vadd.f32 %v2638_v5, %v5244_v54  ;;  %v5829_v10 = vadd.f32 %v4126_v2, %v2647_v29 }
 0x938   : > { %v5820_v31 = vadd.f32 %v4126_v2, %v2648_v42  ;;  %v5823_v18 = vadd.f32 %v4126_v2, %v2649_v21  ;;  %v5825_v60 = vadd.f32 %v4126_v2, %v2650_v13  ;;  %v5827_v4 = vadd.f32 %v4126_v2, %v2651_v33 }
 0x939   : > { %v5831_v24 = vadd.f32 %v4126_v2, %v2652_v45  ;;  %v5835_v1 = vadd.f32 %v4126_v2, %v2653_v47  ;;  %v5837_v22 = vadd.f32 %v4126_v2, %v2654_v36 }
 0x93a   : > { %v2675_v37 = vrot.slane %v5820_v31, 7  ;;  %v2677_v48 = vrot.slane %v5823_v18, 6  ;;  %v2679_v17 = vrot.slane %v5825_v60, 5  ;;  %v2681_v11 = vrot.slane %v5827_v4, 4 }
 0x93b   : > { %v2629_v6 = vpop.f32.mrf.mxu3  ;;  %v2683_v0 = vrot.slane %v5831_v24, 3  ;;  %v2685_v9 = vrot.slane %v5835_v1, 2  ;;  %v2687_v15 = vrot.slane %v5837_v22, 1 }
 0x93c   : > { %v2676_v54 = vsel %vm1665_vm0, %v2675_v37, %v5829_v10  ;;  %v3939_v6 = vld [vmem:[#allocation15 + $0x74] sm:$0xf] }
 0x93d   : > { %v2678_v7 = vsel %vm1668_vm1, %v2677_v48, %v2676_v54  ;;  %v3812_v54 = vld [vmem:[#allocation15 + $0x78] sm:$0xf0] }
 0x93e   : > { %v2680_v35 = vsel %vm1671_vm2, %v2679_v17, %v2678_v7  ;;  %v3815_v17 = vor.u32 %v3939_v6, %v3812_v54  ;;  %v3802_v7 = vld [vmem:[#allocation15 + $0x60] sm:$0xf] }
 0x93f   : > { %v2682_v12 = vsel %vm1674_vm5, %v2681_v11, %v2680_v35  ;;  %v3938_v11 = vld [vmem:[#allocation15 + $0x64] sm:$0xf0]  ;;  %v3937_v35 = vld [vmem:[#allocation15 + $0x64] sm:$0xf] }
 0x940   : > { %v2684_v50 = vsel %vm1677_vm6, %v2683_v0, %v2682_v12  ;;  %2959 = vmatpush.bf16.msra.mxu3 %v3815_v17  ;;  %v3803_v0 = vor.u32 %v3938_v11, %v3802_v7  ;;  %v3804_v12 = vld [vmem:[#allocation15 + $0x68] sm:$0xf0] }
 0x941   : > { %v2686_v59 = vsel %vm1680_vm7, %v2685_v9, %v2684_v50  ;;  %v3807_v9 = vor.u32 %v3937_v35, %v3804_v12  ;;  %v3794_v50 = vld [vmem:[#allocation15 + $0x50] sm:$0xf]  ;;  %v4127_v12 = vld [vmem:[#allocation9 + $0x8] ss:$0 sm:$0xff] }
 0x942   : > { %v2688_v63 = vsel %vm1683_vm14, %v2687_v15, %v2686_v59  ;;  %2947 = vmatpush.bf16.msrb.mxu0 %v3803_v0  ;;  %v3936_v15 = vld [vmem:[#allocation15 + $0x54] sm:$0xf0]  ;;  %v3935_v59 = vld [vmem:[#allocation15 + $0x54] sm:$0xf] }
 0x943   : > { %2690 = vadd.xlane.f32.xlu1 %v2688_v63  ;;  %v3795_v63 = vor.u32 %v3936_v15, %v3794_v50 }
 0x944   : > { %2960 = vmatpush.bf16.msra.mxu3 %v3807_v9 }
 0x946   : > { %2948 = vmatpush.bf16.msrb.mxu0 %v3795_v63 }
 0x9b6   : > { %v2691_v32 = vpop.xlane.xlu1 %2690 }
 0x9b7   : > { %v2692_v57 = vmul.f32 %v2691_v32, %v4866_v51  ;;  %v3799_v32 = vor.u32 %v3935_v59, %v3796_v30  ;;  %v4128_v30 = vld [vmem:[#allocation9 + $0x9] ss:$0 sm:$0xff] }
 0x9b9   : > { %v2694_v61 = vrot.slane %v2692_v57, 1  ;;  %v2695_v39 = vrot.slane %v2692_v57, 2  ;;  %v2696_v23 = vrot.slane %v2692_v57, 3  ;;  %v2697_v38 = vrot.slane %v2692_v57, 4  ;;  %2961 = vmatpush.bf16.msra.mxu3 %v3799_v32 }
 0x9ba   : > { %v2698_v46 = vrot.slane %v2692_v57, 5  ;;  %v2699_v8 = vrot.slane %v2692_v57, 6  ;;  %v2700_v53 = vrot.slane %v2692_v57, 7  ;;  %v5854_v25 = vsub.f32 %v5829_v10, %v2692_v57 }
 0x9bb   : > { %v5857_v16 = vsub.f32 %v5820_v31, %v2694_v61  ;;  %v5860_v55 = vsub.f32 %v5823_v18, %v2695_v39  ;;  %v5863_v40 = vsub.f32 %v5825_v60, %v2696_v23  ;;  %v5866_v27 = vsub.f32 %v5827_v4, %v2697_v38  ;;  %v3933_v61 = vld [vmem:[#allocation15 + $0x44] sm:$0xf]  ;;  %v3788_v39 = vld [vmem:[#allocation15 + $0x48] sm:$0xf0]  ;;  %v3778_v23 = vld [vmem:[#allocation15 + $0x30] sm:$0xf] }
 0x9bc   : > { %v5869_v44 = vsub.f32 %v5831_v24, %v2698_v46  ;;  %v5872_v49 = vsub.f32 %v5835_v1, %v2699_v8  ;;  %v5875_v19 = vsub.f32 %v5837_v22, %v2700_v53  ;;  %v2717_v41 = vmul.f32 %v5854_v25, %v5854_v25  ;;  %v3932_v38 = vld [vmem:[#allocation15 + $0x34] sm:$0xf0]  ;;  %v3931_v8 = vld [vmem:[#allocation15 + $0x34] sm:$0xf]  ;;  %v3780_v53 = vld [vmem:[#allocation15 + $0x38] sm:$0xf0] }
 0x9bd   : > { %v2718_v34 = vmul.f32 %v5857_v16, %v5857_v16  ;;  %v2719_v20 = vmul.f32 %v5860_v55, %v5860_v55  ;;  %v2720_v14 = vmul.f32 %v5863_v40, %v5863_v40  ;;  %v2721_v52 = vmul.f32 %v5866_v27, %v5866_v27 }
 0x9be   : > { %v2722_v43 = vmul.f32 %v5869_v44, %v5869_v44  ;;  %v2723_v29 = vmul.f32 %v5872_v49, %v5872_v49  ;;  %v2724_v28 = vmul.f32 %v5875_v19, %v5875_v19  ;;  %v3787_v57 = vor.u32 %v3934_v62, %v3786_v3 }
 0x9bf   : > { %v2733_v26 = vrot.slane %v2718_v34, 7  ;;  %v2735_v56 = vrot.slane %v2719_v20, 6  ;;  %v2737_v5 = vrot.slane %v2720_v14, 5  ;;  %v2739_v21 = vrot.slane %v2721_v52, 4  ;;  %v3770_v14 = vld [vmem:[#allocation15 + $0x20] sm:$0xf] }
 0x9c0   : > { %v2741_v13 = vrot.slane %v2722_v43, 3  ;;  %v2743_v45 = vrot.slane %v2723_v29, 2  ;;  %v2745_v36 = vrot.slane %v2724_v28, 1  ;;  %v3791_v46 = vor.u32 %v3933_v61, %v3788_v39  ;;  %2949 = vmatpush.bf16.msrb.mxu0 %v3787_v57  ;;  %v3930_v52 = vld [vmem:[#allocation15 + $0x24] sm:$0xf0] }
 0x9c1   : > { %v2734_v58 = vsel %vm1665_vm0, %v2733_v26, %v2717_v41  ;;  %v3779_v34 = vor.u32 %v3932_v38, %v3778_v23  ;;  %v3783_v20 = vor.u32 %v3931_v8, %v3780_v53  ;;  %v3929_v43 = vld [vmem:[#allocation15 + $0x24] sm:$0xf]  ;;  %v3772_v26 = vld [vmem:[#allocation15 + $0x28] sm:$0xf0]  ;;  %v3771_v29 = vor.u32 %v3930_v52, %v3770_v14 }
 0x9c2   : > { %v2736_v42 = vsel %vm1668_vm1, %v2735_v56, %v2734_v58  ;;  %2962 = vmatpush.bf16.msra.mxu3 %v3791_v46  ;;  %v3775_v58 = vor.u32 %v3929_v43, %v3772_v26 }
 0x9c3   : > { %v2738_v2 = vsel %vm1671_vm2, %v2737_v5, %v2736_v42  ;;  %v3762_v5 = vld [vmem:[#allocation15 + $0x10] sm:$0xf]  ;;  %v3928_v42 = vld [vmem:[#allocation15 + $0x14] sm:$0xf0] }
 0x9c4   : > { %v2740_v33 = vsel %vm1674_vm5, %v2739_v21, %v2738_v2  ;;  %2950 = vmatpush.bf16.msrb.mxu0 %v3779_v34  ;;  %v3927_v21 = vld [vmem:[#allocation15 + $0x14] sm:$0xf]  ;;  %v3764_v2 = vld [vmem:[#allocation15 + $0x18] sm:$0xf0] }
 0x9c5   : > { %v2742_v47 = vsel %vm1677_vm6, %v2741_v13, %v2740_v33  ;;  %v3763_v13 = vor.u32 %v3928_v42, %v3762_v5  ;;  %v3767_v33 = vor.u32 %v3927_v21, %v3764_v2 }
 0x9c6   : > { %v2744_v37 = vsel %vm1680_vm7, %v2743_v45, %v2742_v47  ;;  %2963 = vmatpush.bf16.msra.mxu3 %v3783_v20  ;;  %v3754_v45 = vld [vmem:[#allocation15] sm:$0xf]  ;;  %v3926_v47 = vld [vmem:[#allocation15 + $0x4] sm:$0xf0] }
 0x9c7   : > { %v2746_v48 = vsel %vm1683_vm14, %v2745_v36, %v2744_v37  ;;  %v3925_v36 = vld [vmem:[#allocation15 + $0x4] sm:$0xf]  ;;  %v3756_v37 = vld [vmem:[#allocation15 + $0x8] sm:$0xf0] }
 0x9c8   : > { %2748 = vadd.xlane.f32.xlu0 %v2746_v48  ;;  %2951 = vmatpush.bf16.msrb.mxu0 %v3771_v29  ;;  %v3755_v48 = vor.u32 %v3926_v47, %v3754_v45  ;;  %v3759_v54 = vor.u32 %v3925_v36, %v3756_v37 }
 0x9ca   : > { %2964 = vmatpush.bf16.msra.mxu3 %v3775_v58 }
 0x9cc   : > { %2952 = vmatpush.bf16.msrb.mxu0 %v3763_v13 }
 0x9ce   : > { %2965 = vmatpush.bf16.msra.mxu3 %v3767_v33 }
 0x9d0   : > { %2953 = vmatpush.bf16.msrb.mxu0 %v3755_v48 }
 0x9d2   : > { %2966 = vmatpush.bf16.msra.mxu3 %v3759_v54 }
 0xa3b   : > { %v2749_v41 = vpop.xlane.xlu0 %2748 }
 0xa3c   : > { %v2750_v56 = vmul.f32 %v2749_v41, %v4866_v51 }
 0xa3e   : > { %v2751_v28 = vadd.f32 1e-05, %v2750_v56 }
 0xa40   : > { %4206 = vrsqrt.f32 %v2751_v28  ;;  %vm2758_vm13 = vweird.f32 %v2751_v28 }
 0xa46   : > { %v4207_v6 = vpop.eup %4206 }
 0xa47   : > { %v2753_v17 = vmul.f32 %v4207_v6, %v2751_v28  ;;  %vm2759_vm8 = vweird.f32 %v4207_v6 }
 0xa48   : > { %vm2760_vm15 = vmor %vm2758_vm13, %vm2759_vm8 }
 0xa49   : > { %v2754_v7 = vmul.f32 %v4207_v6, %v2753_v17 }
 0xa4b   : > { %v2755_v11 = vmul.f32 0.5, %v2754_v7 }
 0xa4d   : > { %v2756_v35 = vsub.f32 1.5, %v2755_v11 }
 0xa4f   : > { %v2757_v0 = vmul.f32 %v4207_v6, %v2756_v35 }
 0xa51   : > { %v2761_v9 = vsel %vm2760_vm15, %v4207_v6, %v2757_v0 }
 0xa52   : > { %v2763_v50 = vrot.slane %v2761_v9, 1  ;;  %v2764_v15 = vrot.slane %v2761_v9, 2  ;;  %v2765_v59 = vrot.slane %v2761_v9, 3  ;;  %v2778_v63 = vmul.f32 %v2761_v9, %v5854_v25 }
 0xa53   : > { %v2766_v3 = vrot.slane %v2761_v9, 4  ;;  %v2767_v62 = vrot.slane %v2761_v9, 5  ;;  %v2768_v32 = vrot.slane %v2761_v9, 6  ;;  %v2769_v57 = vrot.slane %v2761_v9, 7 }
 0xa54   : > { %v2779_v61 = vmul.f32 %v2763_v50, %v5857_v16  ;;  %v2780_v39 = vmul.f32 %v2764_v15, %v5860_v55  ;;  %v2781_v23 = vmul.f32 %v2765_v59, %v5863_v40  ;;  %v2787_v38 = vmul.f32 %v4127_v12, %v2778_v63 }
 0xa55   : > { %v2782_v46 = vmul.f32 %v2766_v3, %v5866_v27  ;;  %v2783_v8 = vmul.f32 %v2767_v62, %v5869_v44  ;;  %v2784_v53 = vmul.f32 %v2768_v32, %v5872_v49  ;;  %v2785_v25 = vmul.f32 %v2769_v57, %v5875_v19  ;;  %v2828_v57 = vld [vmem:[%s6013_s9] sm:$0x3] }
 0xa56   : > { %v2788_v34 = vmul.f32 %v4127_v12, %v2779_v61  ;;  %v2789_v20 = vmul.f32 %v4127_v12, %v2780_v39  ;;  %v2790_v14 = vmul.f32 %v4127_v12, %v2781_v23  ;;  %v2796_v52 = vadd.f32 %v4128_v30, %v2787_v38  ;;  %v3948_v61 = vld [vmem:[#allocation17 + $0x38] sm:$0xff]  ;;  %v3947_v38 = vld [vmem:[#allocation17 + $0x30] sm:$0xff] }
 0xa57   : > { %v2791_v41 = vmul.f32 %v4127_v12, %v2782_v46  ;;  %v2792_v43 = vmul.f32 %v4127_v12, %v2783_v8  ;;  %v2793_v16 = vmul.f32 %v4127_v12, %v2784_v53  ;;  %v2794_v26 = vmul.f32 %v4127_v12, %v2785_v25  ;;  %3182 = vmatpush.bf16.msra.mxu0 %v3948_v61  ;;  %v3956_v8 = vld [vmem:[#allocation17 + $0x78] sm:$0xff] }
 0xa58   : > { %v2797_v55 = vadd.f32 %v4128_v30, %v2788_v34  ;;  %v2798_v56 = vadd.f32 %v4128_v30, %v2789_v20  ;;  %v2799_v40 = vadd.f32 %v4128_v30, %v2790_v14  ;;  %v2820_v44 = vpack.c.bf16 %v2796_v52, %v2796_v52  ;;  %3195 = vmatpush.bf16.msrb.mxu3 %v3956_v8  ;;  %v3946_v34 = vld [vmem:[#allocation17 + $0x28] sm:$0xff]  ;;  %v3955_v52 = vld [vmem:[#allocation17 + $0x70] sm:$0xff] }
 0xa59   : > { %v2800_v29 = vadd.f32 %v4128_v30, %v2791_v41  ;;  %v2801_v28 = vadd.f32 %v4128_v30, %v2792_v43  ;;  %v2802_v27 = vadd.f32 %v4128_v30, %v2793_v16  ;;  %v2803_v58 = vadd.f32 %v4128_v30, %v2794_v26  ;;  %v3945_v26 = vld [vmem:[#allocation17 + $0x20] sm:$0xff] }
 0xa5a   : > { %v2821_v5 = vpack.c.bf16 %v2797_v55, %v2797_v55  ;;  %v2822_v49 = vpack.c.bf16 %v2798_v56, %v2798_v56  ;;  %v2823_v42 = vpack.c.bf16 %v2799_v40, %v2799_v40  ;;  %v2842_v37 = vunpack.c.l.b16 %v2820_v44  ;;  %v3954_v40 = vld [vmem:[#allocation17 + $0x68] sm:$0xff]  ;;  %v3953_v44 = vld [vmem:[#allocation17 + $0x60] sm:$0xff] }
 0xa5b   : > { %v2824_v19 = vpack.c.bf16 %v2800_v29, %v2800_v29  ;;  %v2825_v21 = vpack.c.bf16 %v2801_v28, %v2801_v28  ;;  %v2826_v2 = vpack.c.bf16 %v2802_v27, %v2802_v27  ;;  %v2827_v13 = vpack.c.bf16 %v2803_v58, %v2803_v58  ;;  %3183 = vmatpush.bf16.msra.mxu0 %v3947_v38  ;;  %v3944_v28 = vld [vmem:[#allocation17 + $0x18] sm:$0xff] }
 0xa5c   : > { %v2843_v33 = vunpack.c.l.b16 %v2821_v5  ;;  %v2844_v45 = vunpack.c.l.b16 %v2822_v49  ;;  %v2845_v47 = vunpack.c.l.b16 %v2823_v42  ;;  %v2830_v39 = vperm.slane %v2828_v57, 0  ;;  %3196 = vmatpush.bf16.msrb.mxu3 %v3955_v52  ;;  %v3943_v49 = vld [vmem:[#allocation17 + $0x10] sm:$0xff] }
 0xa5d   : > { %v2846_v36 = vunpack.c.l.b16 %v2824_v19  ;;  %v2847_v48 = vunpack.c.l.b16 %v2825_v21  ;;  %v2848_v17 = vunpack.c.l.b16 %v2826_v2  ;;  %v2849_v7 = vunpack.c.l.b16 %v2827_v13  ;;  %v3952_v21 = vld [vmem:[#allocation17 + $0x58] sm:$0xff]  ;;  %v3942_v13 = vld [vmem:[#allocation17 + $0x8] sm:$0xff] }
 0xa5e   : > { %v2850_v6 = vrot.slane %v2843_v33, 7  ;;  %v2852_v54 = vrot.slane %v2844_v45, 6  ;;  %v2854_v35 = vrot.slane %v2845_v47, 5  ;;  %v2831_v25 = vperm.slane %v2828_v57, 1 }
 0xa5f   : > { %v2856_v12 = vrot.slane %v2846_v36, 4  ;;  %v2858_v50 = vrot.slane %v2847_v48, 3  ;;  %v2860_v59 = vrot.slane %v2848_v17, 2  ;;  %v2862_v30 = vrot.slane %v2849_v7, 1  ;;  %3184 = vmatpush.bf16.msra.mxu0 %v3946_v34  ;;  %v3951_v36 = vld [vmem:[#allocation17 + $0x50] sm:$0xff] }
 0xa60   : > { %v2851_v11 = vsel %vm1665_vm0, %v2850_v6, %v2842_v37  ;;  %3197 = vmatpush.bf16.msrb.mxu3 %v3954_v40  ;;  %v3941_v6 = vld [vmem:[#allocation17] sm:$0xff] }
 0xa61   : > { %v2853_v0 = vsel %vm1668_vm1, %v2852_v54, %v2851_v11  ;;  %v3950_v11 = vld [vmem:[#allocation17 + $0x48] sm:$0xff] }
 0xa62   : > { %v2855_v9 = vsel %vm1671_vm2, %v2854_v35, %v2853_v0 }
 0xa63   : > { %v2857_v15 = vsel %vm1674_vm5, %v2856_v12, %v2855_v9  ;;  %3185 = vmatpush.bf16.msra.mxu0 %v3945_v26 }
 0xa64   : > { %v2859_v63 = vsel %vm1677_vm6, %v2858_v50, %v2857_v15  ;;  %3198 = vmatpush.bf16.msrb.mxu3 %v3953_v44 }
 0xa65   : > { %v2861_v3 = vsel %vm1680_vm7, %v2860_v59, %v2859_v63 }
 0xa66   : > { %v2863_v62 = vsel %vm1683_vm14, %v2862_v30, %v2861_v3  ;;  %v3949_v30 = vld [vmem:[#allocation17 + $0x40] sm:$0xff] }
 0xa67   : > { %v2864_v32 = vpack.c.b16 %v2863_v62, %v2863_v62  ;;  %3186 = vmatpush.bf16.msra.mxu0 %v3944_v28 }
 0xa68   : > { %3199 = vmatpush.bf16.msrb.mxu3 %v3952_v21 }
 0xa69   : > { %2954 = vmatmul.bf16.vlgmr.msrb.gmra.mxu0 %v2864_v32  ;;  %2967 = vmatmul.bf16.vlgmr.msra.gmra.mxu3 %v2864_v32 }
 0xa6b   : > { %3187 = vmatpush.bf16.msra.mxu0 %v3943_v49 }
 0xa6c   : > { %3200 = vmatpush.bf16.msrb.mxu3 %v3951_v36 }
 0xa6f   : > { %3188 = vmatpush.bf16.msra.mxu0 %v3942_v13 }
 0xa70   : > { %3201 = vmatpush.bf16.msrb.mxu3 %v3950_v11 }
 0xa73   : > { %3189 = vmatpush.bf16.msra.mxu0 %v3941_v6 }
 0xa74   : > { %3202 = vmatpush.bf16.msrb.mxu3 %v3949_v30 }
 0xae6   : > { %v2955_v23 = vpop.f32.mrf.mxu0 }
 0xae7   : > { %v5919_v46 = vadd.f32 %v2955_v23, %v2830_v39 }
 0xae9   : > { %v5922_v53 = vmul.f32 0.70710677, %v5919_v46 }
 0xaeb   : > { %v2980_v20 = vand.u32 2147483647, %v5922_v53  ;;  %vm2976_vm15 = vcmp.ge.f32.partialorder %v5922_v53, 0.0 }
 0xaec   : > { %v2968_v14 = vpop.f32.mrf.mxu3 }
 0xaed   : > { %v2982_v41 = vmul.f32 0.3275911, %v2980_v20  ;;  %v5925_v43 = vadd.f32 %v2968_v14, %v2831_v25  ;;  %v3034_v0 = vsub.f32 0.0, %v2980_v20 }
 0xaee   : > { %v2957_v16 = vpop.f32.mrf.mxu0 }
 0xaef   : > { %v2984_v55 = vadd.f32 1.0, %v2982_v41  ;;  %v5928_v56 = vmul.f32 0.70710677, %v5925_v43  ;;  %v3036_v3 = vmul.f32 %v3034_v0, %v2980_v20 }
 0xaf1   : > { %4208 = vrcp.f32 %v2984_v55  ;;  %v5931_v29 = vand.u32 2147483647, %v5928_v56  ;;  %v2997_v33 = vand.u32 2147483648, %v2984_v55  ;;  %v2995_v47 = vand.u32 2147483647, %v2984_v55 }
 0xaf2   : > { %vm2991_vm4 = vweird.f32 %v2984_v55  ;;  %v3038_v8 = vmul.f32 1.442695, %v3036_v3 }
 0xaf3   : > { %v2983_v27 = vmul.f32 0.3275911, %v5931_v29  ;;  %v2998_v54 = vor.u32 1.1754944e-38, %v2997_v33  ;;  %vm2996_vm10 = vcmp.eq.f32.partialorder %v2995_v47, 8.507059e+37  ;;  %v3035_v38 = vsub.f32 0.0, %v5931_v29 }
 0xaf4   : > { %v2970_v58 = vpop.f32.mrf.mxu3 }
 0xaf5   : > { %v2985_v5 = vadd.f32 1.0, %v2983_v27  ;;  %v3037_v41 = vmul.f32 %v3035_v38, %v5931_v29 }
 0xaf7   : > { %v4209_v42 = vpop.eup %4208  ;;  %4210 = vrcp.f32 %v2985_v5  ;;  %v3012_v50 = vand.u32 2147483648, %v2985_v5  ;;  %v3010_v59 = vand.u32 2147483647, %v2985_v5  ;;  %vm3006_vm12 = vweird.f32 %v2985_v5 }
 0xaf8   : > { %v2987_v19 = vmul.f32 %v4209_v42, %v2984_v55  ;;  %vm2992_vm3 = vweird.f32 %v4209_v42  ;;  %4212 = vpow2.f32 %v3038_v8  ;;  %v3040_v40 = vmul.f32 1.442695, %v3037_v41 }
 0xaf9   : > { %vm2993_vm9 = vmor %vm2991_vm4, %vm2992_vm3  ;;  %v3013_v57 = vor.u32 1.1754944e-38, %v3012_v50  ;;  %vm3011_vm13 = vcmp.eq.f32.partialorder %v3010_v59, 8.507059e+37  ;;  %vm2977_vm3 = vcmp.ge.f32.partialorder %v5928_v56, 0.0 }
 0xafa   : > { %v2988_v2 = vsub.f32 1.0, %v2987_v19  ;;  %4214 = vpow2.f32 %v3040_v40  ;;  %v4587_v19 = vmov -1.0  }
 0xafb   : > { %v2978_v21 = vsel %vm2976_vm15, 1.0, %v4587_v19  ;;  %v2979_v53 = vsel %vm2977_vm3, 1.0, %v4587_v19 }
 0xafc   : > { %v2989_v45 = vmul.f32 %v4209_v42, %v2988_v2 }
 0xafd   : > { %v4211_v37 = vpop.eup %4210 }
 0xafe   : > { %v2990_v48 = vadd.f32 %v4209_v42, %v2989_v45  ;;  %v3002_v17 = vmul.f32 %v4211_v37, %v2985_v5  ;;  %vm3007_vm11 = vweird.f32 %v4211_v37  ;;  %v4213_v58 = vpop.eup %4212  ;;  %v2972_v45 = vmul.f32 0.5, %v5919_v46 }
 0xaff   : > { %vm3008_vm8 = vmor %vm3006_vm12, %vm3007_vm11 }
 0xb00   : > { %v2994_v7 = vsel %vm2993_vm9, %v4209_v42, %v2990_v48  ;;  %v3003_v12 = vsub.f32 1.0, %v3002_v17  ;;  %v4215_v33 = vpop.eup %4214  ;;  %v2973_v17 = vmul.f32 0.5, %v5925_v43 }
 0xb01   : > { %v2999_v35 = vsel %vm2996_vm10, %v2998_v54, %v2994_v7 }
 0xb02   : > { %v3016_v9 = vmul.f32 1.0614054, %v2999_v35  ;;  %v3004_v15 = vmul.f32 %v4211_v37, %v3003_v12 }
 0xb04   : > { %v3018_v63 = vadd.f32 -1.4531521, %v3016_v9  ;;  %v3005_v62 = vadd.f32 %v4211_v37, %v3004_v15 }
 0xb06   : > { %v3020_v32 = vmul.f32 %v3018_v63, %v2999_v35  ;;  %v3009_v61 = vsel %vm3008_vm8, %v4211_v37, %v3005_v62 }
 0xb07   : > { %v3014_v23 = vsel %vm3011_vm13, %v3013_v57, %v3009_v61 }
 0xb08   : > { %v3022_v39 = vadd.f32 1.4214138, %v3020_v32  ;;  %v3017_v25 = vmul.f32 1.0614054, %v3014_v23 }
 0xb0a   : > { %v3024_v34 = vmul.f32 %v3022_v39, %v2999_v35  ;;  %v3019_v14 = vadd.f32 -1.4531521, %v3017_v25  ;;  %v4129_v39 = vld [vmem:[#allocation9 + $0xa] ss:$0 sm:$0xff] }
 0xb0c   : > { %v3026_v52 = vadd.f32 -0.28449672, %v3024_v34  ;;  %v3021_v20 = vmul.f32 %v3019_v14, %v3014_v23 }
 0xb0e   : > { %v3028_v16 = vmul.f32 %v3026_v52, %v2999_v35  ;;  %v3023_v26 = vadd.f32 1.4214138, %v3021_v20 }
 0xb10   : > { %v3030_v55 = vadd.f32 0.2548296, %v3028_v16  ;;  %v3025_v28 = vmul.f32 %v3023_v26, %v3014_v23 }
 0xb12   : > { %v3032_v27 = vmul.f32 %v3030_v55, %v2999_v35  ;;  %v3027_v44 = vadd.f32 -0.28449672, %v3025_v28 }
 0xb14   : > { %v3042_v5 = vmul.f32 %v4213_v58, %v3032_v27  ;;  %v3029_v49 = vmul.f32 %v3027_v44, %v3014_v23 }
 0xb16   : > { %v3044_v42 = vsub.f32 1.0, %v3042_v5  ;;  %v3031_v2 = vadd.f32 0.2548296, %v3029_v49 }
 0xb18   : > { %v3046_v29 = vmul.f32 %v3044_v42, %v2978_v21  ;;  %v3033_v13 = vmul.f32 %v3031_v2, %v3014_v23 }
 0xb1a   : > { %v3048_v47 = vadd.f32 1.0, %v3046_v29  ;;  %v3043_v36 = vmul.f32 %v4215_v33, %v3033_v13 }
 0xb1c   : > { %v3050_v37 = vmul.f32 %v3048_v47, %v2972_v45  ;;  %v3045_v48 = vsub.f32 1.0, %v3043_v36 }
 0xb1e   : > { %v3084_v6 = vpack.c.bf16 %v3050_v37, %v3050_v37  ;;  %v3047_v54 = vmul.f32 %v3045_v48, %v2979_v53 }
 0xb20   : > { %3190 = vmatmul.bf16.vlgmr.msra.gmra.mxu0 %v3084_v6  ;;  %v3049_v7 = vadd.f32 1.0, %v3047_v54 }
 0xb22   : > { %v3051_v11 = vmul.f32 %v3049_v7, %v2973_v17 }
 0xb24   : > { %v3085_v35 = vpack.c.bf16 %v3051_v11, %v3051_v11 }
 0xb26   : > { %3203 = vmatmul.bf16.vlgmr.msrb.gmra.mxu3 %v3085_v35 }
 0xb9d   : > { %v3191_v0 = vpop.f32.mrf.mxu0 }
 0xba5   : > { %v3193_v12 = vpop.f32.mrf.mxu0 }
 0xba9   : > { %v3204_v9 = vpop.f32.mrf.mxu3 }
 0xbaa   : > { %v3205_v46 = vadd.f32 %v3204_v9, %v3191_v0 }
 0xbac   : > { %v3209_v50 = vrot.slane %v3205_v46, 1  ;;  %v3210_v15 = vrot.slane %v3205_v46, 2  ;;  %v3211_v56 = vrot.slane %v3205_v46, 3  ;;  %v3212_v59 = vrot.slane %v3205_v46, 4 }
 0xbad   : > { %v3213_v63 = vrot.slane %v3205_v46, 5  ;;  %v3214_v30 = vrot.slane %v3205_v46, 6  ;;  %v3215_v3 = vrot.slane %v3205_v46, 7  ;;  %v3224_v62 = vadd.f32 %v3205_v46, %v5829_v10 }
 0xbae   : > { %v3225_v32 = vadd.f32 %v3209_v50, %v5820_v31  ;;  %v3226_v43 = vadd.f32 %v3210_v15, %v5823_v18  ;;  %v3227_v57 = vadd.f32 %v3211_v56, %v5825_v60  ;;  %v3228_v61 = vadd.f32 %v3212_v59, %v5827_v4 }
 0xbaf   : > { %v3229_v23 = vadd.f32 %v3213_v63, %v5831_v24  ;;  %v3230_v38 = vadd.f32 %v3214_v30, %v5835_v1  ;;  %v3231_v8 = vadd.f32 %v3215_v3, %v5837_v22  ;;  %v3234_v41 = vadd.f32 %v4129_v39, %v3224_v62 }
 0xbb0   : > { %v3235_v25 = vadd.f32 %v4129_v39, %v3225_v32  ;;  %v3236_v34 = vadd.f32 %v4129_v39, %v3226_v43  ;;  %v3237_v14 = vadd.f32 %v4129_v39, %v3227_v57  ;;  %v3238_v10 = vadd.f32 %v4129_v39, %v3228_v61 }
 0xbb1   : > { %v3206_v52 = vpop.f32.mrf.mxu3  ;;  %v3239_v31 = vadd.f32 %v4129_v39, %v3229_v23  ;;  %v3240_v16 = vadd.f32 %v4129_v39, %v3230_v38  ;;  %v3241_v60 = vadd.f32 %v4129_v39, %v3231_v8 }
 0xbb2   : > { %v3252_v20 = vrot.slane %v3235_v25, 7  ;;  %v3254_v18 = vrot.slane %v3236_v34, 6  ;;  %v3256_v26 = vrot.slane %v3237_v14, 5  ;;  %v3258_v55 = vrot.slane %v3238_v10, 4 }
 0xbb3   : > { %v3260_v22 = vrot.slane %v3239_v31, 3  ;;  %v3262_v28 = vrot.slane %v3240_v16, 2  ;;  %v3264_v58 = vrot.slane %v3241_v60, 1 }
 0xbb4   : > { %v3253_v4 = vsel %vm1665_vm0, %v3252_v20, %v3234_v41 }
 0xbb5   : > { %v3255_v24 = vsel %vm1668_vm1, %v3254_v18, %v3253_v4  ;;  %v4130_v18 = vld [vmem:[#allocation9 + $0xb] ss:$0 sm:$0xff] }
 0xbb6   : > { %v3257_v1 = vsel %vm1671_vm2, %v3256_v26, %v3255_v24 }
 0xbb7   : > { %v3259_v40 = vsel %vm1674_vm5, %v3258_v55, %v3257_v1 }
 0xbb8   : > { %v3261_v27 = vsel %vm1677_vm6, %v3260_v22, %v3259_v40 }
 0xbb9   : > { %v3263_v44 = vsel %vm1680_vm7, %v3262_v28, %v3261_v27 }
 0xbba   : > { %v3265_v5 = vsel %vm1683_vm14, %v3264_v58, %v3263_v44 }
 0xbbb   : > { %3267 = vadd.xlane.f32.xlu2 %v3265_v5 }
 0xc2e   : > { %v3268_v49 = vpop.xlane.xlu2 %3267 }
 0xc2f   : > { %v3269_v42 = vmul.f32 %v3268_v49, %v4866_v51 }
 0xc31   : > { %v3271_v19 = vrot.slane %v3269_v42, 1  ;;  %v3272_v21 = vrot.slane %v3269_v42, 2  ;;  %v3273_v2 = vrot.slane %v3269_v42, 3  ;;  %v3274_v29 = vrot.slane %v3269_v42, 4 }
 0xc32   : > { %v3275_v13 = vrot.slane %v3269_v42, 5  ;;  %v3276_v33 = vrot.slane %v3269_v42, 6  ;;  %v3277_v45 = vrot.slane %v3269_v42, 7  ;;  %v3286_v47 = vsub.f32 %v3234_v41, %v3269_v42 }
 0xc33   : > { %v3287_v36 = vsub.f32 %v3235_v25, %v3271_v19  ;;  %v3288_v37 = vsub.f32 %v3236_v34, %v3272_v21  ;;  %v3289_v48 = vsub.f32 %v3237_v14, %v3273_v2  ;;  %v3290_v6 = vsub.f32 %v3238_v10, %v3274_v29 }
 0xc34   : > { %v3291_v53 = vsub.f32 %v3239_v31, %v3275_v13  ;;  %v3292_v54 = vsub.f32 %v3240_v16, %v3276_v33  ;;  %v3293_v17 = vsub.f32 %v3241_v60, %v3277_v45  ;;  %v3294_v12 = vmul.f32 %v3286_v47, %v3286_v47  ;;  %v4131_v13 = vld [vmem:[#allocation9 + $0xc] ss:$0 sm:$0xff] }
 0xc35   : > { %v3295_v7 = vmul.f32 %v3287_v36, %v3287_v36  ;;  %v3296_v11 = vmul.f32 %v3288_v37, %v3288_v37  ;;  %v3297_v35 = vmul.f32 %v3289_v48, %v3289_v48  ;;  %v3298_v0 = vmul.f32 %v3290_v6, %v3290_v6 }
 0xc36   : > { %v3299_v9 = vmul.f32 %v3291_v53, %v3291_v53  ;;  %v3300_v15 = vmul.f32 %v3292_v54, %v3292_v54  ;;  %v3301_v56 = vmul.f32 %v3293_v17, %v3293_v17 }
 0xc37   : > { %v3310_v46 = vrot.slane %v3295_v7, 7  ;;  %v3312_v50 = vrot.slane %v3296_v11, 6  ;;  %v3314_v63 = vrot.slane %v3297_v35, 5  ;;  %v3316_v3 = vrot.slane %v3298_v0, 4 }
 0xc38   : > { %v3318_v32 = vrot.slane %v3299_v9, 3  ;;  %v3320_v57 = vrot.slane %v3300_v15, 2  ;;  %v3322_v39 = vrot.slane %v3301_v56, 1 }
 0xc39   : > { %v3311_v59 = vsel %vm1665_vm0, %v3310_v46, %v3294_v12 }
 0xc3a   : > { %v3313_v30 = vsel %vm1668_vm1, %v3312_v50, %v3311_v59 }
 0xc3b   : > { %v3315_v62 = vsel %vm1671_vm2, %v3314_v63, %v3313_v30 }
 0xc3c   : > { %v3317_v43 = vsel %vm1674_vm5, %v3316_v3, %v3315_v62 }
 0xc3d   : > { %v3319_v61 = vsel %vm1677_vm6, %v3318_v32, %v3317_v43 }
 0xc3e   : > { %v3321_v23 = vsel %vm1680_vm7, %v3320_v57, %v3319_v61 }
 0xc3f   : > { %v3323_v38 = vsel %vm1683_vm14, %v3322_v39, %v3321_v23 }
 0xc40   : > { %3325 = vadd.xlane.f32.xlu1 %v3323_v38 }
 0xcb3   : > { %v3326_v8 = vpop.xlane.xlu1 %3325 }
 0xcb4   : > { %v3327_v25 = vmul.f32 %v3326_v8, %v4866_v51 }
 0xcb6   : > { %v3328_v34 = vadd.f32 1e-05, %v3327_v25 }
 0xcb8   : > { %4216 = vrsqrt.f32 %v3328_v34  ;;  %vm3335_vm9 = vweird.f32 %v3328_v34 }
 0xcbe   : > { %v4217_v14 = vpop.eup %4216 }
 0xcbf   : > { %v3330_v52 = vmul.f32 %v4217_v14, %v3328_v34  ;;  %vm3336_vm4 = vweird.f32 %v4217_v14 }
 0xcc0   : > { %vm3337_vm10 = vmor %vm3335_vm9, %vm3336_vm4 }
 0xcc1   : > { %v3331_v10 = vmul.f32 %v4217_v14, %v3330_v52 }
 0xcc3   : > { %v3332_v41 = vmul.f32 0.5, %v3331_v10 }
 0xcc5   : > { %v3333_v31 = vsub.f32 1.5, %v3332_v41 }
 0xcc7   : > { %v3334_v20 = vmul.f32 %v4217_v14, %v3333_v31 }
 0xcc9   : > { %v3338_v16 = vsel %vm3337_vm10, %v4217_v14, %v3334_v20 }
 0xcca   : > { %v3340_v60 = vrot.slane %v3338_v16, 1  ;;  %v3341_v4 = vrot.slane %v3338_v16, 2  ;;  %v3342_v26 = vrot.slane %v3338_v16, 3  ;;  %v3343_v24 = vrot.slane %v3338_v16, 4 }
 0xccb   : > { %v3355_v55 = vmul.f32 %v3338_v16, %v3286_v47  ;;  %v3344_v1 = vrot.slane %v3338_v16, 5  ;;  %v3345_v51 = vrot.slane %v3338_v16, 6  ;;  %v3346_v22 = vrot.slane %v3338_v16, 7 }
 0xccc   : > { %v3356_v40 = vmul.f32 %v3340_v60, %v3287_v36  ;;  %v3357_v28 = vmul.f32 %v3341_v4, %v3288_v37  ;;  %v3358_v27 = vmul.f32 %v3342_v26, %v3289_v48  ;;  %v3359_v58 = vmul.f32 %v3343_v24, %v3290_v6 }
 0xccd   : > { %v3364_v44 = vmul.f32 %v4130_v18, %v3355_v55  ;;  %v3360_v5 = vmul.f32 %v3344_v1, %v3291_v53  ;;  %v3361_v49 = vmul.f32 %v3345_v51, %v3292_v54  ;;  %v3362_v42 = vmul.f32 %v3346_v22, %v3293_v17 }
 0xcce   : > { %v3365_v19 = vmul.f32 %v4130_v18, %v3356_v40  ;;  %v3366_v21 = vmul.f32 %v4130_v18, %v3357_v28  ;;  %v3367_v2 = vmul.f32 %v4130_v18, %v3358_v27  ;;  %v3368_v29 = vmul.f32 %v4130_v18, %v3359_v58 }
 0xccf   : > { %v3369_v33 = vmul.f32 %v4130_v18, %v3360_v5  ;;  %v3370_v45 = vmul.f32 %v4130_v18, %v3361_v49  ;;  %v3371_v47 = vmul.f32 %v4130_v18, %v3362_v42  ;;  %v3373_v48 = vadd.f32 %v4131_v13, %v3364_v44 }
 0xcd0   : > { %v3374_v7 = vadd.f32 %v4131_v13, %v3365_v19  ;;  %v3375_v11 = vadd.f32 %v4131_v13, %v3366_v21  ;;  %v3376_v36 = vadd.f32 %v4131_v13, %v3367_v2  ;;  %v3377_v37 = vadd.f32 %v4131_v13, %v3368_v29 }
 0xcd1   : > { %v3378_v6 = vadd.f32 %v4131_v13, %v3369_v33  ;;  %v3379_v54 = vadd.f32 %v4131_v13, %v3370_v45  ;;  %v3380_v17 = vadd.f32 %v4131_v13, %v3371_v47 }
 0xcd2   : > { %v3389_v35 = vrot.slane %v3374_v7, 7  ;;  %v3391_v53 = vrot.slane %v3375_v11, 6  ;;  %v3393_v12 = vrot.slane %v3376_v36, 5  ;;  %v3395_v46 = vrot.slane %v3377_v37, 4 }
 0xcd3   : > { %v3397_v15 = vrot.slane %v3378_v6, 3  ;;  %v3399_v59 = vrot.slane %v3379_v54, 2  ;;  %v3401_v30 = vrot.slane %v3380_v17, 1 }
 0xcd4   : > { %v3390_v0 = vsel %vm1665_vm0, %v3389_v35, %v3373_v48 }
 0xcd5   : > { %v3392_v9 = vsel %vm1668_vm1, %v3391_v53, %v3390_v0 }
 0xcd6   : > { %v3394_v50 = vsel %vm1671_vm2, %v3393_v12, %v3392_v9 }
 0xcd7   : > { %v3396_v56 = vsel %vm1674_vm5, %v3395_v46, %v3394_v50 }
 0xcd8   : > { %v3398_v63 = vsel %vm1677_vm6, %v3397_v15, %v3396_v56 }
 0xcd9   : > { %v3400_v3 = vsel %vm1680_vm7, %v3399_v59, %v3398_v63 }
 0xcda   : > { %v3402_v62 = vsel %vm1683_vm14, %v3401_v30, %v3400_v3 }
 0xcdb   : > { %3404 = vst [vmem:[%s536_s24] sm:$0xff] %v3402_v62 }
 0xcdc   : > { %4515 = shalt.err (!%p4512_p8)
}
 0xcdd   : > { %3991 = dma.vmem_to_hbm [thread:$0]  (%p4775_p2), %s3419_s3, 128, %s3421_s13, %s3406_s5  }
 0xcde PF: > { %p4043_p9 = scmp.ge.s32.totalorder %s4570_s20, 2  ;;  %s3432_s28 = sand.u32 1, %s4558_s17  }
 0xcdf   : > { %s3433_s30 = scalar_lea.sflag [#allocation5], %s3432_s28 }
 0xce0   : > { %p4023_p10 = pnand %p4043_p9, %p4779_p4 }
 0xce2   : > { %p4024_p12 = pneg %p4023_p10 }
 0xce4   : > { %4553 = dma.done.wait (%p4024_p12), %s3433_s30, 128  }
 0xce5   : > { %4555 = vsyncadd (%p4024_p12), %s3433_s30, 4294967168  ;;  %p28_p13 = scmp.ge.s32.totalorder %s4749_s26, 6   ;;  %s6055_s17 = smov %s4562_s18 }
 0xce6   : > { %s6056_s18 = smov %s4566_s19  ;;  %s6057_s19 = smov %s4760_s27 }
 0xce7   : > { %s6058_s20 = smov %s4749_s26  ;;  %30 = sbr.rel (!%p28_p13) target bundleno = 16 (0x10), region = 141 }
 0xcec   :  { %3439 = vsyncpa [#allocation4], 1 }
 0xced   :  { %3441 = vsyncpa [#allocation4 + $0x1], 1 }
 0xcee   :  { %3442 = vsyncpa [#allocation7], 1 }
 0xcef   :  { %3443 = vsyncpa [#allocation10], 1 }
 0xcf0   :  { %3444 = vsyncpa [#allocation13], 1 }
 0xcf1   :  { %3445 = vsyncpa [#allocation16], 1 }
 0xcf2   :  { %3446 = vsyncpa [#allocation5], 1 }
 0xcf3   :  { %3448 = vsyncpa [#allocation5 + $0x1], 1 }

</bundles_post_ra>
